<compile_context>
chip_gen: v6e
topology: v6e:2x2x1
jax: 0.10.0
libtpu: 0.0.40
codegen_flags: <defaults>
</compile_context>

<pallas_src>
import functools

import jax
import jax.numpy as jnp
from jax import lax
from jax.experimental import pallas as pl
from jax.experimental.pallas import tpu as pltpu


def _round_up(n, m=128):
    return ((n + m - 1) // m) * m


def _pick_tb(B, N, target_rows=512):
    """Samples per grid step.

    Validity (BlockSpec (8,128) rule): TB == B (blocks equal the full arrays)
    or TB % 8 == 0 (input slab row dim TB*N and output row dim TB are then
    multiples of 8).  Preference order: >= 4 grid steps (two pipelined steps
    per v7x TensorCore), >= 2 steps (megacore at all), M = TB*N a multiple of
    256 (v6e/v7x MXU), M >= target_rows, then the smallest such slab.
    """
    cands = [d for d in range(1, B + 1) if B % d == 0 and (d == B or d % 8 == 0)]

    def score(d):
        g = B // d
        m = d * N
        return (g >= 4, g >= 2, m % 256 == 0, m >= target_rows, -m)

    return max(cands, key=score)


def _vmem_limit_bytes(TB, N, P, C_pad, Hd_pad, NC_pad, depths):
    """Scoped-VMEM limit from actual buffer sizes, capped under physical VMEM."""
    M = TB * N
    bf16, f32 = 2, 4
    weights = bf16 * (P * C_pad
                      + depths * (C_pad * C_pad + 2 * C_pad * Hd_pad)
                      + C_pad * NC_pad)                      # single-buffered
    biases = f32 * (C_pad + depths * (2 * C_pad + Hd_pad) + NC_pad)
    streamed = 2 * bf16 * M * P + 2 * f32 * TB * NC_pad      # double-buffered in/out
    acts = f32 * M * C_pad * 3 + (f32 + bf16) * M * Hd_pad   # x / residual temps / h
    need = weights + biases + streamed + acts
    try:
        cap = int(pltpu.get_tpu_info().vmem_capacity_bytes)
    except Exception:  # pragma: no cover - conservative fallback (v7x per-TC VMEM)
        cap = 64 * 1024 * 1024
    return int(min(max(2 * need, 16 * 1024 * 1024), int(0.9 * cap)))


def _convlmu_kernel(patches_ref, w_pe_ref, b_pe_ref,
                    w_attn_ref, b_attn_ref,
                    w_fc1_ref, b_fc1_ref,
                    w_fc2_ref, b_fc2_ref,
                    w_head_ref, b_head_ref,
                    out_ref, *, depths, tokens):
    M = patches_ref.shape[0]                 # M = TB * tokens
    TB = M // tokens

    # Tokenizer / patch_embed: Conv2d(kernel=ps, stride=ps) == per-patch matmul.
    # K = P (16) is left unpadded; MXU handles the short contraction.
    x = jnp.dot(patches_ref[...], w_pe_ref[...],
                preferred_element_type=jnp.float32) + b_pe_ref[...]      # (M, C_pad) f32

    def block(j, x):
        # Block: x = x + drop_path(attn(x))   (drop_path == Identity here)
        a = jnp.dot(x.astype(jnp.bfloat16), w_attn_ref[j],
                    preferred_element_type=jnp.float32) + b_attn_ref[j]
        x = x + a
        # Block: x = x + drop_path(mlp(x))    (ConvFFN == 1x1 conv -> act -> 1x1 conv)
        h = jnp.dot(x.astype(jnp.bfloat16), w_fc1_ref[j],
                    preferred_element_type=jnp.float32) + b_fc1_ref[j]
        h = jnp.maximum(h, 0.0).astype(jnp.bfloat16)   # widest tensor kept bf16
        m = jnp.dot(h, w_fc2_ref[j],
                    preferred_element_type=jnp.float32) + b_fc2_ref[j]
        return x + m

    if depths <= 4:
        # Unrolled: static weight slices + cross-layer scheduling visibility.
        for j in range(depths):
            x = block(j, x)
    else:
        x = lax.fori_loop(0, depths, block, x)

    # Head (test_mode='normal'): token mean commuted ahead of the affine head
    # (mean(x W + b) == mean(x) W + b, exact).
    x_mean = jnp.mean(x.reshape(TB, tokens, -1), axis=1)                 # (TB, C_pad)
    logits = jnp.dot(x_mean.astype(jnp.bfloat16), w_head_ref[...],
                     preferred_element_type=jnp.float32) + b_head_ref[...]
    out_ref[...] = logits                                                # (TB, NC_pad)


def init_params(key, *, patch_size, in_channels, embed_dims, mlp_ratio, depths, num_classes):
    """Deterministic synthetic init (trunc_normal std=0.02 ~ normal*0.02, zero biases)."""
    P = in_channels * patch_size * patch_size
    C = embed_dims
    Hd = int(C * mlp_ratio)
    ks = jax.random.split(key, 5)
    std = 0.02
    w_pe = jax.random.normal(ks[0], (P, C), jnp.float32) * std
    b_pe = jnp.zeros((1, C), jnp.float32)
    w_attn = jax.random.normal(ks[1], (depths, C, C), jnp.float32) * std
    b_attn = jnp.zeros((depths, 1, C), jnp.float32)
    w_fc1 = jax.random.normal(ks[2], (depths, C, Hd), jnp.float32) * std
    b_fc1 = jnp.zeros((depths, 1, Hd), jnp.float32)
    w_fc2 = jax.random.normal(ks[3], (depths, Hd, C), jnp.float32) * std
    b_fc2 = jnp.zeros((depths, 1, C), jnp.float32)
    w_head = jax.random.normal(ks[4], (C, num_classes), jnp.float32) * std
    b_head = jnp.zeros((1, num_classes), jnp.float32)
    return (w_pe, b_pe, w_attn, b_attn, w_fc1, b_fc1, w_fc2, b_fc2, w_head, b_head)


def _pad_params(params, C_pad, Hd_pad, NC_pad):
    """Zero-pad the lane (last) dims to multiples of 128; cast weights to bf16.

    The patch-feature dim P (w_pe rows) is intentionally left unpadded."""
    (w_pe, b_pe, w_attn, b_attn, w_fc1, b_fc1, w_fc2, b_fc2, w_head, b_head) = params

    def pad2(a, rows, cols):
        pads = [(0, 0)] * (a.ndim - 2) + [(0, rows - a.shape[-2]), (0, cols - a.shape[-1])]
        return jnp.pad(a, pads)

    bf16 = jnp.bfloat16
    P = w_pe.shape[0]
    return (
        pad2(w_pe, P, C_pad).astype(bf16),
        pad2(b_pe, 1, C_pad),
        pad2(w_attn, C_pad, C_pad).astype(bf16),
        pad2(b_attn, 1, C_pad),
        pad2(w_fc1, C_pad, Hd_pad).astype(bf16),
        pad2(b_fc1, 1, Hd_pad),
        pad2(w_fc2, Hd_pad, C_pad).astype(bf16),
        pad2(b_fc2, 1, C_pad),
        pad2(w_head, C_pad, NC_pad).astype(bf16),
        pad2(b_head, 1, NC_pad),
    )


def _const_spec(arr):
    """Whole-array spec with constant block index; fetched once -> single buffer."""
    nd = arr.ndim
    idx = lambda b, _nd=nd: (0,) * _nd
    try:
        return pl.BlockSpec(arr.shape, idx, pipeline_mode=pl.Buffered(1))
    except TypeError:  # pragma: no cover - older Pallas without pipeline_mode
        return pl.BlockSpec(arr.shape, idx)


def convlmu_forward(x, params, *, patch_size, depths, target_rows=512):
    """x: (B, H, W) single-channel input (ConvLMU.forward does x.unsqueeze(1))."""
    B, H, W = x.shape
    ps = patch_size
    Cin = 1
    Hp, Wp = H // ps, W // ps
    N = Hp * Wp
    P = Cin * ps * ps

    (w_pe, _, _, _, w_fc1, _, _, _, w_head, _) = params
    C = w_pe.shape[1]
    Hd = w_fc1.shape[2]
    NC = w_head.shape[1]

    C_pad, Hd_pad, NC_pad = _round_up(C), _round_up(Hd), _round_up(NC)

    # Glue: x.unsqueeze(1) -> NCHW -> non-overlapping patch extraction (im2col
    # for the stride=ps conv).  Streamed slab stays at its native width P=16.
    x4 = x[:, None, :, :].astype(jnp.float32)                            # (B, 1, H, W)
    patches = x4.reshape(B, Cin, Hp, ps, Wp, ps)
    patches = patches.transpose(0, 2, 4, 1, 3, 5).reshape(B, N, P)       # (B, N, P)
    patches = patches.reshape(B * N, P).astype(jnp.bfloat16)             # (B*N, P)

    (w_pe, b_pe, w_attn, b_attn, w_fc1, b_fc1, w_fc2, b_fc2, w_head, b_head) = \
        _pad_params(params, C_pad, Hd_pad, NC_pad)

    TB = _pick_tb(B, N, target_rows)
    G = B // TB

    kernel = functools.partial(_convlmu_kernel, depths=depths, tokens=N)

    out = pl.pallas_call(
        kernel,
        out_shape=jax.ShapeDtypeStruct((B, NC_pad), jnp.float32),
        grid=(G,),
        in_specs=[
            pl.BlockSpec((TB * N, P), lambda b: (b, 0)),                 # streamed patch slab
            _const_spec(w_pe), _const_spec(b_pe),
            _const_spec(w_attn), _const_spec(b_attn),
            _const_spec(w_fc1), _const_spec(b_fc1),
            _const_spec(w_fc2), _const_spec(b_fc2),
            _const_spec(w_head), _const_spec(b_head),
        ],
        out_specs=pl.BlockSpec((TB, NC_pad), lambda b: (b, 0)),
        compiler_params=pltpu.CompilerParams(
            dimension_semantics=("parallel",),
            vmem_limit_bytes=_vmem_limit_bytes(TB, N, P, C_pad, Hd_pad, NC_pad, depths),
        ),
    )(patches, w_pe, b_pe, w_attn, b_attn, w_fc1, b_fc1, w_fc2, b_fc2, w_head, b_head)

    return out[:, :NC]                                                   # (B, num_classes)


if __name__ == "__main__":
    # Small shapes consistent with the module defaults (scaled down), sized so
    # one grid step sees TB*N = 512 token rows (multiple of 256 for the MXU)
    # and the batch grid has 4 steps (>= 2 pipelined steps per v7x TensorCore).
    B, H, W = 32, 32, 32
    patch_size = 4
    in_channels = 1
    embed_dims = 64
    mlp_ratio = 4.0
    depths = 2
    num_classes = 35

    key = jax.random.PRNGKey(0)
    kx, kp = jax.random.split(key)
    x = jax.random.normal(kx, (B, H, W), jnp.float32)

    params = init_params(kp, patch_size=patch_size, in_channels=in_channels,
                         embed_dims=embed_dims, mlp_ratio=mlp_ratio,
                         depths=depths, num_classes=num_classes)

    out = convlmu_forward(x, params, patch_size=patch_size, depths=depths)
    out = jax.block_until_ready(out)
    assert out.shape == (B, num_classes), out.shape
    assert bool(jnp.all(jnp.isfinite(out)))
    print("KERNEL_OK")
</pallas_src>

<mosaic_0001>
module attributes {stable_mosaic.version = 11 : i64} {
  func.func @_convlmu_kernel(%arg0: i32, %arg1: memref<512x16xbf16, #tpu.memory_space<vmem>>, %arg2: memref<16x128xbf16, #tpu.memory_space<vmem>>, %arg3: memref<1x128xf32, #tpu.memory_space<vmem>>, %arg4: memref<2x128x128xbf16, #tpu.memory_space<vmem>>, %arg5: memref<2x1x128xf32, #tpu.memory_space<vmem>>, %arg6: memref<2x128x256xbf16, #tpu.memory_space<vmem>>, %arg7: memref<2x1x256xf32, #tpu.memory_space<vmem>>, %arg8: memref<2x256x128xbf16, #tpu.memory_space<vmem>>, %arg9: memref<2x1x128xf32, #tpu.memory_space<vmem>>, %arg10: memref<128x128xbf16, #tpu.memory_space<vmem>>, %arg11: memref<1x128xf32, #tpu.memory_space<vmem>>, %arg12: memref<8x128xf32, #tpu.memory_space<vmem>>) attributes {dimension_semantics = [#tpu.dimension_semantics<parallel>], iteration_bounds = array<i64: 4>, scalar_prefetch = 0 : i64, scratch_operands = 0 : i64, tpu.core_type = #tpu.core_type<tc>, window_params = [{transform_indices = @transform_0, window_bounds = array<i64: 512, 16>}, {pipeline_mode = #tpu.pipeline_mode<synchronous>, transform_indices = @transform_1, window_bounds = array<i64: 16, 128>}, {pipeline_mode = #tpu.pipeline_mode<synchronous>, transform_indices = @transform_2, window_bounds = array<i64: 1, 128>}, {pipeline_mode = #tpu.pipeline_mode<synchronous>, transform_indices = @transform_3, window_bounds = array<i64: 2, 128, 128>}, {pipeline_mode = #tpu.pipeline_mode<synchronous>, transform_indices = @transform_4, window_bounds = array<i64: 2, 1, 128>}, {pipeline_mode = #tpu.pipeline_mode<synchronous>, transform_indices = @transform_5, window_bounds = array<i64: 2, 128, 256>}, {pipeline_mode = #tpu.pipeline_mode<synchronous>, transform_indices = @transform_6, window_bounds = array<i64: 2, 1, 256>}, {pipeline_mode = #tpu.pipeline_mode<synchronous>, transform_indices = @transform_7, window_bounds = array<i64: 2, 256, 128>}, {pipeline_mode = #tpu.pipeline_mode<synchronous>, transform_indices = @transform_8, window_bounds = array<i64: 2, 1, 128>}, {pipeline_mode = #tpu.pipeline_mode<synchronous>, transform_indices = @transform_9, window_bounds = array<i64: 128, 128>}, {pipeline_mode = #tpu.pipeline_mode<synchronous>, transform_indices = @transform_10, window_bounds = array<i64: 1, 128>}, {transform_indices = @transform_11, window_bounds = array<i64: 8, 128>}]} {
    %c0 = arith.constant 0 : index
    %c0_0 = arith.constant 0 : index
    %0 = vector.load %arg1[%c0, %c0_0] : memref<512x16xbf16, #tpu.memory_space<vmem>>, vector<512x16xbf16>
    %c0_1 = arith.constant 0 : index
    %c0_2 = arith.constant 0 : index
    %1 = vector.load %arg2[%c0_1, %c0_2] : memref<16x128xbf16, #tpu.memory_space<vmem>>, vector<16x128xbf16>
    %cst = arith.constant dense<0.000000e+00> : vector<512x128xf32>
    %2 = tpu.matmul %0, %1, %cst {dimension_numbers = #tpu.dot_dimension_numbers<[1], [0], [0], [1], [0, 0, 1, 1], [], []>} : vector<512x16xbf16>, vector<16x128xbf16>, vector<512x128xf32> -> vector<512x128xf32>
    %c0_3 = arith.constant 0 : index
    %c0_4 = arith.constant 0 : index
    %3 = vector.load %arg3[%c0_3, %c0_4] : memref<1x128xf32, #tpu.memory_space<vmem>>, vector<1x128xf32>
    %4 = vector.broadcast %3 : vector<1x128xf32> to vector<512x128xf32>
    %5 = arith.addf %2, %4 : vector<512x128xf32>
    %6 = arith.truncf %5 : vector<512x128xf32> to vector<512x128xbf16>
    %c0_5 = arith.constant 0 : index
    %c0_6 = arith.constant 0 : index
    %c0_7 = arith.constant 0 : index
    %7 = vector.load %arg4[%c0_5, %c0_6, %c0_7] : memref<2x128x128xbf16, #tpu.memory_space<vmem>>, vector<1x128x128xbf16>
    %8 = vector.shape_cast %7 : vector<1x128x128xbf16> to vector<128x128xbf16>
    %cst_8 = arith.constant dense<0.000000e+00> : vector<512x128xf32>
    %9 = tpu.matmul %6, %8, %cst_8 {dimension_numbers = #tpu.dot_dimension_numbers<[1], [0], [0], [1], [0, 0, 1, 1], [], []>} : vector<512x128xbf16>, vector<128x128xbf16>, vector<512x128xf32> -> vector<512x128xf32>
    %c0_9 = arith.constant 0 : index
    %c0_10 = arith.constant 0 : index
    %c0_11 = arith.constant 0 : index
    %10 = vector.load %arg5[%c0_9, %c0_10, %c0_11] : memref<2x1x128xf32, #tpu.memory_space<vmem>>, vector<1x1x128xf32>
    %11 = vector.shape_cast %10 : vector<1x1x128xf32> to vector<1x128xf32>
    %12 = vector.broadcast %11 : vector<1x128xf32> to vector<512x128xf32>
    %13 = arith.addf %9, %12 : vector<512x128xf32>
    %14 = arith.addf %5, %13 : vector<512x128xf32>
    %15 = arith.truncf %14 : vector<512x128xf32> to vector<512x128xbf16>
    %c0_12 = arith.constant 0 : index
    %c0_13 = arith.constant 0 : index
    %c0_14 = arith.constant 0 : index
    %16 = vector.load %arg6[%c0_12, %c0_13, %c0_14] : memref<2x128x256xbf16, #tpu.memory_space<vmem>>, vector<1x128x256xbf16>
    %17 = vector.shape_cast %16 : vector<1x128x256xbf16> to vector<128x256xbf16>
    %cst_15 = arith.constant dense<0.000000e+00> : vector<512x256xf32>
    %18 = tpu.matmul %15, %17, %cst_15 {dimension_numbers = #tpu.dot_dimension_numbers<[1], [0], [0], [1], [0, 0, 1, 1], [], []>} : vector<512x128xbf16>, vector<128x256xbf16>, vector<512x256xf32> -> vector<512x256xf32>
    %c0_16 = arith.constant 0 : index
    %c0_17 = arith.constant 0 : index
    %c0_18 = arith.constant 0 : index
    %19 = vector.load %arg7[%c0_16, %c0_17, %c0_18] : memref<2x1x256xf32, #tpu.memory_space<vmem>>, vector<1x1x256xf32>
    %20 = vector.shape_cast %19 : vector<1x1x256xf32> to vector<1x256xf32>
    %21 = vector.broadcast %20 : vector<1x256xf32> to vector<512x256xf32>
    %22 = arith.addf %18, %21 : vector<512x256xf32>
    %cst_19 = arith.constant 0.000000e+00 : f32
    %23 = vector.broadcast %cst_19 : f32 to vector<512x256xf32>
    %24 = arith.maximumf %22, %23 : vector<512x256xf32>
    %25 = arith.truncf %24 : vector<512x256xf32> to vector<512x256xbf16>
    %c0_20 = arith.constant 0 : index
    %c0_21 = arith.constant 0 : index
    %c0_22 = arith.constant 0 : index
    %26 = vector.load %arg8[%c0_20, %c0_21, %c0_22] : memref<2x256x128xbf16, #tpu.memory_space<vmem>>, vector<1x256x128xbf16>
    %27 = vector.shape_cast %26 : vector<1x256x128xbf16> to vector<256x128xbf16>
    %cst_23 = arith.constant dense<0.000000e+00> : vector<512x128xf32>
    %28 = tpu.matmul %25, %27, %cst_23 {dimension_numbers = #tpu.dot_dimension_numbers<[1], [0], [0], [1], [0, 0, 1, 1], [], []>} : vector<512x256xbf16>, vector<256x128xbf16>, vector<512x128xf32> -> vector<512x128xf32>
    %c0_24 = arith.constant 0 : index
    %c0_25 = arith.constant 0 : index
    %c0_26 = arith.constant 0 : index
    %29 = vector.load %arg9[%c0_24, %c0_25, %c0_26] : memref<2x1x128xf32, #tpu.memory_space<vmem>>, vector<1x1x128xf32>
    %30 = vector.shape_cast %29 : vector<1x1x128xf32> to vector<1x128xf32>
    %31 = vector.broadcast %30 : vector<1x128xf32> to vector<512x128xf32>
    %32 = arith.addf %28, %31 : vector<512x128xf32>
    %33 = arith.addf %14, %32 : vector<512x128xf32>
    %34 = arith.truncf %33 : vector<512x128xf32> to vector<512x128xbf16>
    %c1 = arith.constant 1 : index
    %c0_27 = arith.constant 0 : index
    %c0_28 = arith.constant 0 : index
    %35 = vector.load %arg4[%c1, %c0_27, %c0_28] : memref<2x128x128xbf16, #tpu.memory_space<vmem>>, vector<1x128x128xbf16>
    %36 = vector.shape_cast %35 : vector<1x128x128xbf16> to vector<128x128xbf16>
    %cst_29 = arith.constant dense<0.000000e+00> : vector<512x128xf32>
    %37 = tpu.matmul %34, %36, %cst_29 {dimension_numbers = #tpu.dot_dimension_numbers<[1], [0], [0], [1], [0, 0, 1, 1], [], []>} : vector<512x128xbf16>, vector<128x128xbf16>, vector<512x128xf32> -> vector<512x128xf32>
    %c1_30 = arith.constant 1 : index
    %c0_31 = arith.constant 0 : index
    %c0_32 = arith.constant 0 : index
    %38 = vector.load %arg5[%c1_30, %c0_31, %c0_32] : memref<2x1x128xf32, #tpu.memory_space<vmem>>, vector<1x1x128xf32>
    %39 = vector.shape_cast %38 : vector<1x1x128xf32> to vector<1x128xf32>
    %40 = vector.broadcast %39 : vector<1x128xf32> to vector<512x128xf32>
    %41 = arith.addf %37, %40 : vector<512x128xf32>
    %42 = arith.addf %33, %41 : vector<512x128xf32>
    %43 = arith.truncf %42 : vector<512x128xf32> to vector<512x128xbf16>
    %c1_33 = arith.constant 1 : index
    %c0_34 = arith.constant 0 : index
    %c0_35 = arith.constant 0 : index
    %44 = vector.load %arg6[%c1_33, %c0_34, %c0_35] : memref<2x128x256xbf16, #tpu.memory_space<vmem>>, vector<1x128x256xbf16>
    %45 = vector.shape_cast %44 : vector<1x128x256xbf16> to vector<128x256xbf16>
    %cst_36 = arith.constant dense<0.000000e+00> : vector<512x256xf32>
    %46 = tpu.matmul %43, %45, %cst_36 {dimension_numbers = #tpu.dot_dimension_numbers<[1], [0], [0], [1], [0, 0, 1, 1], [], []>} : vector<512x128xbf16>, vector<128x256xbf16>, vector<512x256xf32> -> vector<512x256xf32>
    %c1_37 = arith.constant 1 : index
    %c0_38 = arith.constant 0 : index
    %c0_39 = arith.constant 0 : index
    %47 = vector.load %arg7[%c1_37, %c0_38, %c0_39] : memref<2x1x256xf32, #tpu.memory_space<vmem>>, vector<1x1x256xf32>
    %48 = vector.shape_cast %47 : vector<1x1x256xf32> to vector<1x256xf32>
    %49 = vector.broadcast %48 : vector<1x256xf32> to vector<512x256xf32>
    %50 = arith.addf %46, %49 : vector<512x256xf32>
    %cst_40 = arith.constant 0.000000e+00 : f32
    %51 = vector.broadcast %cst_40 : f32 to vector<512x256xf32>
    %52 = arith.maximumf %50, %51 : vector<512x256xf32>
    %53 = arith.truncf %52 : vector<512x256xf32> to vector<512x256xbf16>
    %c1_41 = arith.constant 1 : index
    %c0_42 = arith.constant 0 : index
    %c0_43 = arith.constant 0 : index
    %54 = vector.load %arg8[%c1_41, %c0_42, %c0_43] : memref<2x256x128xbf16, #tpu.memory_space<vmem>>, vector<1x256x128xbf16>
    %55 = vector.shape_cast %54 : vector<1x256x128xbf16> to vector<256x128xbf16>
    %cst_44 = arith.constant dense<0.000000e+00> : vector<512x128xf32>
    %56 = tpu.matmul %53, %55, %cst_44 {dimension_numbers = #tpu.dot_dimension_numbers<[1], [0], [0], [1], [0, 0, 1, 1], [], []>} : vector<512x256xbf16>, vector<256x128xbf16>, vector<512x128xf32> -> vector<512x128xf32>
    %c1_45 = arith.constant 1 : index
    %c0_46 = arith.constant 0 : index
    %c0_47 = arith.constant 0 : index
    %57 = vector.load %arg9[%c1_45, %c0_46, %c0_47] : memref<2x1x128xf32, #tpu.memory_space<vmem>>, vector<1x1x128xf32>
    %58 = vector.shape_cast %57 : vector<1x1x128xf32> to vector<1x128xf32>
    %59 = vector.broadcast %58 : vector<1x128xf32> to vector<512x128xf32>
    %60 = arith.addf %56, %59 : vector<512x128xf32>
    %61 = arith.addf %42, %60 : vector<512x128xf32>
    %62 = vector.shape_cast %61 : vector<512x128xf32> to vector<8x64x128xf32>
    %cst_48 = arith.constant dense<0.000000e+00> : vector<8x128xf32>
    %63 = vector.multi_reduction <add>, %62, %cst_48 [1] : vector<8x64x128xf32> to vector<8x128xf32>
    %cst_49 = arith.constant 6.400000e+01 : f32
    %64 = vector.broadcast %cst_49 : f32 to vector<8x128xf32>
    %65 = arith.divf %63, %64 : vector<8x128xf32>
    %66 = arith.truncf %65 : vector<8x128xf32> to vector<8x128xbf16>
    %c0_50 = arith.constant 0 : index
    %c0_51 = arith.constant 0 : index
    %67 = vector.load %arg10[%c0_50, %c0_51] : memref<128x128xbf16, #tpu.memory_space<vmem>>, vector<128x128xbf16>
    %cst_52 = arith.constant dense<0.000000e+00> : vector<8x128xf32>
    %68 = tpu.matmul %66, %67, %cst_52 {dimension_numbers = #tpu.dot_dimension_numbers<[1], [0], [0], [1], [0, 0, 1, 1], [], []>} : vector<8x128xbf16>, vector<128x128xbf16>, vector<8x128xf32> -> vector<8x128xf32>
    %c0_53 = arith.constant 0 : index
    %c0_54 = arith.constant 0 : index
    %69 = vector.load %arg11[%c0_53, %c0_54] : memref<1x128xf32, #tpu.memory_space<vmem>>, vector<1x128xf32>
    %70 = vector.broadcast %69 : vector<1x128xf32> to vector<8x128xf32>
    %71 = arith.addf %68, %70 : vector<8x128xf32>
    %c0_55 = arith.constant 0 : index
    %c0_56 = arith.constant 0 : index
    %72 = vector.load %arg12[%c0_55, %c0_56] : memref<8x128xf32, #tpu.memory_space<vmem>>, vector<8x128xf32>
    tpu.vector_store %arg12[%c0_55, %c0_56], %71 {strides = array<i32>} : memref<8x128xf32, #tpu.memory_space<vmem>>, vector<8x128xf32>,
    return
  }
  func.func @transform_0(%arg0: i32) -> (i32, i32) {
    %c0_i32 = arith.constant 0 : i32
    %c0_i32_0 = arith.constant 0 : i32
    return %arg0, %c0_i32 : i32, i32
  }
  func.func @transform_1(%arg0: i32) -> (i32, i32) {
    %c0_i32 = arith.constant 0 : i32
    %c0_i32_0 = arith.constant 0 : i32
    %c0_i32_1 = arith.constant 0 : i32
    return %c0_i32, %c0_i32_0 : i32, i32
  }
  func.func @transform_2(%arg0: i32) -> (i32, i32) {
    %c0_i32 = arith.constant 0 : i32
    %c0_i32_0 = arith.constant 0 : i32
    %c0_i32_1 = arith.constant 0 : i32
    return %c0_i32, %c0_i32_0 : i32, i32
  }
  func.func @transform_3(%arg0: i32) -> (i32, i32, i32) {
    %c0_i32 = arith.constant 0 : i32
    %c0_i32_0 = arith.constant 0 : i32
    %c0_i32_1 = arith.constant 0 : i32
    %c0_i32_2 = arith.constant 0 : i32
    return %c0_i32, %c0_i32_0, %c0_i32_1 : i32, i32, i32
  }
  func.func @transform_4(%arg0: i32) -> (i32, i32, i32) {
    %c0_i32 = arith.constant 0 : i32
    %c0_i32_0 = arith.constant 0 : i32
    %c0_i32_1 = arith.constant 0 : i32
    %c0_i32_2 = arith.constant 0 : i32
    return %c0_i32, %c0_i32_0, %c0_i32_1 : i32, i32, i32
  }
  func.func @transform_5(%arg0: i32) -> (i32, i32, i32) {
    %c0_i32 = arith.constant 0 : i32
    %c0_i32_0 = arith.constant 0 : i32
    %c0_i32_1 = arith.constant 0 : i32
    %c0_i32_2 = arith.constant 0 : i32
    return %c0_i32, %c0_i32_0, %c0_i32_1 : i32, i32, i32
  }
  func.func @transform_6(%arg0: i32) -> (i32, i32, i32) {
    %c0_i32 = arith.constant 0 : i32
    %c0_i32_0 = arith.constant 0 : i32
    %c0_i32_1 = arith.constant 0 : i32
    %c0_i32_2 = arith.constant 0 : i32
    return %c0_i32, %c0_i32_0, %c0_i32_1 : i32, i32, i32
  }
  func.func @transform_7(%arg0: i32) -> (i32, i32, i32) {
    %c0_i32 = arith.constant 0 : i32
    %c0_i32_0 = arith.constant 0 : i32
    %c0_i32_1 = arith.constant 0 : i32
    %c0_i32_2 = arith.constant 0 : i32
    return %c0_i32, %c0_i32_0, %c0_i32_1 : i32, i32, i32
  }
  func.func @transform_8(%arg0: i32) -> (i32, i32, i32) {
    %c0_i32 = arith.constant 0 : i32
    %c0_i32_0 = arith.constant 0 : i32
    %c0_i32_1 = arith.constant 0 : i32
    %c0_i32_2 = arith.constant 0 : i32
    return %c0_i32, %c0_i32_0, %c0_i32_1 : i32, i32, i32
  }
  func.func @transform_9(%arg0: i32) -> (i32, i32) {
    %c0_i32 = arith.constant 0 : i32
    %c0_i32_0 = arith.constant 0 : i32
    %c0_i32_1 = arith.constant 0 : i32
    return %c0_i32, %c0_i32_0 : i32, i32
  }
  func.func @transform_10(%arg0: i32) -> (i32, i32) {
    %c0_i32 = arith.constant 0 : i32
    %c0_i32_0 = arith.constant 0 : i32
    %c0_i32_1 = arith.constant 0 : i32
    return %c0_i32, %c0_i32_0 : i32, i32
  }
  func.func @transform_11(%arg0: i32) -> (i32, i32) {
    %c0_i32 = arith.constant 0 : i32
    %c0_i32_0 = arith.constant 0 : i32
    return %arg0, %c0_i32 : i32, i32
  }
}

</mosaic_0001>

<bundles_post_ra>
// kernel: tpu_custom_call.1
= control target key start
LH: loop header
LB: loop body
LE: loop exit
PB: predicated region body
PF: predicated region fallthrough
CT: control target
= control target key end

     0   :  { %s7769_s0 = inlined_call_operand.vmem [shape: bf16[2048,16], index: 0, kind: input, shape index: {}]   ;;  %s7770_s1 = inlined_call_operand.vmem [shape: bf16[16,128], index: 1, kind: input, shape index: {}]   ;;  %s7771_s2 = inlined_call_operand.vmem [shape: f32[1,128], index: 2, kind: input, shape index: {}]   ;;  %s7772_s3 = inlined_call_operand.vmem [shape: bf16[2,128,128], index: 3, kind: input, shape index: {}]   ;;  %s7773_s4 = inlined_call_operand.vmem [shape: f32[2,1,128], index: 4, kind: input, shape index: {}]   ;;  %s7774_s5 = inlined_call_operand.vmem [shape: bf16[2,128,256], index: 5, kind: input, shape index: {}]   ;;  %s7775_s6 = inlined_call_operand.vmem [shape: f32[2,1,256], index: 6, kind: input, shape index: {}]   ;;  %s7776_s7 = inlined_call_operand.vmem [shape: bf16[2,256,128], index: 7, kind: input, shape index: {}]   ;;  %s7777_s8 = inlined_call_operand.vmem [shape: f32[2,1,128], index: 8, kind: input, shape index: {}]   ;;  %s7778_s9 = inlined_call_operand.vmem [shape: bf16[128,128], index: 9, kind: input, shape index: {}]   ;;  %s7779_s10 = inlined_call_operand.vmem [shape: f32[1,128], index: 10, kind: input, shape index: {}]   ;;  %s7780_s11 = inlined_call_operand.hbm [shape: f32[32,128], index: 11, kind: output, shape index: {}]  }
   0x1   :  { %7868 = sst [smem:[#allocation35_spill]] %s7769_s0 }
   0x2   :  { %16 = vsyncpa [#allocation3], 0 }
   0x3   :  { %18 = vsyncpa [#allocation3 + $0x1], 0  ;;  %s5527_s17 = smov 0   ;;  %s5529_s18 = smov 0  }
   0x4   :  { %s5531_s19 = smov 0   ;;  %s5533_s20 = smov 0  }
   0x5 LB: > { %s5548_s21 = sadd.s32 4294967295, %s5461_s20   ;;  %s4615_s22 = sadd.s32 4294967294, %s5461_s20   ;;  %s5461_s20 = sphi %s5533_s20, %s8039_s20   ;;  %s5457_s19 = sphi %s5531_s19, %s8038_s19   ;;  %s5453_s18 = sphi %s5529_s18, %s8037_s18   ;;  %s5449_s17 = sphi %s5527_s17, %s8036_s17  }
   0x6   : > { %s5552_s23 = sadd.s32 1, %s5461_s20   ;;  %s267_s24 = sadd.s32 1, %s5457_s19 }
   0x7   : > { %s264_s25 = ssub.s32 %s5461_s20, %s5552_s23  ;;  %p277_p0 = scmp.ne.s32.totalorder %s5457_s19, %s5453_s18 }
   0x8   : > { %p265_p1 = scmp.eq.s32.totalorder %s264_s25, 0  ;;  %p278_p2 = scmp.eq.s32.totalorder %s5548_s21, 3 }
   0x9   : > { %p283_p3 = scmp.ne.s32.totalorder %s5453_s18, %s5449_s17  ;;  %p284_p4 = scmp.eq.s32.totalorder %s4615_s22, 3 }
   0xa   : > { %s5563_s26 = scalar_select %p265_p1, %s5457_s19, %s267_s24  }
   0xb   : > { %p5565_p5 = por %p278_p2, %p277_p0  ;;  %p5569_p6 = por %p284_p4, %p283_p3 }
   0xc   : > { %p4618_p7 = scmp.ge.s32.totalorder %s5461_s20, 1  ;;  %p341_p8 = scmp.lt.s32.totalorder %s5461_s20, 5 }
   0xe   : > { %p342_p9 = pnand %p4618_p7, %p341_p8 }
  0x10   : > { %345 = sbr.rel (%p342_p9) target bundleno = 1948 (0x79c), region = 64 }
  0x15   : > { %v5264_v0 = vld [vmem:[%s7770_s1] sm:$0xff]   ;;  %s4620_s12 = sshll.u32 %s5548_s21, 6  ;;  %v5297_v1 = vld [vmem:[%s7772_s3 + $0x38] sm:$0xff]   ;;  %s7871_s0 = sld [smem:[#allocation35_spill]]  ;;  %vm627_vm0 = vcmask 130048   ;;  %v5298_v9 = vld [vmem:[%s7772_s3 + $0x30] sm:$0xff]  }
  0x16   : > { %p382_p10 = scmp.lt.s32.totalorder %s4620_s12, 255  ;;  %4974 = vmatprep.subr.bf16.mxu0 %v5264_v0  ;;  %5220 = vmatprep.subr.bf16.mxu1 %v5264_v0  ;;  %v5299_v13 = vld [vmem:[%s7772_s3 + $0x28] sm:$0xff]   ;;  %v5300_v18 = vld [vmem:[%s7772_s3 + $0x20] sm:$0xff]   ;;  %v5301_v20 = vld [vmem:[%s7772_s3 + $0x18] sm:$0xff]   ;;  %vm4437_vm1 = vcmask 1041409   ;;  %vm4439_vm2 = vcmask 1042434  }
  0x17   : > { %4975 = vmatpush3.bf16.msra.mxu0 %v5264_v0  ;;  %5221 = vmatpush3.bf16.msra.mxu1 %v5264_v0  ;;  %v5302_v24 = vld [vmem:[%s7772_s3 + $0x10] sm:$0xff]   ;;  %v5303_v26 = vld [vmem:[%s7772_s3 + $0x8] sm:$0xff]   ;;  %v5304_v40 = vld [vmem:[%s7772_s3] sm:$0xff]   ;;  %vm4441_vm3 = vcmask 1043459   ;;  %vm5465_vm4 = vmmov 0   ;;  %vm4443_vm5 = vcmask 1044484  }
  0x18   : > { %s8041_s12 = smov (!%p382_p10, %s4620_s12), 255  ;;  %5040 = vmatprep.subr.bf16.mxu1 %v5297_v1  ;;  %v5305_v44 = vld [vmem:[%s7774_s5 + $0x70] ss:$8 sps:$4 sm:$0xff]   ;;  %v5307_v45 = vld [vmem:[%s7774_s5 + $0x74] ss:$8 sps:$4 sm:$0xff]   ;;  %vm4445_vm6 = vcmask 1045509  }
  0x19   : > { %s4621_s15 = sshll.u32 %s8041_s12, 2  ;;  %v5681_v46 = vld [vmem:[%s7771_s2] ss:$0 sm:$0xff]  ;;  %v5310_v47 = vld [vmem:[%s7774_s5 + $0x64] ss:$8 sps:$4 sm:$0xff]   ;;  %1609 = vmatprep.subr.bf16.mxu0 %v5307_v45  ;;  %vm4447_vm7 = vcmask 1046534  }
  0x1a   : > { %v5308_v52 = vld [vmem:[%s7774_s5 + $0x60] ss:$8 sps:$4 sm:$0xff]   ;;  %v5313_v55 = vld [vmem:[%s7774_s5 + $0x54] ss:$8 sps:$4 sm:$0xff]   ;;  %v5311_v59 = vld [vmem:[%s7774_s5 + $0x50] ss:$8 sps:$4 sm:$0xff]  }
  0x1b   : > { %s5585_s24 = scalar_lea.vmem %s7871_s0, %s4621_s15  ;;  %v5316_v62 = vld [vmem:[%s7774_s5 + $0x44] ss:$8 sps:$4 sm:$0xff]   ;;  %vm4449_vm8 = vcmask 1047559   ;;  %s4849_s12 = sshll.u32 %s5548_s21, 7 }
  0x1c   : > { %v5265_v2 = vld [vmem:[%s5585_s24] sm:$0xff]   ;;  %v5266_v3 = vld [vmem:[%s5585_s24 + $0x8] sm:$0xff]   ;;  %v5267_v4 = vld [vmem:[%s5585_s24 + $0x10] sm:$0xff]   ;;  %s7728_s22 = scalar_lea.hbm %s7780_s11, %s4849_s12  ;;  %s5466_s21 = smov [#allocation2]  }
  0x1d   : > { %4976 = vmatprep.mubr.msk.bf16.mxu0 %vm627_vm0, %v5265_v2  ;;  %v5268_v5 = vld [vmem:[%s5585_s24 + $0x18] sm:$0xff]   ;;  %v5269_v6 = vld [vmem:[%s5585_s24 + $0x20] sm:$0xff]   ;;  %v5270_v7 = vld [vmem:[%s5585_s24 + $0x28] sm:$0xff]  }
  0x1e   : > { %4977 = vmatmul.mubr.msk.bf16.vlgmr.msra.gmra.mxu0 %vm627_vm0, %v5266_v3  ;;  %v5271_v8 = vld [vmem:[%s5585_s24 + $0x30] sm:$0xff]   ;;  %v5284_v11 = vld [vmem:[%s5585_s24 + $0x98] sm:$0xff]   ;;  %v5285_v12 = vld [vmem:[%s5585_s24 + $0xa0] sm:$0xff]  }
  0x1f   : > { %4980 = vmatprep.mubr.msk.bf16.mxu0 %vm627_vm0, %v5267_v4  ;;  %v5283_v10 = vld [vmem:[%s5585_s24 + $0x90] sm:$0xff]   ;;  %v5272_v14 = vld [vmem:[%s5585_s24 + $0x38] sm:$0xff]   ;;  %v5273_v15 = vld [vmem:[%s5585_s24 + $0x40] sm:$0xff]   ;;  %1610 = vmatpush1.bf16.msra.mxu0 %v5305_v44 }
  0x20   : > { %5012 = vmatprep.mubr.msk.bf16.mxu1 %vm627_vm0, %v5283_v10  ;;  %v5286_v16 = vld [vmem:[%s5585_s24 + $0xa8] sm:$0xff]   ;;  %v5287_v17 = vld [vmem:[%s5585_s24 + $0xb0] sm:$0xff]   ;;  %v5288_v22 = vld [vmem:[%s5585_s24 + $0xb8] sm:$0xff]   ;;  %1611 = vmatprep.subr.bf16.mxu0 %v5310_v47 }
  0x21   : > { %5013 = vmatmul.mubr.msk.bf16.vlgmr.msra.gmra.mxu1 %vm627_vm0, %v5284_v11  ;;  %v5274_v19 = vld [vmem:[%s5585_s24 + $0x48] sm:$0xff]   ;;  %v5275_v21 = vld [vmem:[%s5585_s24 + $0x50] sm:$0xff]   ;;  %v5289_v23 = vld [vmem:[%s5585_s24 + $0xc0] sm:$0xff]  }
  0x22   : > { %5016 = vmatprep.mubr.msk.bf16.mxu1 %vm627_vm0, %v5285_v12  ;;  %5041 = vmatpush3.bf16.msra.mxu1 %v5297_v1  ;;  %v5276_v25 = vld [vmem:[%s5585_s24 + $0x58] sm:$0xff]   ;;  %v5277_v27 = vld [vmem:[%s5585_s24 + $0x60] sm:$0xff]   ;;  %v5290_v28 = vld [vmem:[%s5585_s24 + $0xc8] sm:$0xff]  }
  0x23   : > { %5042 = vmatprep.subr.bf16.mxu1 %v5298_v9  ;;  %v5291_v29 = vld [vmem:[%s5585_s24 + $0xd0] sm:$0xff]   ;;  %v5278_v30 = vld [vmem:[%s5585_s24 + $0x68] sm:$0xff]   ;;  %v5292_v32 = vld [vmem:[%s5585_s24 + $0xd8] sm:$0xff]   ;;  %1612 = vmatpush1.bf16.msra.mxu0 %v5308_v52 }
  0x24   : > { %v5279_v31 = vld [vmem:[%s5585_s24 + $0x70] sm:$0xff]   ;;  %v5293_v33 = vld [vmem:[%s5585_s24 + $0xe0] sm:$0xff]   ;;  %v5280_v34 = vld [vmem:[%s5585_s24 + $0x78] sm:$0xff]   ;;  %1613 = vmatprep.subr.bf16.mxu0 %v5313_v55 }
  0x25   : > { %v5281_v35 = vld [vmem:[%s5585_s24 + $0x80] sm:$0xff]   ;;  %v5294_v36 = vld [vmem:[%s5585_s24 + $0xe8] sm:$0xff]   ;;  %v5295_v37 = vld [vmem:[%s5585_s24 + $0xf0] sm:$0xff]  }
  0x26   : > { %4981 = vmatmul.mubr.msk.bf16.gmra.mxu0 %vm627_vm0, %v5268_v5  ;;  %5043 = vmatpush3.bf16.msra.mxu1 %v5298_v9  ;;  %v5282_v38 = vld [vmem:[%s5585_s24 + $0x88] sm:$0xff]   ;;  %v5296_v39 = vld [vmem:[%s5585_s24 + $0xf8] sm:$0xff]   ;;  %s378_s24 = sand.u32 1, %s5453_s18  }
  0x27   : > { %4984 = vmatprep.mubr.msk.bf16.mxu0 %vm627_vm0, %v5269_v6  ;;  %5044 = vmatprep.subr.bf16.mxu1 %v5299_v13  ;;  %v5314_v3 = vld [vmem:[%s7774_s5 + $0x40] ss:$8 sps:$4 sm:$0xff]   ;;  %v5319_v6 = vld [vmem:[%s7774_s5 + $0x34] ss:$8 sps:$4 sm:$0xff]   ;;  %v5317_v10 = vld [vmem:[%s7774_s5 + $0x30] ss:$8 sps:$4 sm:$0xff]  }
  0x28   : > { %1614 = vmatpush1.bf16.msra.mxu0 %v5311_v59  ;;  %s4619_s25 = sshll.u32 %s378_s24, 3  ;;  %s4543_s29 = scalar_lea.sflag [#allocation3], %s378_s24 }
  0x29   : > { %5017 = vmatmul.mubr.msk.bf16.gmra.mxu1 %vm627_vm0, %v5286_v16  ;;  %1615 = vmatprep.subr.bf16.mxu0 %v5316_v62  ;;  %s380_s13 = scalar_lea.vmem [#allocation2], %s4619_s25  ;;  %s5405_s25 = sshll.u32 %s5466_s21, 4  ;;  %s5406_s25 = int_to_ptr.vmem [resolvable:$false] %s5405_s25 }
  0x2a   : > { %5020 = vmatprep.mubr.msk.bf16.mxu1 %vm627_vm0, %v5287_v17  ;;  %5045 = vmatpush3.bf16.msra.mxu1 %v5299_v13  ;;  %s4556_s14 = sshll.u32 %s380_s13, 4  ;;  %s5407_s15 = scalar_lea.vmem %s5406_s25, 256  ;;  %s7730_s14 = int_to_ptr.vmem [resolvable:$true] %s4556_s14 }
  0x2b   : > { %5046 = vmatprep.subr.bf16.mxu1 %v5300_v18  ;;  %s5401_s30 = scalar_lea.vmem %s7730_s14, 128  ;;  %p5408_p0 = scmp.lt.s32.totalorder %s7730_s14, %s5406_s25 }
  0x2c   : > { %1616 = vmatpush1.bf16.msra.mxu0 %v5314_v3  ;;  %p5402_p11 = scmp.ne.s32.totalorder %s7730_s14, %s5401_s30  ;;  %p5409_p1 = scmp.lt.s32.totalorder %s5407_s15, %s5401_s30 }
  0x2d   : > { %1617 = vmatprep.subr.bf16.mxu0 %v5319_v6 }
  0x2e   : > { %4985 = vmatmul.mubr.msk.bf16.gmra.mxu0 %vm627_vm0, %v5270_v7  ;;  %5047 = vmatpush3.bf16.msra.mxu1 %v5300_v18  ;;  %p5403_p12 = pnand %p5402_p11, %p5565_p5  ;;  %p5410_p2 = por %p5409_p1, %p5408_p0 }
  0x2f   : > { %4988 = vmatprep.mubr.msk.bf16.mxu0 %vm627_vm0, %v5271_v8  ;;  %5048 = vmatprep.subr.bf16.mxu1 %v5301_v20 }
  0x30   : > { %1618 = vmatpush1.bf16.msra.mxu0 %v5317_v10  ;;  %p5404_p13 = pneg %p5403_p12 }
  0x31   : > { %5021 = vmatmul.mubr.msk.bf16.gmra.mxu1 %vm627_vm0, %v5288_v22 }
  0x32   : > { %5024 = vmatprep.mubr.msk.bf16.mxu1 %vm627_vm0, %v5289_v23  ;;  %5049 = vmatpush3.bf16.msra.mxu1 %v5301_v20  ;;  %v5320_v20 = vld [vmem:[%s7774_s5 + $0x20] ss:$8 sps:$4 sm:$0xff]   ;;  %p5411_p3 = pnand %p5410_p2, %p5404_p13 }
  0x33   : > { %5050 = vmatprep.subr.bf16.mxu1 %v5302_v24 }
  0x36   : > { %4989 = vmatmul.mubr.msk.bf16.gmra.mxu0 %vm627_vm0, %v5272_v14  ;;  %5051 = vmatpush3.bf16.msra.mxu1 %v5302_v24  ;;  %v5322_v14 = vld [vmem:[%s7774_s5 + $0x24] ss:$8 sps:$4 sm:$0xff]   ;;  %v5325_v24 = vld [vmem:[%s7774_s5 + $0x14] ss:$8 sps:$4 sm:$0xff]  }
  0x37   : > { %4992 = vmatprep.mubr.msk.bf16.mxu0 %vm627_vm0, %v5273_v15  ;;  %5052 = vmatprep.subr.bf16.mxu1 %v5303_v26 }
  0x38   : > { %1619 = vmatprep.subr.bf16.mxu0 %v5322_v14 }
  0x39   : > { %5025 = vmatmul.mubr.msk.bf16.gmra.mxu1 %vm627_vm0, %v5290_v28  ;;  %1620 = vmatpush1.bf16.msra.mxu0 %v5320_v20  ;;  %v5323_v28 = vld [vmem:[%s7774_s5 + $0x10] ss:$8 sps:$4 sm:$0xff]  }
  0x3a   : > { %5028 = vmatprep.mubr.msk.bf16.mxu1 %vm627_vm0, %v5291_v29  ;;  %5053 = vmatpush3.bf16.msra.mxu1 %v5303_v26 }
  0x3b   : > { %5054 = vmatprep.subr.bf16.mxu1 %v5304_v40  ;;  %1621 = vmatprep.subr.bf16.mxu0 %v5325_v24 }
  0x3d   : > { %1622 = vmatpush1.bf16.msra.mxu0 %v5323_v28 }
  0x3e   : > { %4993 = vmatmul.mubr.msk.bf16.gmra.mxu0 %vm627_vm0, %v5274_v19  ;;  %5055 = vmatpush3.bf16.msra.mxu1 %v5304_v40 }
  0x3f   : > { %4996 = vmatprep.mubr.msk.bf16.mxu0 %vm627_vm0, %v5275_v21 }
  0x41   : > { %5029 = vmatmul.mubr.msk.bf16.gmra.mxu1 %vm627_vm0, %v5292_v32 }
  0x42   : > { %5032 = vmatprep.mubr.msk.bf16.mxu1 %vm627_vm0, %v5293_v33 }
  0x46   : > { %4997 = vmatmul.mubr.msk.bf16.gmra.mxu0 %vm627_vm0, %v5276_v25 }
  0x47   : > { %5000 = vmatprep.mubr.msk.bf16.mxu0 %vm627_vm0, %v5277_v27 }
  0x49   : > { %5033 = vmatmul.mubr.msk.bf16.gmra.mxu1 %vm627_vm0, %v5294_v36 }
  0x4a   : > { %5036 = vmatprep.mubr.msk.bf16.mxu1 %vm627_vm0, %v5295_v37 }
  0x4e   : > { %5001 = vmatmul.mubr.msk.bf16.gmra.mxu0 %vm627_vm0, %v5278_v30 }
  0x4f   : > { %5004 = vmatprep.mubr.msk.bf16.mxu0 %vm627_vm0, %v5279_v31 }
  0x51   : > { %5037 = vmatmul.mubr.msk.bf16.gmra.mxu1 %vm627_vm0, %v5296_v39 }
  0x56   : > { %5005 = vmatmul.mubr.msk.bf16.gmra.mxu0 %vm627_vm0, %v5280_v34 }
  0x57   : > { %5008 = vmatprep.mubr.msk.bf16.mxu0 %vm627_vm0, %v5281_v35 }
  0x5e   : > { %5009 = vmatmul.mubr.msk.bf16.gmra.mxu0 %vm627_vm0, %v5282_v38 }
  0xde   : > { %v4978_v41 = vpop.f32.mrf.mxu0 }
  0xdf   : > { %v5699_v53 = vadd.f32 %v4978_v41, %v5681_v46 }
  0xe0   : > { %v758_v42 = vpop.f32.mrf.mxu0 }
  0xe1   : > { %v5690_v50 = vadd.f32 %v5681_v46, %v758_v42  ;;  %v5736_v9 = vpop.f32.mrf.mxu1 }
  0xe2   : > { %v4979_v43 = vpop.f32.mrf.mxu0 }
  0xe3   : > { %v5687_v48 = vadd.f32 %v4979_v43, %v5681_v46  ;;  %v5744_v13 = vpop.f32.mrf.mxu1 }
  0xe4   : > { %v761_v49 = vpop.f32.mrf.mxu0 }
  0xe5   : > { %v5693_v51 = vadd.f32 %v5681_v46, %v761_v49  ;;  %v1014_v57 = vpack.c.bf16 %v5687_v48, %v5699_v53  ;;  %v5755_v18 = vpop.f32.mrf.mxu1 }
  0xe6   : > { %v4982_v54 = vpop.f32.mrf.mxu0 }
  0xe7   : > { %v1013_v56 = vpack.c.bf16 %v5693_v51, %v5690_v50  ;;  %v5712_v60 = vadd.f32 %v4982_v54, %v5681_v46  ;;  %v5765_v23 = vpop.f32.mrf.mxu1 }
  0xe8   : > { %v774_v58 = vpop.f32.mrf.mxu0 }
  0xe9   : > { %5056 = vmatprep.mubr.bf16.mxu1 %v1013_v56  ;;  %v5718_v63 = vadd.f32 %v5681_v46, %v774_v58  ;;  %v5772_v27 = vpop.f32.mrf.mxu1 }
  0xea   : > { %v4983_v61 = vpop.f32.mrf.mxu0  ;;  %5057 = vmatmul.mubr.bf16.vlgmr.msra.gmra.mxu1 %v1014_v57 }
  0xeb   : > { %v5721_v0 = vadd.f32 %v4983_v61, %v5681_v46  ;;  %v5780_v31 = vpop.f32.mrf.mxu1 }
  0xec   : > { %v777_v1 = vpop.f32.mrf.mxu0 }
  0xed   : > { %v5724_v2 = vadd.f32 %v5681_v46, %v777_v1  ;;  %v1016_v4 = vpack.c.bf16 %v5721_v0, %v5712_v60  ;;  %v5788_v35 = vpop.f32.mrf.mxu1 }
  0xee   : > { %v4986_v5 = vpop.f32.mrf.mxu0 }
  0xef   : > { %v1015_v7 = vpack.c.bf16 %v5724_v2, %v5718_v63  ;;  %v5742_v11 = vadd.f32 %v4986_v5, %v5681_v46  ;;  %v5797_v41 = vpop.f32.mrf.mxu1 }
  0xf0   : > { %v790_v8 = vpop.f32.mrf.mxu0 }
  0xf1   : > { %5060 = vmatprep.mubr.bf16.mxu1 %v1015_v7  ;;  %v5750_v15 = vadd.f32 %v5681_v46, %v790_v8  ;;  %v5808_v49 = vpop.f32.mrf.mxu1 }
  0xf2   : > { %v4987_v12 = vpop.f32.mrf.mxu0  ;;  %5061 = vmatmul.mubr.bf16.gmra.mxu1 %v1016_v4 }
  0xf3   : > { %v5753_v16 = vadd.f32 %v4987_v12, %v5681_v46  ;;  %v5817_v58 = vpop.f32.mrf.mxu1 }
  0xf4   : > { %v793_v17 = vpop.f32.mrf.mxu0 }
  0xf5   : > { %v5758_v19 = vadd.f32 %v5681_v46, %v793_v17  ;;  %v1018_v21 = vpack.c.bf16 %v5753_v16, %v5742_v11  ;;  %v5828_v4 = vpop.f32.mrf.mxu1 }
  0xf6   : > { %v4990_v22 = vpop.f32.mrf.mxu0 }
  0xf7   : > { %v1017_v25 = vpack.c.bf16 %v5758_v19, %v5750_v15  ;;  %v5778_v29 = vadd.f32 %v4990_v22, %v5681_v46  ;;  %v5837_v12 = vpop.f32.mrf.mxu1 }
  0xf8   : > { %v806_v26 = vpop.f32.mrf.mxu0 }
  0xf9   : > { %5064 = vmatprep.mubr.bf16.mxu1 %v1017_v25  ;;  %v5783_v32 = vadd.f32 %v5681_v46, %v806_v26  ;;  %v5848_v24 = vpop.f32.mrf.mxu1 }
  0xfa   : > { %v4991_v30 = vpop.f32.mrf.mxu0  ;;  %5065 = vmatmul.mubr.bf16.gmra.mxu1 %v1018_v21 }
  0xfb   : > { %v5786_v33 = vadd.f32 %v4991_v30, %v5681_v46 }
  0xfc   : > { %v809_v34 = vpop.f32.mrf.mxu0 }
  0xfd   : > { %v5791_v36 = vadd.f32 %v5681_v46, %v809_v34  ;;  %v1020_v37 = vpack.c.bf16 %v5786_v33, %v5778_v29 }
  0xfe   : > { %v4994_v38 = vpop.f32.mrf.mxu0 }
  0xff   : > { %v1019_v39 = vpack.c.bf16 %v5791_v36, %v5783_v32  ;;  %v5800_v42 = vadd.f32 %v4994_v38, %v5681_v46 }
 0x100   : > { %v822_v40 = vpop.f32.mrf.mxu0 }
 0x101   : > { %5068 = vmatprep.mubr.bf16.mxu1 %v1019_v39  ;;  %v5803_v44 = vadd.f32 %v5681_v46, %v822_v40 }
 0x102   : > { %v4995_v43 = vpop.f32.mrf.mxu0  ;;  %5069 = vmatmul.mubr.bf16.gmra.mxu1 %v1020_v37  ;;  %v950_v37 = vpop.f32.mrf.mxu1 }
 0x103   : > { %v5806_v45 = vadd.f32 %v4995_v43, %v5681_v46 }
 0x104   : > { %v825_v47 = vpop.f32.mrf.mxu0 }
 0x105   : > { %v5811_v52 = vadd.f32 %v5681_v46, %v825_v47  ;;  %v1022_v54 = vpack.c.bf16 %v5806_v45, %v5800_v42 }
 0x106   : > { %v4998_v55 = vpop.f32.mrf.mxu0 }
 0x107   : > { %v1021_v56 = vpack.c.bf16 %v5811_v52, %v5803_v44  ;;  %v5820_v59 = vadd.f32 %v4998_v55, %v5681_v46 }
 0x108   : > { %v838_v57 = vpop.f32.mrf.mxu0 }
 0x109   : > { %5072 = vmatprep.mubr.bf16.mxu1 %v1021_v56  ;;  %v5823_v62 = vadd.f32 %v5681_v46, %v838_v57 }
 0x10a   : > { %v4999_v61 = vpop.f32.mrf.mxu0  ;;  %5073 = vmatmul.mubr.bf16.gmra.mxu1 %v1022_v54  ;;  %v5027_v54 = vpop.f32.mrf.mxu1 }
 0x10b   : > { %v5826_v1 = vadd.f32 %v4999_v61, %v5681_v46 }
 0x10c   : > { %v841_v3 = vpop.f32.mrf.mxu0 }
 0x10d   : > { %v5831_v5 = vadd.f32 %v5681_v46, %v841_v3  ;;  %v1024_v6 = vpack.c.bf16 %v5826_v1, %v5820_v59 }
 0x10e   : > { %v5002_v7 = vpop.f32.mrf.mxu0 }
 0x10f   : > { %v1023_v8 = vpack.c.bf16 %v5831_v5, %v5823_v62  ;;  %v5840_v14 = vadd.f32 %v5002_v7, %v5681_v46 }
 0x110   : > { %v854_v10 = vpop.f32.mrf.mxu0 }
 0x111   : > { %5076 = vmatprep.mubr.bf16.mxu1 %v1023_v8  ;;  %v5843_v20 = vadd.f32 %v5681_v46, %v854_v10 }
 0x112   : > { %v5003_v17 = vpop.f32.mrf.mxu0  ;;  %5077 = vmatmul.mubr.bf16.gmra.mxu1 %v1024_v6  ;;  %v953_v6 = vpop.f32.mrf.mxu1 }
 0x113   : > { %v5846_v21 = vadd.f32 %v5003_v17, %v5681_v46 }
 0x114   : > { %v857_v22 = vpop.f32.mrf.mxu0 }
 0x115   : > { %v5851_v25 = vadd.f32 %v5681_v46, %v857_v22  ;;  %v1026_v26 = vpack.c.bf16 %v5846_v21, %v5840_v14  ;;  %v5884_v22 = vadd.f32 %v5681_v46, %v5744_v13 }
 0x116   : > { %v5006_v28 = vpop.f32.mrf.mxu0 }
 0x117   : > { %v1025_v30 = vpack.c.bf16 %v5851_v25, %v5843_v20  ;;  %v5858_v38 = vadd.f32 %v5006_v28, %v5681_v46 }
 0x118   : > { %v870_v34 = vpop.f32.mrf.mxu0 }
 0x119   : > { %5080 = vmatprep.mubr.bf16.mxu1 %v1025_v30  ;;  %v5861_v40 = vadd.f32 %v5681_v46, %v870_v34  ;;  %v5030_v30 = vpop.f32.mrf.mxu1 }
 0x11a   : > { %v5007_v39 = vpop.f32.mrf.mxu0  ;;  %5081 = vmatmul.mubr.bf16.gmra.mxu1 %v1026_v26  ;;  %v5888_v26 = vadd.f32 %v5681_v46, %v5765_v23  ;;  %v5901_v23 = vadd.f32 %v5736_v9, %v5681_v46 }
 0x11b   : > { %v5864_v43 = vadd.f32 %v5007_v39, %v5681_v46  ;;  %v966_v13 = vpop.f32.mrf.mxu1 }
 0x11c   : > { %v873_v47 = vpop.f32.mrf.mxu0 }
 0x11d   : > { %v5867_v55 = vadd.f32 %v5681_v46, %v873_v47  ;;  %v1028_v56 = vpack.c.bf16 %v5864_v43, %v5858_v38 }
 0x11e   : > { %v5010_v57 = vpop.f32.mrf.mxu0 }
 0x11f   : > { %v1027_v61 = vpack.c.bf16 %v5867_v55, %v5861_v40  ;;  %v5874_v7 = vadd.f32 %v5010_v57, %v5681_v46  ;;  %v5905_v57 = vadd.f32 %v5755_v18, %v5681_v46  ;;  %v5326_v18 = vld [vmem:[%s7774_s5] ss:$8 sps:$4 sm:$0xff]  }
 0x120   : > { %v886_v3 = vpop.f32.mrf.mxu0 }
 0x121   : > { %5084 = vmatprep.mubr.bf16.mxu1 %v1027_v61  ;;  %v5877_v10 = vadd.f32 %v5681_v46, %v886_v3  ;;  %v5909_v61 = vadd.f32 %v5681_v46, %v5780_v31  ;;  %v5913_v3 = vadd.f32 %v5681_v46, %v5797_v41  ;;  %v5328_v31 = vld [vmem:[%s7774_s5 + $0x4] ss:$8 sps:$4 sm:$0xff]   ;;  %v5927_v41 = vadd.f32 %v5772_v27, %v5681_v46 }
 0x122   : > { %v5011_v8 = vpop.f32.mrf.mxu0  ;;  %5085 = vmatmul.mubr.bf16.gmra.mxu1 %v1028_v56  ;;  %v1031_v56 = vpack.c.bf16 %v5888_v26, %v5884_v22  ;;  %1623 = vmatprep.subr.bf16.mxu0 %v5328_v31 }
 0x123   : > { %v5880_v17 = vadd.f32 %v5011_v8, %v5681_v46  ;;  %7872 = vst [vmem:[#allocation5_spill] sm:$0xff] %v5909_v61  ;;  %7873 = vst [vmem:[#allocation6_spill] sm:$0xff] %v5913_v3  ;;  %v5031_v8 = vpop.f32.mrf.mxu1  ;;  %v1033_v9 = vpack.c.bf16 %v5913_v3, %v5909_v61  ;;  %1624 = vmatpush1.bf16.msra.mxu0 %v5326_v18  ;;  %v5939_v61 = vadd.f32 %v5681_v46, %v5837_v12  ;;  %v7783_v3 = vmov 0  }
 0x124   : > { %v889_v28 = vpop.f32.mrf.mxu0  ;;  %1641 = vmatprep.mubr.bf16.mxu0 %v7783_v3  ;;  %2289 = vmatprep.subr.bf16.mxu1 %v7783_v3  ;;  %v5953_v12 = vadd.f32 %v5828_v4, %v5681_v46  ;;  %v5959_v18 = vadd.f32 %v5681_v46, %v953_v6  ;;  %v5967_v4 = vadd.f32 %v5848_v24, %v5681_v46 }
 0x125   : > { %v5891_v34 = vadd.f32 %v5681_v46, %v889_v28  ;;  %v1030_v39 = vpack.c.bf16 %v5880_v17, %v5874_v7  ;;  %v1032_v28 = vpack.c.bf16 %v5905_v57, %v5901_v23  ;;  %7875 = vst [vmem:[#allocation8_spill] sm:$0xff] %v5939_v61 }
 0x126   : > { %7878 = vst [vmem:[#allocation11_spill] sm:$0xff] %v5959_v18 }
 0x127   : > { %v1029_v47 = vpack.c.bf16 %v5891_v34, %v5877_v10 }
 0x129   : > { %5088 = vmatprep.mubr.bf16.mxu1 %v1029_v47  ;;  %v5931_v47 = vadd.f32 %v5788_v35, %v5681_v46 }
 0x12a   : > { %5089 = vmatmul.mubr.bf16.gmra.mxu1 %v1030_v39  ;;  %v969_v39 = vpop.f32.mrf.mxu1 }
 0x12b   : > { %5092 = vmatprep.mubr.bf16.mxu1 %v1031_v56  ;;  %v5935_v56 = vadd.f32 %v5681_v46, %v5817_v58  ;;  %v1034_v27 = vpack.c.bf16 %v5931_v47, %v5927_v41  ;;  %v5949_v58 = vadd.f32 %v5808_v49, %v5681_v46  ;;  %v5976_v6 = vadd.f32 %v5681_v46, %v969_v39 }
 0x12c   : > { %v5034_v31 = vpop.f32.mrf.mxu1 }
 0x12d   : > { %7874 = vst [vmem:[#allocation7_spill] sm:$0xff] %v5935_v56  ;;  %v1035_v35 = vpack.c.bf16 %v5939_v61, %v5935_v56  ;;  %7876 = vst [vmem:[#allocation9_spill] sm:$0xff] %v5949_v58  ;;  %v1036_v56 = vpack.c.bf16 %v5953_v12, %v5949_v58  ;;  %v5983_v58 = vadd.f32 %v5030_v30, %v5681_v46 }
 0x12e   : > { %7880 = vst [vmem:[#allocation13_spill] sm:$0xff] %v5976_v6 }
 0x132   : > { %5093 = vmatmul.mubr.bf16.gmra.mxu1 %v1032_v28  ;;  %v982_v28 = vpop.f32.mrf.mxu1 }
 0x133   : > { %5096 = vmatprep.mubr.bf16.mxu1 %v1033_v9  ;;  %v5956_v9 = vadd.f32 %v5681_v46, %v950_v37  ;;  %v5973_v37 = vadd.f32 %v5681_v46, %v966_v13  ;;  %v5989_v13 = vadd.f32 %v5681_v46, %v982_v28 }
 0x134   : > { %v5035_v3 = vpop.f32.mrf.mxu1 }
 0x135   : > { %7877 = vst [vmem:[#allocation10_spill] sm:$0xff] %v5956_v9  ;;  %v1037_v49 = vpack.c.bf16 %v5959_v18, %v5956_v9  ;;  %7879 = vst [vmem:[#allocation12_spill] sm:$0xff] %v5973_v37  ;;  %v1039_v18 = vpack.c.bf16 %v5976_v6, %v5973_v37  ;;  %v5999_v6 = vadd.f32 %v5034_v31, %v5681_v46 }
 0x136   : > { %v985_v61 = vpop.f32.mrf.mxu1  ;;  %7881 = vst [vmem:[#allocation14_spill] sm:$0xff] %v5989_v13 }
 0x137   : > { %v5992_v39 = vadd.f32 %v5681_v46, %v985_v61  ;;  %7882 = vst [vmem:[#allocation15_spill] sm:$0xff] %v5999_v6 }
 0x139   : > { %v1041_v37 = vpack.c.bf16 %v5992_v39, %v5989_v13 }
 0x13a   : > { %5097 = vmatmul.mubr.bf16.gmra.mxu1 %v1034_v27  ;;  %v5970_v27 = vadd.f32 %v5027_v54, %v5681_v46  ;;  %v5986_v54 = vadd.f32 %v5031_v8, %v5681_v46  ;;  %v6002_v8 = vadd.f32 %v5035_v3, %v5681_v46 }
 0x13b   : > { %5100 = vmatprep.mubr.bf16.mxu1 %v1035_v35  ;;  %v5038_v35 = vpop.f32.mrf.mxu1 }
 0x13c   : > { %v1038_v9 = vpack.c.bf16 %v5970_v27, %v5967_v4  ;;  %7883 = vst [vmem:[#allocation16_spill] sm:$0xff] %v6002_v8  ;;  %v6015_v31 = vadd.f32 %v5038_v35, %v5681_v46  ;;  %v5330_v35 = vld [vmem:[%s7776_s7 + $0x30] sm:$0xff]  }
 0x13d   : > { %v998_v24 = vpop.f32.mrf.mxu1 }
 0x13e   : > { %v6005_v28 = vadd.f32 %v5681_v46, %v998_v24  ;;  %7886 = vst [vmem:[#allocation19_spill] sm:$0xff] %v6015_v31  ;;  %v5329_v24 = vld [vmem:[%s7776_s7 + $0x38] sm:$0xff]  }
 0x13f   : > { %2290 = vmatpush1.bf16.msra.mxu1 %v5329_v24  ;;  %v6048_v24 = vld [vmem:[%s7773_s4] ss:$0 sm:$0xff] }
 0x140   : > { %7884 = vst [vmem:[#allocation17_spill] sm:$0xff] %v6005_v28 }
 0x142   : > { %5101 = vmatmul.mubr.bf16.gmra.mxu1 %v1036_v56  ;;  %v5039_v56 = vpop.f32.mrf.mxu1 }
 0x143   : > { %5104 = vmatprep.mubr.bf16.mxu1 %v1037_v49  ;;  %v1040_v49 = vpack.c.bf16 %v5986_v54, %v5983_v58  ;;  %v6018_v3 = vadd.f32 %v5039_v56, %v5681_v46  ;;  %v5332_v56 = vld [vmem:[%s7776_s7 + $0x20] sm:$0xff]  }
 0x144   : > { %v1001_v30 = vpop.f32.mrf.mxu1 }
 0x145   : > { %v6008_v61 = vadd.f32 %v5681_v46, %v1001_v30  ;;  %7887 = vst [vmem:[#allocation20_spill] sm:$0xff] %v6018_v3  ;;  %v5331_v46 = vld [vmem:[%s7776_s7 + $0x28] sm:$0xff]   ;;  %v5333_v30 = vld [vmem:[%s7776_s7 + $0x18] sm:$0xff]  }
 0x147   : > { %7885 = vst [vmem:[#allocation18_spill] sm:$0xff] %v6008_v61 }
 0x14a   : > { %5105 = vmatmul.mubr.bf16.gmra.mxu1 %v1038_v9  ;;  %v1042_v9 = vpack.c.bf16 %v6002_v8, %v5999_v6 }
 0x14b   : > { %5108 = vmatprep.mubr.bf16.mxu1 %v1039_v18  ;;  %v1043_v18 = vpack.c.bf16 %v6008_v61, %v6005_v28 }
 0x152   : > { %5109 = vmatmul.mubr.bf16.gmra.mxu1 %v1040_v49  ;;  %v7888_v49 = vmov 0  }
 0x153   : > { %5112 = vmatprep.mubr.bf16.mxu1 %v1041_v37  ;;  %v1044_v37 = vpack.c.bf16 %v6018_v3, %v6015_v31  ;;  %2291 = vmatprep.subr.bf16.mxu1 %v7888_v49 }
 0x154   : > { %2292 = vmatpush1.bf16.msra.mxu1 %v5330_v35 }
 0x155   : > { %2293 = vmatprep.subr.bf16.mxu1 %v7888_v49 }
 0x158   : > { %2294 = vmatpush1.bf16.msra.mxu1 %v5331_v46 }
 0x159   : > { %2295 = vmatprep.subr.bf16.mxu1 %v7888_v49 }
 0x15a   : > { %5113 = vmatmul.mubr.bf16.gmra.mxu1 %v1042_v9 }
 0x15b   : > { %5116 = vmatprep.mubr.bf16.mxu1 %v1043_v18 }
 0x15c   : > { %2296 = vmatpush1.bf16.msra.mxu1 %v5332_v56  ;;  %v5335_v56 = vld [vmem:[%s7776_s7 + $0x8] sm:$0xff]  }
 0x15d   : > { %2297 = vmatprep.subr.bf16.mxu1 %v7888_v49 }
 0x160   : > { %2298 = vmatpush1.bf16.msra.mxu1 %v5333_v30 }
 0x161   : > { %2299 = vmatprep.subr.bf16.mxu1 %v7888_v49 }
 0x162   : > { %5117 = vmatmul.mubr.bf16.gmra.mxu1 %v1044_v37  ;;  %v5334_v37 = vld [vmem:[%s7776_s7 + $0x10] sm:$0xff]  }
 0x164   : > { %2300 = vmatpush1.bf16.msra.mxu1 %v5334_v37 }
 0x165   : > { %2301 = vmatprep.subr.bf16.mxu1 %v7888_v49 }
 0x168   : > { %2302 = vmatpush1.bf16.msra.mxu1 %v5335_v56 }
 0x169   : > { %2303 = vmatprep.subr.bf16.mxu1 %v7888_v49 }
 0x1aa   : > { %v5058_v9 = vpop.f32.mrf.mxu1 }
 0x1ab   : > { %v1159_v13 = vadd.f32 %v5058_v9, %v6048_v24 }
 0x1ac   : > { %v1150_v18 = vpop.f32.mrf.mxu1 }
 0x1ad   : > { %v1151_v46 = vadd.f32 %v6048_v24, %v1150_v18 }
 0x1ae   : > { %v5059_v35 = vpop.f32.mrf.mxu1 }
 0x1af   : > { %v6057_v28 = vadd.f32 %v1151_v46, %v5690_v50  ;;  %v1162_v18 = vadd.f32 %v5059_v35, %v6048_v24  ;;  %v5336_v50 = vld [vmem:[%s7776_s7] sm:$0xff]   ;;  %v6076_v35 = vadd.f32 %v1159_v13, %v5699_v53 }
 0x1b0   : > { %v1153_v30 = vpop.f32.mrf.mxu1  ;;  %2304 = vmatpush1.bf16.msra.mxu1 %v5336_v50 }
 0x1b1   : > { %v1154_v31 = vadd.f32 %v6048_v24, %v1153_v30  ;;  %2305 = vmatprep.subr.bf16.mxu1 %v7888_v49 }
 0x1b2   : > { %v5062_v3 = vpop.f32.mrf.mxu1 }
 0x1b3   : > { %v6060_v61 = vadd.f32 %v1154_v31, %v5693_v51  ;;  %v6072_v51 = vadd.f32 %v1162_v18, %v5687_v48  ;;  %v5337_v48 = vld [vmem:[%s7776_s7 + $0x78] sm:$0xff]  }
 0x1b4   : > { %v1166_v6 = vpop.f32.mrf.mxu1  ;;  %2306 = vmatpush2.bf16.msra.mxu1 %v5337_v48 }
 0x1b5   : > { %v1469_v37 = vpack.c.bf16 %v6060_v61, %v6057_v28  ;;  %v1470_v9 = vpack.c.bf16 %v6072_v51, %v6076_v35  ;;  %v1167_v30 = vadd.f32 %v6048_v24, %v1166_v6  ;;  %2307 = vmatprep.subr.bf16.mxu1 %v7888_v49 }
 0x1b6   : > { %v5063_v8 = vpop.f32.mrf.mxu1 }
 0x1b7   : > { %1642 = vmatmul.mubr.bf16.vlgmr.msra.gmra.mxu0 %v1469_v37  ;;  %v6091_v13 = vadd.f32 %v1167_v30, %v5718_v63  ;;  %v1178_v37 = vadd.f32 %v5063_v8, %v6048_v24 }
 0x1b8   : > { %1651 = vmatprep.mubr.bf16.mxu0 %v7888_v49  ;;  %v1169_v31 = vpop.f32.mrf.mxu1 }
 0x1b9   : > { %v1170_v46 = vadd.f32 %v6048_v24, %v1169_v31  ;;  %v1175_v31 = vadd.f32 %v5062_v3, %v6048_v24 }
 0x1ba   : > { %v5066_v56 = vpop.f32.mrf.mxu1 }
 0x1bb   : > { %v6087_v18 = vadd.f32 %v1170_v46, %v5724_v2  ;;  %v5338_v2 = vld [vmem:[%s7776_s7 + $0x70] sm:$0xff]   ;;  %v6102_v46 = vadd.f32 %v1178_v37, %v5721_v0  ;;  %v6106_v8 = vadd.f32 %v1175_v31, %v5712_v60  ;;  %v5339_v0 = vld [vmem:[%s7776_s7 + $0x68] sm:$0xff]  }
 0x1bc   : > { %v1182_v53 = vpop.f32.mrf.mxu1  ;;  %2308 = vmatpush2.bf16.msra.mxu1 %v5338_v2 }
 0x1bd   : > { %v1471_v6 = vpack.c.bf16 %v6087_v18, %v6091_v13  ;;  %2309 = vmatprep.subr.bf16.mxu1 %v7888_v49  ;;  %v1472_v3 = vpack.c.bf16 %v6102_v46, %v6106_v8  ;;  %v1183_v48 = vadd.f32 %v6048_v24, %v1182_v53 }
 0x1be   : > { %v5067_v50 = vpop.f32.mrf.mxu1 }
 0x1bf   : > { %1652 = vmatmul.mubr.bf16.gmra.mxu0 %v1470_v9  ;;  %v1194_v31 = vadd.f32 %v5067_v50, %v6048_v24 }
 0x1c0   : > { %1661 = vmatprep.mubr.bf16.mxu0 %v7888_v49  ;;  %v1185_v63 = vpop.f32.mrf.mxu1  ;;  %2310 = vmatpush2.bf16.msra.mxu1 %v5339_v0 }
 0x1c1   : > { %v1186_v9 = vadd.f32 %v6048_v24, %v1185_v63  ;;  %2311 = vmatprep.subr.bf16.mxu1 %v7888_v49  ;;  %v1191_v63 = vadd.f32 %v5066_v56, %v6048_v24 }
 0x1c2   : > { %v5070_v30 = vpop.f32.mrf.mxu1 }
 0x1c3   : > { %v6117_v37 = vadd.f32 %v1186_v9, %v5758_v19  ;;  %v5340_v19 = vld [vmem:[%s7772_s3 + $0x78] sm:$0xff]   ;;  %v5341_v9 = vld [vmem:[%s7776_s7 + $0x60] sm:$0xff]   ;;  %v6139_v56 = vadd.f32 %v1191_v63, %v5742_v11 }
 0x1c4   : > { %v1198_v60 = vpop.f32.mrf.mxu1  ;;  %5120 = vmatprep.subr.bf16.mxu0 %v5340_v19  ;;  %2312 = vmatpush2.bf16.msra.mxu1 %v5341_v9 }
 0x1c5   : > { %5121 = vmatpush3.bf16.msra.mxu0 %v5340_v19  ;;  %2313 = vmatprep.subr.bf16.mxu1 %v7888_v49 }
 0x1c6   : > { %v5071_v2 = vpop.f32.mrf.mxu1 }
 0x1c7   : > { %1662 = vmatmul.mubr.bf16.gmra.mxu0 %v1471_v6  ;;  %v6121_v6 = vadd.f32 %v1183_v48, %v5750_v15  ;;  %v6135_v15 = vadd.f32 %v1194_v31, %v5753_v16  ;;  %v5342_v16 = vld [vmem:[%s7776_s7 + $0x58] sm:$0xff]   ;;  %v1210_v19 = vadd.f32 %v5071_v2, %v6048_v24 }
 0x1c8   : > { %1671 = vmatprep.mubr.bf16.mxu0 %v7888_v49  ;;  %v1201_v50 = vpop.f32.mrf.mxu1  ;;  %2314 = vmatpush2.bf16.msra.mxu1 %v5342_v16 }
 0x1c9   : > { %v1473_v53 = vpack.c.bf16 %v6117_v37, %v6121_v6  ;;  %v1474_v48 = vpack.c.bf16 %v6135_v15, %v6139_v56  ;;  %2315 = vmatprep.subr.bf16.mxu1 %v7888_v49 }
 0x1ca   : > { %v5074_v0 = vpop.f32.mrf.mxu1 }
 0x1cc   : > { %v1214_v11 = vpop.f32.mrf.mxu1 }
 0x1cd   : > { %v1215_v16 = vadd.f32 %v6048_v24, %v1214_v11 }
 0x1ce   : > { %v5075_v9 = vpop.f32.mrf.mxu1 }
 0x1cf   : > { %1672 = vmatmul.mubr.bf16.gmra.mxu0 %v1472_v3  ;;  %v1202_v3 = vadd.f32 %v6048_v24, %v1201_v50  ;;  %v1207_v50 = vadd.f32 %v5070_v30, %v6048_v24 }
 0x1d0   : > { %1681 = vmatprep.mubr.bf16.mxu0 %v7888_v49 }
 0x1d1   : > { %v6150_v31 = vadd.f32 %v1202_v3, %v5791_v36  ;;  %v5343_v36 = vld [vmem:[%s7776_s7 + $0x50] sm:$0xff]   ;;  %v6165_v3 = vadd.f32 %v1210_v19, %v5786_v33  ;;  %v6169_v2 = vadd.f32 %v1207_v50, %v5778_v29  ;;  %v5344_v33 = vld [vmem:[%s7776_s7 + $0x48] sm:$0xff]   ;;  %v1226_v50 = vadd.f32 %v5075_v9, %v6048_v24 }
 0x1d2   : > { %2316 = vmatpush2.bf16.msra.mxu1 %v5343_v36 }
 0x1d3   : > { %2317 = vmatprep.subr.bf16.mxu1 %v7888_v49  ;;  %v1476_v30 = vpack.c.bf16 %v6165_v3, %v6169_v2 }
 0x1d6   : > { %2318 = vmatpush2.bf16.msra.mxu1 %v5344_v33 }
 0x1d7   : > { %1682 = vmatmul.mubr.bf16.gmra.mxu0 %v1473_v53  ;;  %v1199_v53 = vadd.f32 %v6048_v24, %v1198_v60  ;;  %2319 = vmatprep.subr.bf16.mxu1 %v7888_v49 }
 0x1d8   : > { %1691 = vmatprep.mubr.bf16.mxu0 %v7888_v49 }
 0x1d9   : > { %v6154_v63 = vadd.f32 %v1199_v53, %v5783_v32  ;;  %v1217_v32 = vpop.f32.mrf.mxu1 }
 0x1db   : > { %v1475_v60 = vpack.c.bf16 %v6150_v31, %v6154_v63  ;;  %v5078_v53 = vpop.f32.mrf.mxu1 }
 0x1dd   : > { %v1230_v29 = vpop.f32.mrf.mxu1 }
 0x1de   : > { %v1231_v33 = vadd.f32 %v6048_v24, %v1230_v29 }
 0x1df   : > { %1692 = vmatmul.mubr.bf16.gmra.mxu0 %v1474_v48  ;;  %v1218_v48 = vadd.f32 %v6048_v24, %v1217_v32  ;;  %v5079_v36 = vpop.f32.mrf.mxu1  ;;  %v1223_v32 = vadd.f32 %v5074_v0, %v6048_v24 }
 0x1e0   : > { %1701 = vmatprep.mubr.bf16.mxu0 %v7888_v49 }
 0x1e1   : > { %v6180_v19 = vadd.f32 %v1218_v48, %v5811_v52  ;;  %v6192_v52 = vadd.f32 %v1226_v50, %v5806_v45  ;;  %v1233_v48 = vpop.f32.mrf.mxu1  ;;  %v5346_v45 = vld [vmem:[%s7776_s7 + $0x40] sm:$0xff]  }
 0x1e2   : > { %v1234_v9 = vadd.f32 %v6048_v24, %v1233_v48  ;;  %2320 = vmatpush2.bf16.msra.mxu1 %v5346_v45 }
 0x1e7   : > { %1702 = vmatmul.mubr.bf16.gmra.mxu0 %v1475_v60  ;;  %v6184_v60 = vadd.f32 %v1215_v16, %v5803_v44  ;;  %v5345_v44 = vld [vmem:[%s7772_s3 + $0x70] sm:$0xff]   ;;  %v5082_v16 = vpop.f32.mrf.mxu1 }
 0x1e8   : > { %1711 = vmatprep.mubr.bf16.mxu0 %v7888_v49  ;;  %5122 = vmatprep.subr.bf16.mxu0 %v5345_v44 }
 0x1e9   : > { %v1477_v11 = vpack.c.bf16 %v6180_v19, %v6184_v60  ;;  %5123 = vmatpush3.bf16.msra.mxu0 %v5345_v44  ;;  %v1246_v50 = vpop.f32.mrf.mxu1  ;;  %v1239_v44 = vadd.f32 %v5078_v53, %v6048_v24 }
 0x1ea   : > { %v1247_v45 = vadd.f32 %v6048_v24, %v1246_v50 }
 0x1eb   : > { %v5083_v48 = vpop.f32.mrf.mxu1 }
 0x1ef   : > { %1712 = vmatmul.mubr.bf16.gmra.mxu0 %v1476_v30  ;;  %v6198_v30 = vadd.f32 %v1223_v32, %v5800_v42  ;;  %v6209_v42 = vadd.f32 %v1234_v9, %v5831_v5  ;;  %v1242_v32 = vadd.f32 %v5079_v36, %v6048_v24  ;;  %v1249_v5 = vpop.f32.mrf.mxu1  ;;  %v6223_v9 = vadd.f32 %v1239_v44, %v5820_v59 }
 0x1f0   : > { %1721 = vmatprep.mubr.bf16.mxu0 %v7888_v49  ;;  %v1258_v59 = vadd.f32 %v5083_v48, %v6048_v24 }
 0x1f1   : > { %v1478_v0 = vpack.c.bf16 %v6192_v52, %v6198_v30 }
 0x1f2   : > { %v6242_v50 = vadd.f32 %v1258_v59, %v5846_v21 }
 0x1f7   : > { %1722 = vmatmul.mubr.bf16.gmra.mxu0 %v1477_v11  ;;  %v6212_v11 = vadd.f32 %v1231_v33, %v5823_v62  ;;  %v1250_v62 = vadd.f32 %v6048_v24, %v1249_v5  ;;  %v5086_v33 = vpop.f32.mrf.mxu1  ;;  %v1255_v5 = vadd.f32 %v5082_v16, %v6048_v24 }
 0x1f8   : > { %1731 = vmatprep.mubr.bf16.mxu0 %v7888_v49 }
 0x1f9   : > { %v1479_v29 = vpack.c.bf16 %v6209_v42, %v6212_v11  ;;  %v6231_v53 = vadd.f32 %v1250_v62, %v5851_v25  ;;  %v6248_v62 = vadd.f32 %v1255_v5, %v5840_v14 }
 0x1fb   : > { %v1482_v16 = vpack.c.bf16 %v6242_v50, %v6248_v62 }
 0x1ff   : > { %1732 = vmatmul.mubr.bf16.gmra.mxu0 %v1478_v0  ;;  %v6220_v0 = vadd.f32 %v1242_v32, %v5826_v1  ;;  %v1262_v1 = vpop.f32.mrf.mxu1  ;;  %v6234_v32 = vadd.f32 %v1247_v45, %v5843_v20  ;;  %v5347_v20 = vld [vmem:[%s7772_s3 + $0x68] sm:$0xff]  }
 0x200   : > { %1741 = vmatprep.mubr.bf16.mxu0 %v7888_v49  ;;  %5124 = vmatprep.subr.bf16.mxu0 %v5347_v20  ;;  %v1263_v45 = vadd.f32 %v6048_v24, %v1262_v1 }
 0x201   : > { %v1480_v36 = vpack.c.bf16 %v6220_v0, %v6223_v9  ;;  %v5087_v44 = vpop.f32.mrf.mxu1  ;;  %5125 = vmatpush3.bf16.msra.mxu0 %v5347_v20  ;;  %v1271_v20 = vadd.f32 %v5086_v33, %v6048_v24 }
 0x202   : > { %v6259_v14 = vadd.f32 %v1263_v45, %v5861_v40 }
 0x203   : > { %v1265_v25 = vpop.f32.mrf.mxu1 }
 0x204   : > { %v1266_v48 = vadd.f32 %v6048_v24, %v1265_v25 }
 0x206   : > { %v6256_v21 = vadd.f32 %v1266_v48, %v5867_v55  ;;  %v6270_v48 = vadd.f32 %v1271_v20, %v5858_v38 }
 0x207   : > { %1742 = vmatmul.mubr.bf16.gmra.mxu0 %v1479_v29  ;;  %v1481_v29 = vpack.c.bf16 %v6231_v53, %v6234_v32 }
 0x208   : > { %1751 = vmatprep.mubr.bf16.mxu0 %v7888_v49  ;;  %v1483_v5 = vpack.c.bf16 %v6256_v21, %v6259_v14 }
 0x20f   : > { %1752 = vmatmul.mubr.bf16.gmra.mxu0 %v1480_v36  ;;  %v5090_v36 = vpop.f32.mrf.mxu1 }
 0x210   : > { %1761 = vmatprep.mubr.bf16.mxu0 %v7888_v49 }
 0x211   : > { %v1278_v59 = vpop.f32.mrf.mxu1 }
 0x212   : > { %v1279_v45 = vadd.f32 %v6048_v24, %v1278_v59 }
 0x213   : > { %v5091_v25 = vpop.f32.mrf.mxu1 }
 0x214   : > { %v1290_v38 = vadd.f32 %v5091_v25, %v6048_v24 }
 0x215   : > { %v1281_v55 = vpop.f32.mrf.mxu1 }
 0x216   : > { %v1282_v40 = vadd.f32 %v6048_v24, %v1281_v55  ;;  %v1287_v55 = vadd.f32 %v5090_v36, %v6048_v24  ;;  %v6289_v59 = vadd.f32 %v1290_v38, %v5880_v17 }
 0x217   : > { %1762 = vmatmul.mubr.bf16.gmra.mxu0 %v1481_v29  ;;  %v1274_v29 = vadd.f32 %v5087_v44, %v6048_v24 }
 0x218   : > { %1771 = vmatprep.mubr.bf16.mxu0 %v7888_v49  ;;  %v6278_v33 = vadd.f32 %v1282_v40, %v5891_v34  ;;  %7891 = vst [vmem:[#allocation23_spill] sm:$0xff] %v6289_v59  ;;  %v6295_v40 = vadd.f32 %v1287_v55, %v5874_v7 }
 0x219   : > { %v6267_v1 = vadd.f32 %v1274_v29, %v5864_v43  ;;  %v6281_v29 = vadd.f32 %v1279_v45, %v5877_v10  ;;  %v5348_v10 = vld [vmem:[%s7772_s3 + $0x60] sm:$0xff]  }
 0x21a   : > { %7889 = vst [vmem:[#allocation21_spill] sm:$0xff] %v6278_v33  ;;  %7892 = vst [vmem:[#allocation24_spill] sm:$0xff] %v6295_v40  ;;  %5126 = vmatprep.subr.bf16.mxu0 %v5348_v10  ;;  %v1486_v36 = vpack.c.bf16 %v6289_v59, %v6295_v40  ;;  %v7918_v40 = vld [vmem:[#allocation12_spill] sm:$0xff] }
 0x21b   : > { %v1484_v44 = vpack.c.bf16 %v6267_v1, %v6270_v48  ;;  %7890 = vst [vmem:[#allocation22_spill] sm:$0xff] %v6281_v29  ;;  %5127 = vmatpush3.bf16.msra.mxu0 %v5348_v10 }
 0x21f   : > { %1772 = vmatmul.mubr.bf16.gmra.mxu0 %v1482_v16  ;;  %v5094_v16 = vpop.f32.mrf.mxu1 }
 0x220   : > { %1781 = vmatprep.mubr.bf16.mxu0 %v7888_v49  ;;  %v1303_v10 = vadd.f32 %v5094_v16, %v6048_v24  ;;  %v7897_v16 = vld [vmem:[#allocation6_spill] sm:$0xff] }
 0x221   : > { %v1294_v43 = vpop.f32.mrf.mxu1 }
 0x222   : > { %v1295_v45 = vadd.f32 %v6048_v24, %v1294_v43 }
 0x223   : > { %v5095_v20 = vpop.f32.mrf.mxu1 }
 0x224   : > { %v6306_v7 = vadd.f32 %v1295_v45, %v5884_v22 }
 0x225   : > { %v1297_v34 = vpop.f32.mrf.mxu1 }
 0x226   : > { %v1298_v25 = vadd.f32 %v6048_v24, %v1297_v34  ;;  %7894 = vst [vmem:[#allocation26_spill] sm:$0xff] %v6306_v7 }
 0x227   : > { %1782 = vmatmul.mubr.bf16.gmra.mxu0 %v1483_v5  ;;  %v1485_v5 = vpack.c.bf16 %v6278_v33, %v6281_v29 }
 0x228   : > { %1791 = vmatprep.mubr.bf16.mxu0 %v7888_v49  ;;  %v6303_v17 = vadd.f32 %v1298_v25, %v5888_v26  ;;  %v6317_v25 = vadd.f32 %v1303_v10, %v5901_v23 }
 0x22a   : > { %7893 = vst [vmem:[#allocation25_spill] sm:$0xff] %v6303_v17  ;;  %v1487_v55 = vpack.c.bf16 %v6303_v17, %v6306_v7  ;;  %7896 = vst [vmem:[#allocation28_spill] sm:$0xff] %v6317_v25 }
 0x22f   : > { %1792 = vmatmul.mubr.bf16.gmra.mxu0 %v1484_v44  ;;  %v5098_v44 = vpop.f32.mrf.mxu1 }
 0x230   : > { %1801 = vmatprep.mubr.bf16.mxu0 %v7888_v49 }
 0x231   : > { %v1310_v38 = vpop.f32.mrf.mxu1 }
 0x232   : > { %v1311_v45 = vadd.f32 %v6048_v24, %v1310_v38 }
 0x233   : > { %v5099_v34 = vpop.f32.mrf.mxu1 }
 0x234   : > { %v1322_v23 = vadd.f32 %v5099_v34, %v6048_v24 }
 0x235   : > { %v1313_v26 = vpop.f32.mrf.mxu1 }
 0x236   : > { %v6336_v38 = vadd.f32 %v1322_v23, %v5931_v47  ;;  %v7903_v47 = vld [vmem:[#allocation8_spill] sm:$0xff] }
 0x237   : > { %1802 = vmatmul.mubr.bf16.gmra.mxu0 %v1485_v5  ;;  %v1306_v5 = vadd.f32 %v5095_v20, %v6048_v24  ;;  %v1314_v20 = vadd.f32 %v6048_v24, %v1313_v26  ;;  %v1319_v26 = vadd.f32 %v5098_v44, %v6048_v24 }
 0x238   : > { %1811 = vmatprep.mubr.bf16.mxu0 %v7888_v49  ;;  %7901 = vst [vmem:[#allocation29_spill] sm:$0xff] %v6336_v38 }
 0x239   : > { %v6314_v43 = vadd.f32 %v1306_v5, %v5905_v57  ;;  %v7899_v5 = vld [vmem:[#allocation5_spill] sm:$0xff] }
 0x23a   : > { %v6328_v17 = vadd.f32 %v1311_v45, %v7899_v5  ;;  %v6342_v45 = vadd.f32 %v1319_v26, %v5927_v41 }
 0x23b   : > { %7895 = vst [vmem:[#allocation27_spill] sm:$0xff] %v6314_v43  ;;  %v1488_v22 = vpack.c.bf16 %v6314_v43, %v6317_v25 }
 0x23c   : > { %7900 = vst [vmem:[#allocation5_spill] sm:$0xff] %v6328_v17  ;;  %7902 = vst [vmem:[#allocation30_spill] sm:$0xff] %v6342_v45  ;;  %v1490_v34 = vpack.c.bf16 %v6336_v38, %v6342_v45 }
 0x23f   : > { %1812 = vmatmul.mubr.bf16.gmra.mxu0 %v1486_v36  ;;  %v5102_v36 = vpop.f32.mrf.mxu1 }
 0x240   : > { %1821 = vmatprep.mubr.bf16.mxu0 %v7888_v49 }
 0x241   : > { %v1326_v57 = vpop.f32.mrf.mxu1 }
 0x242   : > { %v1327_v5 = vadd.f32 %v6048_v24, %v1326_v57 }
 0x243   : > { %v5103_v43 = vpop.f32.mrf.mxu1 }
 0x244   : > { %v1338_v26 = vadd.f32 %v5103_v43, %v6048_v24 }
 0x246   : > { %v6361_v57 = vadd.f32 %v1338_v26, %v5953_v12 }
 0x247   : > { %1822 = vmatmul.mubr.bf16.gmra.mxu0 %v1487_v55  ;;  %v6325_v55 = vadd.f32 %v1314_v20, %v7897_v16  ;;  %v5349_v20 = vld [vmem:[%s7772_s3 + $0x58] sm:$0xff]  }
 0x248   : > { %1831 = vmatprep.mubr.bf16.mxu0 %v7888_v49  ;;  %5128 = vmatprep.subr.bf16.mxu0 %v5349_v20  ;;  %7907 = vst [vmem:[#allocation31_spill] sm:$0xff] %v6361_v57 }
 0x249   : > { %7898 = vst [vmem:[#allocation6_spill] sm:$0xff] %v6325_v55  ;;  %v1489_v10 = vpack.c.bf16 %v6325_v55, %v6328_v17  ;;  %5129 = vmatpush3.bf16.msra.mxu0 %v5349_v20  ;;  %v7905_v55 = vld [vmem:[#allocation7_spill] sm:$0xff]  ;;  %v1335_v20 = vadd.f32 %v5102_v36, %v6048_v24 }
 0x24a   : > { %v6353_v41 = vadd.f32 %v1327_v5, %v7905_v55  ;;  %v1519_v5 = vlaneseq  ;;  %v7910_v36 = vld [vmem:[#allocation11_spill] sm:$0xff] }
 0x24c   : > { %7906 = vst [vmem:[#allocation7_spill] sm:$0xff] %v6353_v41  ;;  %v6374_v12 = vshrl.u32 %v1519_v5, 7 }
 0x24e   : > { %7912 = vst [vmem:[#allocation32_spill] sm:$0xff] %v6374_v12 }
 0x24f   : > { %1832 = vmatmul.mubr.bf16.gmra.mxu0 %v1488_v22  ;;  %v1329_v22 = vpop.f32.mrf.mxu1 }
 0x250   : > { %1841 = vmatprep.mubr.bf16.mxu0 %v7888_v49  ;;  %v1330_v44 = vadd.f32 %v6048_v24, %v1329_v22 }
 0x251   : > { %v5106_v16 = vpop.f32.mrf.mxu1 }
 0x252   : > { %v6350_v23 = vadd.f32 %v1330_v44, %v7903_v47  ;;  %v7908_v44 = vld [vmem:[#allocation9_spill] sm:$0xff]  ;;  %v1351_v5 = vadd.f32 %v5106_v16, %v6048_v24 }
 0x253   : > { %v6364_v47 = vadd.f32 %v1335_v20, %v7908_v44  ;;  %v7913_v20 = vld [vmem:[#allocation10_spill] sm:$0xff]  ;;  %v5350_v16 = vld [vmem:[%s7772_s3 + $0x50] sm:$0xff]  }
 0x254   : > { %7904 = vst [vmem:[#allocation8_spill] sm:$0xff] %v6350_v23  ;;  %v1491_v38 = vpack.c.bf16 %v6350_v23, %v6353_v41  ;;  %5130 = vmatprep.subr.bf16.mxu0 %v5350_v16 }
 0x255   : > { %7909 = vst [vmem:[#allocation9_spill] sm:$0xff] %v6364_v47  ;;  %v1492_v55 = vpack.c.bf16 %v6361_v57, %v6364_v47  ;;  %v7809_v57 = vsub.s32 1, %v6374_v12  ;;  %5131 = vmatpush3.bf16.msra.mxu0 %v5350_v16 }
 0x257   : > { %1842 = vmatmul.mubr.bf16.gmra.mxu0 %v1489_v10  ;;  %v1342_v10 = vpop.f32.mrf.mxu1 }
 0x258   : > { %1851 = vmatprep.mubr.bf16.mxu0 %v7888_v49  ;;  %v1343_v41 = vadd.f32 %v6048_v24, %v1342_v10  ;;  %v7812_v10 = vsub.s32 0, %v6374_v12 }
 0x259   : > { %v5107_v22 = vpop.f32.mrf.mxu1 }
 0x25a   : > { %v6377_v44 = vadd.f32 %v1343_v41, %v7913_v20 }
 0x25c   : > { %7914 = vst [vmem:[#allocation10_spill] sm:$0xff] %v6377_v44 }
 0x25f   : > { %1852 = vmatmul.mubr.bf16.gmra.mxu0 %v1490_v34  ;;  %v1345_v34 = vpop.f32.mrf.mxu1 }
 0x260   : > { %1861 = vmatprep.mubr.bf16.mxu0 %v7888_v49  ;;  %v1346_v43 = vadd.f32 %v6048_v24, %v1345_v34  ;;  %v1354_v34 = vadd.f32 %v5107_v22, %v6048_v24 }
 0x261   : > { %v5110_v23 = vpop.f32.mrf.mxu1 }
 0x262   : > { %v6394_v22 = vadd.f32 %v1354_v34, %v5970_v27 }
 0x263   : > { %v1358_v26 = vpop.f32.mrf.mxu1 }
 0x264   : > { %7915 = vst [vmem:[#allocation33_spill] sm:$0xff] %v6394_v22 }
 0x267   : > { %1862 = vmatmul.mubr.bf16.gmra.mxu0 %v1491_v38  ;;  %v6372_v38 = vadd.f32 %v1346_v43, %v7910_v36  ;;  %v1517_v43 = vld [vmem:[%s7775_s6] sm:$0x3] }
 0x268   : > { %1871 = vmatprep.mubr.bf16.mxu0 %v7888_v49  ;;  %v6390_v41 = vrot.slane %v1517_v43, %v7809_v57  ;;  %v6398_v20 = vrot.slane %v1517_v43, %v7812_v10 }
 0x269   : > { %7911 = vst [vmem:[#allocation11_spill] sm:$0xff] %v6372_v38  ;;  %v1493_v47 = vpack.c.bf16 %v6372_v38, %v6377_v44 }
 0x26f   : > { %1872 = vmatmul.mubr.bf16.gmra.mxu0 %v1492_v55  ;;  %v5111_v55 = vpop.f32.mrf.mxu1 }
 0x270   : > { %1881 = vmatprep.mubr.bf16.mxu0 %v7888_v49 }
 0x271   : > { %v1361_v44 = vpop.f32.mrf.mxu1 }
 0x272   : > { %v1362_v34 = vadd.f32 %v6048_v24, %v1361_v44 }
 0x273   : > { %v6412_v12 = vpop.f32.mrf.mxu1 }
 0x275   : > { %v1374_v59 = vpop.f32.mrf.mxu1 }
 0x277   : > { %v1643_v36 = vpop.f32.mrf.mxu0  ;;  %1882 = vmatmul.mubr.bf16.gmra.mxu0 %v1493_v47  ;;  %v6404_v47 = vadd.f32 %v1351_v5, %v5967_v4  ;;  %v1359_v5 = vadd.f32 %v6048_v24, %v1358_v26 }
 0x278   : > { %1891 = vmatprep.mubr.bf16.mxu0 %v7888_v49  ;;  %v1644_v43 = vadd.f32 %v1643_v36, %v6398_v20 }
 0x279   : > { %v1645_v38 = vpop.f32.mrf.mxu0  ;;  %7916 = vst [vmem:[#allocation34_spill] sm:$0xff] %v6404_v47  ;;  %v1494_v27 = vpack.c.bf16 %v6394_v22, %v6404_v47  ;;  %v7917_v22 = vld [vmem:[#allocation13_spill] sm:$0xff]  ;;  %v6421_v33 = vadd.f32 %v1359_v5, %v7918_v40 }
 0x27a   : > { %v1646_v45 = vadd.f32 %v1645_v38, %v6390_v41  ;;  %v6418_v47 = vadd.f32 %v1362_v34, %v7917_v22  ;;  %v1962_v44 = vmax.f32 %v1644_v43, 0.0 }
 0x27b   : > { %v1647_v57 = vpop.f32.mrf.mxu0 }
 0x27c   : > { %v1648_v17 = vadd.f32 %v1647_v57, %v6398_v20  ;;  %v1963_v57 = vmax.f32 %v1646_v45, 0.0  ;;  %v1370_v45 = vadd.f32 %v5111_v55, %v6048_v24  ;;  %v1495_v22 = vpack.c.bf16 %v6418_v47, %v6421_v33 }
 0x27d   : > { %v1649_v10 = vpop.f32.mrf.mxu0 }
 0x27e   : > { %v1650_v4 = vadd.f32 %v1649_v10, %v6390_v41  ;;  %v1964_v25 = vmax.f32 %v1648_v17, 0.0  ;;  %v6433_v55 = vadd.f32 %v1370_v45, %v5986_v54 }
 0x27f   : > { %v1653_v38 = vpop.f32.mrf.mxu0  ;;  %1892 = vmatmul.mubr.bf16.gmra.mxu0 %v1494_v27 }
 0x280   : > { %v1965_v7 = vmax.f32 %v1650_v4, 0.0  ;;  %1901 = vmatprep.mubr.bf16.mxu0 %v7888_v49  ;;  %v2090_v10 = vpack.c.bf16 %v1964_v25, %v1962_v44  ;;  %v1654_v27 = vadd.f32 %v1653_v38, %v6398_v20  ;;  %v1367_v25 = vadd.f32 %v5110_v23, %v6048_v24  ;;  %7919 = vst [vmem:[#allocation13_spill] sm:$0xff] %v6433_v55 }
 0x281   : > { %v1655_v36 = vpop.f32.mrf.mxu0 }
 0x282   : > { %v2091_v16 = vpack.c.bf16 %v1965_v7, %v1963_v57  ;;  %v1656_v17 = vadd.f32 %v1655_v36, %v6390_v41  ;;  %v5115_v7 = vpop.f32.mrf.mxu1  ;;  %v1966_v57 = vmax.f32 %v1654_v27, 0.0 }
 0x283   : > { %v1657_v29 = vpop.f32.mrf.mxu0 }
 0x284   : > { %v1658_v26 = vadd.f32 %v1657_v29, %v6398_v20  ;;  %2321 = vmatprep.mubr.bf16.mxu1 %v2091_v16  ;;  %v1967_v5 = vmax.f32 %v1656_v17, 0.0  ;;  %v1377_v38 = vpop.f32.mrf.mxu1  ;;  %v6436_v16 = vadd.f32 %v1367_v25, %v5983_v58 }
 0x285   : > { %v1659_v34 = vpop.f32.mrf.mxu0  ;;  %2322 = vmatmul.mubr.bf16.vlgmr.msra.gmra.mxu1 %v2090_v10  ;;  %v1378_v54 = vadd.f32 %v6048_v24, %v1377_v38 }
 0x286   : > { %v1660_v40 = vadd.f32 %v1659_v34, %v6390_v41  ;;  %v1968_v43 = vmax.f32 %v1658_v26, 0.0  ;;  %v1496_v17 = vpack.c.bf16 %v6433_v55, %v6436_v16  ;;  %v6444_v27 = vpop.f32.mrf.mxu1 }
 0x287   : > { %v1663_v4 = vpop.f32.mrf.mxu0  ;;  %1902 = vmatmul.mubr.bf16.gmra.mxu0 %v1495_v22 }
 0x288   : > { %v1969_v29 = vmax.f32 %v1660_v40, 0.0  ;;  %1911 = vmatprep.mubr.bf16.mxu0 %v7888_v49  ;;  %v2092_v10 = vpack.c.bf16 %v1968_v43, %v1966_v57  ;;  %v1664_v45 = vadd.f32 %v1663_v4, %v6398_v20  ;;  %v1375_v40 = vadd.f32 %v6048_v24, %v1374_v59  ;;  %v1390_v38 = vpop.f32.mrf.mxu1 }
 0x289   : > { %v1665_v44 = vpop.f32.mrf.mxu0  ;;  %v6450_v57 = vadd.f32 %v1378_v54, %v5992_v39 }
 0x28a   : > { %v2093_v36 = vpack.c.bf16 %v1969_v29, %v1967_v5  ;;  %v1666_v23 = vadd.f32 %v1665_v44, %v6390_v41  ;;  %v1970_v44 = vmax.f32 %v1664_v45, 0.0  ;;  %v5119_v45 = vpop.f32.mrf.mxu1 }
 0x28b   : > { %v1667_v34 = vpop.f32.mrf.mxu0 }
 0x28c   : > { %v1668_v26 = vadd.f32 %v1667_v34, %v6398_v20  ;;  %2329 = vmatprep.mubr.bf16.mxu1 %v2093_v36  ;;  %v1971_v5 = vmax.f32 %v1666_v23, 0.0  ;;  %v1386_v23 = vadd.f32 %v5115_v7, %v6048_v24  ;;  %v7921_v7 = vld [vmem:[#allocation16_spill] sm:$0xff] }
 0x28d   : > { %v1669_v22 = vpop.f32.mrf.mxu0  ;;  %2330 = vmatmul.mubr.bf16.gmra.mxu1 %v2092_v10  ;;  %v7920_v10 = vld [vmem:[#allocation14_spill] sm:$0xff] }
 0x28e   : > { %v1670_v58 = vadd.f32 %v1669_v22, %v6390_v41  ;;  %v1972_v25 = vmax.f32 %v1668_v26, 0.0  ;;  %v6453_v34 = vadd.f32 %v1375_v40, %v7920_v10  ;;  %v1383_v40 = vadd.f32 %v6412_v12, %v6048_v24 }
 0x28f   : > { %v1673_v43 = vpop.f32.mrf.mxu0  ;;  %1912 = vmatmul.mubr.bf16.gmra.mxu0 %v1496_v17 }
 0x290   : > { %v1973_v29 = vmax.f32 %v1670_v58, 0.0  ;;  %1921 = vmatprep.mubr.bf16.mxu0 %v7888_v49  ;;  %v2094_v22 = vpack.c.bf16 %v1972_v25, %v1970_v44  ;;  %v1497_v39 = vpack.c.bf16 %v6450_v57, %v6453_v34  ;;  %v1674_v17 = vadd.f32 %v1673_v43, %v6398_v20 }
 0x291   : > { %v1675_v4 = vpop.f32.mrf.mxu0  ;;  %v6466_v44 = vadd.f32 %v1386_v23, %v7921_v7 }
 0x292   : > { %v2095_v36 = vpack.c.bf16 %v1973_v29, %v1971_v5  ;;  %v1676_v59 = vadd.f32 %v1675_v4, %v6390_v41  ;;  %v1974_v4 = vmax.f32 %v1674_v17, 0.0 }
 0x293   : > { %v1677_v55 = vpop.f32.mrf.mxu0  ;;  %7922 = vst [vmem:[#allocation12_spill] sm:$0xff] %v6466_v44 }
 0x294   : > { %v1678_v26 = vadd.f32 %v1677_v55, %v6398_v20  ;;  %2337 = vmatprep.mubr.bf16.mxu1 %v2095_v36  ;;  %v1975_v55 = vmax.f32 %v1676_v59, 0.0  ;;  %v1393_v36 = vpop.f32.mrf.mxu1 }
 0x295   : > { %v1679_v54 = vpop.f32.mrf.mxu0  ;;  %2338 = vmatmul.mubr.bf16.gmra.mxu1 %v2094_v22  ;;  %v5351_v22 = vld [vmem:[%s7772_s3 + $0x48] sm:$0xff]   ;;  %v1394_v17 = vadd.f32 %v6048_v24, %v1393_v36 }
 0x296   : > { %v1680_v58 = vadd.f32 %v1679_v54, %v6390_v41  ;;  %v1976_v25 = vmax.f32 %v1678_v26, 0.0  ;;  %v7923_v54 = vld [vmem:[#allocation15_spill] sm:$0xff]  ;;  %5132 = vmatprep.subr.bf16.mxu0 %v5351_v22 }
 0x297   : > { %v1683_v5 = vpop.f32.mrf.mxu0  ;;  %1922 = vmatmul.mubr.bf16.gmra.mxu0 %v1497_v39  ;;  %v6472_v12 = vadd.f32 %v1383_v40, %v7923_v54  ;;  %v7925_v54 = vld [vmem:[#allocation18_spill] sm:$0xff] }
 0x298   : > { %v1977_v29 = vmax.f32 %v1680_v58, 0.0  ;;  %1931 = vmatprep.mubr.bf16.mxu0 %v7888_v49  ;;  %v2096_v26 = vpack.c.bf16 %v1976_v25, %v1974_v4  ;;  %5133 = vmatpush3.bf16.msra.mxu0 %v5351_v22  ;;  %v1391_v25 = vadd.f32 %v6048_v24, %v1390_v38 }
 0x299   : > { %v1685_v43 = vpop.f32.mrf.mxu0  ;;  %7924 = vst [vmem:[#allocation14_spill] sm:$0xff] %v6472_v12  ;;  %v1498_v23 = vpack.c.bf16 %v6466_v44, %v6472_v12  ;;  %v7927_v12 = vld [vmem:[#allocation17_spill] sm:$0xff] }
 0x29a   : > { %v2097_v10 = vpack.c.bf16 %v1977_v29, %v1975_v55  ;;  %v1686_v59 = vadd.f32 %v1685_v43, %v6390_v41  ;;  %v1684_v55 = vadd.f32 %v1683_v5, %v6398_v20 }
 0x29b   : > { %v1687_v39 = vpop.f32.mrf.mxu0 }
 0x29c   : > { %v1688_v58 = vadd.f32 %v1687_v39, %v6398_v20  ;;  %2345 = vmatprep.mubr.bf16.mxu1 %v2097_v10  ;;  %v1979_v43 = vmax.f32 %v1686_v59, 0.0  ;;  %v6484_v39 = vadd.f32 %v1394_v17, %v7925_v54  ;;  %v1978_v36 = vmax.f32 %v1684_v55, 0.0 }
 0x29d   : > { %v1689_v29 = vpop.f32.mrf.mxu0  ;;  %2346 = vmatmul.mubr.bf16.gmra.mxu1 %v2096_v26  ;;  %v6487_v26 = vadd.f32 %v1391_v25, %v7927_v12  ;;  %v1402_v59 = vadd.f32 %v5119_v45, %v6048_v24  ;;  %v1399_v12 = vadd.f32 %v6444_v27, %v6048_v24  ;;  %v5352_v45 = vld [vmem:[%s7774_s5 + $0xf0] ss:$8 sps:$4 sm:$0xff]  }
 0x29e   : > { %v1690_v40 = vadd.f32 %v1689_v29, %v6390_v41  ;;  %v1980_v7 = vmax.f32 %v1688_v58, 0.0  ;;  %7926 = vst [vmem:[#allocation16_spill] sm:$0xff] %v6484_v39 }
 0x29f   : > { %v1693_v4 = vpop.f32.mrf.mxu0  ;;  %1932 = vmatmul.mubr.bf16.gmra.mxu0 %v1498_v23  ;;  %v1499_v23 = vpack.c.bf16 %v6484_v39, %v6487_v26 }
 0x2a0   : > { %v1981_v10 = vmax.f32 %v1690_v40, 0.0  ;;  %1941 = vmatprep.mubr.bf16.mxu0 %v7888_v49  ;;  %v2098_v22 = vpack.c.bf16 %v1980_v7, %v1978_v36  ;;  %v1694_v17 = vadd.f32 %v1693_v4, %v6398_v20  ;;  %v5354_v4 = vld [vmem:[%s7774_s5 + $0xf4] ss:$8 sps:$4 sm:$0xff]  }
 0x2a1   : > { %v1695_v44 = vpop.f32.mrf.mxu0  ;;  %3242 = vmatprep.subr.bf16.mxu1 %v5354_v4 }
 0x2a2   : > { %v2099_v5 = vpack.c.bf16 %v1981_v10, %v1979_v43  ;;  %v1696_v38 = vadd.f32 %v1695_v44, %v6390_v41  ;;  %v7928_v10 = vld [vmem:[#allocation20_spill] sm:$0xff]  ;;  %v1982_v36 = vmax.f32 %v1694_v17, 0.0  ;;  %3243 = vmatpush1.bf16.msra.mxu1 %v5352_v45 }
 0x2a3   : > { %v1697_v29 = vpop.f32.mrf.mxu0  ;;  %v6506_v54 = vadd.f32 %v1402_v59, %v7928_v10 }
 0x2a4   : > { %v1698_v58 = vadd.f32 %v1697_v29, %v6398_v20  ;;  %2353 = vmatprep.mubr.bf16.mxu1 %v2099_v5  ;;  %v1983_v44 = vmax.f32 %v1696_v38, 0.0  ;;  %v7930_v5 = vld [vmem:[#allocation19_spill] sm:$0xff] }
 0x2a5   : > { %v1699_v55 = vpop.f32.mrf.mxu0  ;;  %2354 = vmatmul.mubr.bf16.gmra.mxu1 %v2098_v22  ;;  %7929 = vst [vmem:[#allocation15_spill] sm:$0xff] %v6506_v54  ;;  %v6509_v22 = vadd.f32 %v1399_v12, %v7930_v5 }
 0x2a6   : > { %v1700_v40 = vadd.f32 %v1699_v55, %v6390_v41  ;;  %v1984_v25 = vmax.f32 %v1698_v58, 0.0 }
 0x2a7   : > { %v1703_v7 = vpop.f32.mrf.mxu0  ;;  %1942 = vmatmul.mubr.bf16.gmra.mxu0 %v1499_v23  ;;  %7931 = vst [vmem:[#allocation18_spill] sm:$0xff] %v6509_v22  ;;  %v1500_v55 = vpack.c.bf16 %v6506_v54, %v6509_v22 }
 0x2a8   : > { %v1985_v43 = vmax.f32 %v1700_v40, 0.0  ;;  %1951 = vmatprep.mubr.bf16.mxu0 %v7888_v49  ;;  %v2100_v29 = vpack.c.bf16 %v1984_v25, %v1982_v36  ;;  %v1704_v59 = vadd.f32 %v1703_v7, %v6398_v20 }
 0x2a9   : > { %v1705_v24 = vpop.f32.mrf.mxu0 }
 0x2aa   : > { %v2101_v27 = vpack.c.bf16 %v1985_v43, %v1983_v44  ;;  %v1706_v58 = vadd.f32 %v1705_v24, %v6390_v41  ;;  %v1986_v45 = vmax.f32 %v1704_v59, 0.0 }
 0x2ab   : > { %v1707_v38 = vpop.f32.mrf.mxu0 }
 0x2ac   : > { %v1708_v23 = vadd.f32 %v1707_v38, %v6398_v20  ;;  %2361 = vmatprep.mubr.bf16.mxu1 %v2101_v27  ;;  %v1987_v25 = vmax.f32 %v1706_v58, 0.0 }
 0x2ad   : > { %v1709_v17 = vpop.f32.mrf.mxu0  ;;  %2362 = vmatmul.mubr.bf16.gmra.mxu1 %v2100_v29 }
 0x2ae   : > { %v1710_v40 = vadd.f32 %v1709_v17, %v6390_v41  ;;  %v1988_v44 = vmax.f32 %v1708_v23, 0.0 }
 0x2af   : > { %v1713_v12 = vpop.f32.mrf.mxu0  ;;  %1952 = vmatmul.mubr.bf16.gmra.mxu0 %v1500_v55 }
 0x2b0   : > { %v1989_v43 = vmax.f32 %v1710_v40, 0.0  ;;  %v2102_v36 = vpack.c.bf16 %v1988_v44, %v1986_v45  ;;  %v1714_v7 = vadd.f32 %v1713_v12, %v6398_v20  ;;  %v5355_v44 = vld [vmem:[%s7772_s3 + $0x40] sm:$0xff]  }
 0x2b1   : > { %v1715_v4 = vpop.f32.mrf.mxu0  ;;  %5134 = vmatprep.subr.bf16.mxu0 %v5355_v44 }
 0x2b2   : > { %v2103_v10 = vpack.c.bf16 %v1989_v43, %v1987_v25  ;;  %v1716_v27 = vadd.f32 %v1715_v4, %v6390_v41  ;;  %v1990_v59 = vmax.f32 %v1714_v7, 0.0  ;;  %5135 = vmatpush3.bf16.msra.mxu0 %v5355_v44 }
 0x2b3   : > { %v1717_v24 = vpop.f32.mrf.mxu0  ;;  %3924 = vmatprep.subr.bf16.mxu0 %v7888_v49 }
 0x2b4   : > { %v1718_v5 = vadd.f32 %v1717_v24, %v6398_v20  ;;  %2369 = vmatprep.mubr.bf16.mxu1 %v2103_v10  ;;  %v1991_v58 = vmax.f32 %v1716_v27, 0.0 }
 0x2b5   : > { %v1719_v29 = vpop.f32.mrf.mxu0  ;;  %2370 = vmatmul.mubr.bf16.gmra.mxu1 %v2102_v36 }
 0x2b6   : > { %v1720_v38 = vadd.f32 %v1719_v29, %v6390_v41  ;;  %v1992_v23 = vmax.f32 %v1718_v5, 0.0 }
 0x2b7   : > { %v1723_v55 = vpop.f32.mrf.mxu0 }
 0x2b8   : > { %v1993_v17 = vmax.f32 %v1720_v38, 0.0  ;;  %v2104_v43 = vpack.c.bf16 %v1992_v23, %v1990_v59  ;;  %v1724_v10 = vadd.f32 %v1723_v55, %v6398_v20 }
 0x2b9   : > { %v1725_v40 = vpop.f32.mrf.mxu0 }
 0x2ba   : > { %v2105_v25 = vpack.c.bf16 %v1993_v17, %v1991_v58  ;;  %v1726_v4 = vadd.f32 %v1725_v40, %v6390_v41  ;;  %v1994_v38 = vmax.f32 %v1724_v10, 0.0  ;;  %v5356_v10 = vld [vmem:[%s7774_s5 + $0xe0] ss:$8 sps:$4 sm:$0xff]  }
 0x2bb   : > { %v1727_v45 = vpop.f32.mrf.mxu0 }
 0x2bc   : > { %v1728_v12 = vadd.f32 %v1727_v45, %v6398_v20  ;;  %2377 = vmatprep.mubr.bf16.mxu1 %v2105_v25  ;;  %v1995_v7 = vmax.f32 %v1726_v4, 0.0 }
 0x2bd   : > { %v1729_v36 = vpop.f32.mrf.mxu0  ;;  %2378 = vmatmul.mubr.bf16.gmra.mxu1 %v2104_v43 }
 0x2be   : > { %v1730_v24 = vadd.f32 %v1729_v36, %v6390_v41  ;;  %v1996_v27 = vmax.f32 %v1728_v12, 0.0 }
 0x2bf   : > { %v1733_v5 = vpop.f32.mrf.mxu0 }
 0x2c0   : > { %v1997_v29 = vmax.f32 %v1730_v24, 0.0  ;;  %v2106_v17 = vpack.c.bf16 %v1996_v27, %v1994_v38  ;;  %v1734_v25 = vadd.f32 %v1733_v5, %v6398_v20  ;;  %v5358_v24 = vld [vmem:[%s7774_s5 + $0xe4] ss:$8 sps:$4 sm:$0xff]  }
 0x2c1   : > { %v1735_v23 = vpop.f32.mrf.mxu0  ;;  %3244 = vmatprep.subr.bf16.mxu1 %v5358_v24 }
 0x2c2   : > { %v2107_v58 = vpack.c.bf16 %v1997_v29, %v1995_v7  ;;  %v1736_v40 = vadd.f32 %v1735_v23, %v6390_v41  ;;  %v1998_v27 = vmax.f32 %v1734_v25, 0.0  ;;  %3245 = vmatpush1.bf16.msra.mxu1 %v5356_v10 }
 0x2c3   : > { %v1737_v59 = vpop.f32.mrf.mxu0 }
 0x2c4   : > { %v1738_v55 = vadd.f32 %v1737_v59, %v6398_v20  ;;  %2385 = vmatprep.mubr.bf16.mxu1 %v2107_v58  ;;  %v1999_v4 = vmax.f32 %v1736_v40, 0.0 }
 0x2c5   : > { %v1739_v44 = vpop.f32.mrf.mxu0  ;;  %2386 = vmatmul.mubr.bf16.gmra.mxu1 %v2106_v17 }
 0x2c6   : > { %v1740_v43 = vadd.f32 %v1739_v44, %v6390_v41  ;;  %v2000_v45 = vmax.f32 %v1738_v55, 0.0 }
 0x2c7   : > { %v1743_v12 = vpop.f32.mrf.mxu0 }
 0x2c8   : > { %v2001_v36 = vmax.f32 %v1740_v43, 0.0  ;;  %v2108_v5 = vpack.c.bf16 %v2000_v45, %v1998_v27  ;;  %v1744_v17 = vadd.f32 %v1743_v12, %v6398_v20 }
 0x2c9   : > { %v1745_v7 = vpop.f32.mrf.mxu0 }
 0x2ca   : > { %v2109_v29 = vpack.c.bf16 %v2001_v36, %v1999_v4  ;;  %v1746_v23 = vadd.f32 %v1745_v7, %v6390_v41  ;;  %v2002_v4 = vmax.f32 %v1744_v17, 0.0 }
 0x2cb   : > { %v1747_v38 = vpop.f32.mrf.mxu0 }
 0x2cc   : > { %v1748_v58 = vadd.f32 %v1747_v38, %v6398_v20  ;;  %2393 = vmatprep.mubr.bf16.mxu1 %v2109_v29  ;;  %v2003_v25 = vmax.f32 %v1746_v23, 0.0 }
 0x2cd   : > { %v1749_v59 = vpop.f32.mrf.mxu0  ;;  %2394 = vmatmul.mubr.bf16.gmra.mxu1 %v2108_v5 }
 0x2ce   : > { %v1750_v40 = vadd.f32 %v1749_v59, %v6390_v41  ;;  %v2004_v55 = vmax.f32 %v1748_v58, 0.0 }
 0x2cf   : > { %v1753_v44 = vpop.f32.mrf.mxu0 }
 0x2d0   : > { %v2005_v43 = vmax.f32 %v1750_v40, 0.0  ;;  %v2110_v24 = vpack.c.bf16 %v2004_v55, %v2002_v4  ;;  %v1754_v12 = vadd.f32 %v1753_v44, %v6398_v20 }
 0x2d1   : > { %v1755_v36 = vpop.f32.mrf.mxu0 }
 0x2d2   : > { %v2111_v45 = vpack.c.bf16 %v2005_v43, %v2003_v25  ;;  %v1756_v27 = vadd.f32 %v1755_v36, %v6390_v41  ;;  %v2006_v17 = vmax.f32 %v1754_v12, 0.0 }
 0x2d3   : > { %v1757_v10 = vpop.f32.mrf.mxu0 }
 0x2d4   : > { %v1758_v7 = vadd.f32 %v1757_v10, %v6398_v20  ;;  %2401 = vmatprep.mubr.bf16.mxu1 %v2111_v45  ;;  %v2007_v23 = vmax.f32 %v1756_v27, 0.0 }
 0x2d5   : > { %v1759_v29 = vpop.f32.mrf.mxu0  ;;  %2402 = vmatmul.mubr.bf16.gmra.mxu1 %v2110_v24 }
 0x2d6   : > { %v1760_v5 = vadd.f32 %v1759_v29, %v6390_v41  ;;  %v2008_v38 = vmax.f32 %v1758_v7, 0.0 }
 0x2d7   : > { %v1763_v58 = vpop.f32.mrf.mxu0 }
 0x2d8   : > { %v2009_v59 = vmax.f32 %v1760_v5, 0.0  ;;  %v2112_v55 = vpack.c.bf16 %v2008_v38, %v2006_v17  ;;  %v1764_v44 = vadd.f32 %v1763_v58, %v6398_v20 }
 0x2d9   : > { %v1765_v40 = vpop.f32.mrf.mxu0 }
 0x2da   : > { %v2113_v25 = vpack.c.bf16 %v2009_v59, %v2007_v23  ;;  %v1766_v4 = vadd.f32 %v1765_v40, %v6390_v41  ;;  %v2010_v12 = vmax.f32 %v1764_v44, 0.0  ;;  %v5359_v44 = vld [vmem:[%s7774_s5 + $0xd0] ss:$8 sps:$4 sm:$0xff]  }
 0x2db   : > { %v1767_v43 = vpop.f32.mrf.mxu0 }
 0x2dc   : > { %v1768_v36 = vadd.f32 %v1767_v43, %v6398_v20  ;;  %2409 = vmatprep.mubr.bf16.mxu1 %v2113_v25  ;;  %v2011_v27 = vmax.f32 %v1766_v4, 0.0 }
 0x2dd   : > { %v1769_v45 = vpop.f32.mrf.mxu0  ;;  %2410 = vmatmul.mubr.bf16.gmra.mxu1 %v2112_v55 }
 0x2de   : > { %v1770_v24 = vadd.f32 %v1769_v45, %v6390_v41  ;;  %v2012_v10 = vmax.f32 %v1768_v36, 0.0 }
 0x2df   : > { %v1773_v7 = vpop.f32.mrf.mxu0 }
 0x2e0   : > { %v2013_v29 = vmax.f32 %v1770_v24, 0.0  ;;  %v2114_v38 = vpack.c.bf16 %v2012_v10, %v2010_v12  ;;  %v1774_v58 = vadd.f32 %v1773_v7, %v6398_v20  ;;  %v5361_v24 = vld [vmem:[%s7774_s5 + $0xd4] ss:$8 sps:$4 sm:$0xff]  }
 0x2e1   : > { %v1775_v5 = vpop.f32.mrf.mxu0  ;;  %3246 = vmatprep.subr.bf16.mxu1 %v5361_v24 }
 0x2e2   : > { %v2115_v23 = vpack.c.bf16 %v2013_v29, %v2011_v27  ;;  %v1776_v17 = vadd.f32 %v1775_v5, %v6390_v41  ;;  %v2014_v10 = vmax.f32 %v1774_v58, 0.0  ;;  %3247 = vmatpush1.bf16.msra.mxu1 %v5359_v44 }
 0x2e3   : > { %v1777_v59 = vpop.f32.mrf.mxu0 }
 0x2e4   : > { %v1778_v40 = vadd.f32 %v1777_v59, %v6398_v20  ;;  %2417 = vmatprep.mubr.bf16.mxu1 %v2115_v23  ;;  %v2015_v4 = vmax.f32 %v1776_v17, 0.0 }
 0x2e5   : > { %v1779_v25 = vpop.f32.mrf.mxu0  ;;  %2418 = vmatmul.mubr.bf16.gmra.mxu1 %v2114_v38 }
 0x2e6   : > { %v1780_v55 = vadd.f32 %v1779_v25, %v6390_v41  ;;  %v2016_v43 = vmax.f32 %v1778_v40, 0.0 }
 0x2e7   : > { %v1783_v36 = vpop.f32.mrf.mxu0 }
 0x2e8   : > { %v2017_v45 = vmax.f32 %v1780_v55, 0.0  ;;  %v2116_v7 = vpack.c.bf16 %v2016_v43, %v2014_v10  ;;  %v1784_v38 = vadd.f32 %v1783_v36, %v6398_v20 }
 0x2e9   : > { %v1785_v27 = vpop.f32.mrf.mxu0 }
 0x2ea   : > { %v2117_v29 = vpack.c.bf16 %v2017_v45, %v2015_v4  ;;  %v1786_v5 = vadd.f32 %v1785_v27, %v6390_v41  ;;  %v2018_v4 = vmax.f32 %v1784_v38, 0.0 }
 0x2eb   : > { %v1787_v12 = vpop.f32.mrf.mxu0 }
 0x2ec   : > { %v1788_v23 = vadd.f32 %v1787_v12, %v6398_v20  ;;  %2425 = vmatprep.mubr.bf16.mxu1 %v2117_v29  ;;  %v2019_v58 = vmax.f32 %v1786_v5, 0.0 }
 0x2ed   : > { %v1789_v59 = vpop.f32.mrf.mxu0  ;;  %2426 = vmatmul.mubr.bf16.gmra.mxu1 %v2116_v7 }
 0x2ee   : > { %v1790_v17 = vadd.f32 %v1789_v59, %v6390_v41  ;;  %v2020_v40 = vmax.f32 %v1788_v23, 0.0 }
 0x2ef   : > { %v1793_v25 = vpop.f32.mrf.mxu0 }
 0x2f0   : > { %v2021_v55 = vmax.f32 %v1790_v17, 0.0  ;;  %v2118_v24 = vpack.c.bf16 %v2020_v40, %v2018_v4  ;;  %v1794_v36 = vadd.f32 %v1793_v25, %v6398_v20 }
 0x2f1   : > { %v1795_v45 = vpop.f32.mrf.mxu0 }
 0x2f2   : > { %v2119_v43 = vpack.c.bf16 %v2021_v55, %v2019_v58  ;;  %v1796_v10 = vadd.f32 %v1795_v45, %v6390_v41  ;;  %v2022_v38 = vmax.f32 %v1794_v36, 0.0 }
 0x2f3   : > { %v1797_v44 = vpop.f32.mrf.mxu0 }
 0x2f4   : > { %v1798_v27 = vadd.f32 %v1797_v44, %v6398_v20  ;;  %2433 = vmatprep.mubr.bf16.mxu1 %v2119_v43  ;;  %v2023_v5 = vmax.f32 %v1796_v10, 0.0 }
 0x2f5   : > { %v1799_v29 = vpop.f32.mrf.mxu0  ;;  %2434 = vmatmul.mubr.bf16.gmra.mxu1 %v2118_v24 }
 0x2f6   : > { %v1800_v7 = vadd.f32 %v1799_v29, %v6390_v41  ;;  %v2024_v12 = vmax.f32 %v1798_v27, 0.0 }
 0x2f7   : > { %v1803_v23 = vpop.f32.mrf.mxu0 }
 0x2f8   : > { %v2025_v59 = vmax.f32 %v1800_v7, 0.0  ;;  %v2120_v40 = vpack.c.bf16 %v2024_v12, %v2022_v38  ;;  %v1804_v25 = vadd.f32 %v1803_v23, %v6398_v20 }
 0x2f9   : > { %v1805_v17 = vpop.f32.mrf.mxu0 }
 0x2fa   : > { %v2121_v58 = vpack.c.bf16 %v2025_v59, %v2023_v5  ;;  %v1806_v4 = vadd.f32 %v1805_v17, %v6390_v41  ;;  %v2026_v36 = vmax.f32 %v1804_v25, 0.0 }
 0x2fb   : > { %v1807_v55 = vpop.f32.mrf.mxu0 }
 0x2fc   : > { %v1808_v45 = vadd.f32 %v1807_v55, %v6398_v20  ;;  %2441 = vmatprep.mubr.bf16.mxu1 %v2121_v58  ;;  %v2027_v10 = vmax.f32 %v1806_v4, 0.0  ;;  %v5362_v55 = vld [vmem:[%s7774_s5 + $0xc0] ss:$8 sps:$4 sm:$0xff]   ;;  %v5364_v4 = vld [vmem:[%s7774_s5 + $0xc4] ss:$8 sps:$4 sm:$0xff]  }
 0x2fd   : > { %v1809_v43 = vpop.f32.mrf.mxu0  ;;  %2442 = vmatmul.mubr.bf16.gmra.mxu1 %v2120_v40  ;;  %3248 = vmatprep.subr.bf16.mxu1 %v5364_v4 }
 0x2fe   : > { %v1810_v24 = vadd.f32 %v1809_v43, %v6390_v41  ;;  %v2028_v44 = vmax.f32 %v1808_v45, 0.0  ;;  %3249 = vmatpush1.bf16.msra.mxu1 %v5362_v55 }
 0x2ff   : > { %v1813_v27 = vpop.f32.mrf.mxu0 }
 0x300   : > { %v2029_v29 = vmax.f32 %v1810_v24, 0.0  ;;  %v2122_v12 = vpack.c.bf16 %v2028_v44, %v2026_v36  ;;  %v1814_v23 = vadd.f32 %v1813_v27, %v6398_v20 }
 0x301   : > { %v1815_v7 = vpop.f32.mrf.mxu0 }
 0x302   : > { %v2123_v5 = vpack.c.bf16 %v2029_v29, %v2027_v10  ;;  %v1816_v38 = vadd.f32 %v1815_v7, %v6390_v41  ;;  %v2030_v44 = vmax.f32 %v1814_v23, 0.0 }
 0x303   : > { %v1817_v59 = vpop.f32.mrf.mxu0 }
 0x304   : > { %v1818_v17 = vadd.f32 %v1817_v59, %v6398_v20  ;;  %2449 = vmatprep.mubr.bf16.mxu1 %v2123_v5  ;;  %v2031_v43 = vmax.f32 %v1816_v38, 0.0 }
 0x305   : > { %v1819_v58 = vpop.f32.mrf.mxu0  ;;  %2450 = vmatmul.mubr.bf16.gmra.mxu1 %v2122_v12 }
 0x306   : > { %v1820_v40 = vadd.f32 %v1819_v58, %v6390_v41  ;;  %v2032_v45 = vmax.f32 %v1818_v17, 0.0 }
 0x307   : > { %v1823_v25 = vpop.f32.mrf.mxu0 }
 0x308   : > { %v2033_v24 = vmax.f32 %v1820_v40, 0.0  ;;  %v2124_v29 = vpack.c.bf16 %v2032_v45, %v2030_v44  ;;  %v1824_v12 = vadd.f32 %v1823_v25, %v6398_v20 }
 0x309   : > { %v1825_v10 = vpop.f32.mrf.mxu0 }
 0x30a   : > { %v2125_v27 = vpack.c.bf16 %v2033_v24, %v2031_v43  ;;  %v1826_v7 = vadd.f32 %v1825_v10, %v6390_v41  ;;  %v2034_v4 = vmax.f32 %v1824_v12, 0.0 }
 0x30b   : > { %v1827_v36 = vpop.f32.mrf.mxu0 }
 0x30c   : > { %v1828_v5 = vadd.f32 %v1827_v36, %v6398_v20  ;;  %2457 = vmatprep.mubr.bf16.mxu1 %v2125_v27  ;;  %v2035_v40 = vmax.f32 %v1826_v7, 0.0 }
 0x30d   : > { %v1829_v59 = vpop.f32.mrf.mxu0  ;;  %2458 = vmatmul.mubr.bf16.gmra.mxu1 %v2124_v29 }
 0x30e   : > { %v1830_v17 = vadd.f32 %v1829_v59, %v6390_v41  ;;  %v2036_v38 = vmax.f32 %v1828_v5, 0.0 }
 0x30f   : > { %v1833_v58 = vpop.f32.mrf.mxu0 }
 0x310   : > { %v2037_v23 = vmax.f32 %v1830_v17, 0.0  ;;  %v2126_v45 = vpack.c.bf16 %v2036_v38, %v2034_v4  ;;  %v1834_v25 = vadd.f32 %v1833_v58, %v6398_v20 }
 0x311   : > { %v1835_v55 = vpop.f32.mrf.mxu0 }
 0x312   : > { %v2127_v43 = vpack.c.bf16 %v2037_v23, %v2035_v40  ;;  %v1836_v44 = vadd.f32 %v1835_v55, %v6390_v41  ;;  %v2038_v12 = vmax.f32 %v1834_v25, 0.0 }
 0x313   : > { %v1837_v24 = vpop.f32.mrf.mxu0 }
 0x314   : > { %v1838_v10 = vadd.f32 %v1837_v24, %v6398_v20  ;;  %2465 = vmatprep.mubr.bf16.mxu1 %v2127_v43  ;;  %v2039_v7 = vmax.f32 %v1836_v44, 0.0 }
 0x315   : > { %v1839_v27 = vpop.f32.mrf.mxu0  ;;  %2466 = vmatmul.mubr.bf16.gmra.mxu1 %v2126_v45 }
 0x316   : > { %v1840_v29 = vadd.f32 %v1839_v27, %v6390_v41  ;;  %v2040_v36 = vmax.f32 %v1838_v10, 0.0 }
 0x317   : > { %v1843_v5 = vpop.f32.mrf.mxu0 }
 0x318   : > { %v2041_v59 = vmax.f32 %v1840_v29, 0.0  ;;  %v2128_v38 = vpack.c.bf16 %v2040_v36, %v2038_v12  ;;  %v1844_v58 = vadd.f32 %v1843_v5, %v6398_v20 }
 0x319   : > { %v1845_v17 = vpop.f32.mrf.mxu0 }
 0x31a   : > { %v2129_v40 = vpack.c.bf16 %v2041_v59, %v2039_v7  ;;  %v1846_v4 = vadd.f32 %v1845_v17, %v6390_v41  ;;  %v2042_v25 = vmax.f32 %v1844_v58, 0.0 }
 0x31b   : > { %v1847_v23 = vpop.f32.mrf.mxu0 }
 0x31c   : > { %v1848_v55 = vadd.f32 %v1847_v23, %v6398_v20  ;;  %2473 = vmatprep.mubr.bf16.mxu1 %v2129_v40  ;;  %v2043_v44 = vmax.f32 %v1846_v4, 0.0  ;;  %v5365_v23 = vld [vmem:[%s7774_s5 + $0xb0] ss:$8 sps:$4 sm:$0xff]   ;;  %v5367_v4 = vld [vmem:[%s7774_s5 + $0xb4] ss:$8 sps:$4 sm:$0xff]  }
 0x31d   : > { %v1849_v43 = vpop.f32.mrf.mxu0  ;;  %2474 = vmatmul.mubr.bf16.gmra.mxu1 %v2128_v38  ;;  %3250 = vmatprep.subr.bf16.mxu1 %v5367_v4 }
 0x31e   : > { %v1850_v45 = vadd.f32 %v1849_v43, %v6390_v41  ;;  %v2044_v24 = vmax.f32 %v1848_v55, 0.0  ;;  %3251 = vmatpush1.bf16.msra.mxu1 %v5365_v23 }
 0x31f   : > { %v1853_v10 = vpop.f32.mrf.mxu0 }
 0x320   : > { %v2045_v27 = vmax.f32 %v1850_v45, 0.0  ;;  %v2130_v36 = vpack.c.bf16 %v2044_v24, %v2042_v25  ;;  %v1854_v5 = vadd.f32 %v1853_v10, %v6398_v20 }
 0x321   : > { %v1855_v29 = vpop.f32.mrf.mxu0 }
 0x322   : > { %v2131_v7 = vpack.c.bf16 %v2045_v27, %v2043_v44  ;;  %v1856_v12 = vadd.f32 %v1855_v29, %v6390_v41  ;;  %v2046_v24 = vmax.f32 %v1854_v5, 0.0 }
 0x323   : > { %v1857_v59 = vpop.f32.mrf.mxu0 }
 0x324   : > { %v1858_v17 = vadd.f32 %v1857_v59, %v6398_v20  ;;  %2481 = vmatprep.mubr.bf16.mxu1 %v2131_v7  ;;  %v2047_v43 = vmax.f32 %v1856_v12, 0.0 }
 0x325   : > { %v1859_v40 = vpop.f32.mrf.mxu0  ;;  %2482 = vmatmul.mubr.bf16.gmra.mxu1 %v2130_v36 }
 0x326   : > { %v1860_v38 = vadd.f32 %v1859_v40, %v6390_v41  ;;  %v2048_v55 = vmax.f32 %v1858_v17, 0.0 }
 0x327   : > { %v1863_v58 = vpop.f32.mrf.mxu0 }
 0x328   : > { %v2049_v45 = vmax.f32 %v1860_v38, 0.0  ;;  %v2132_v27 = vpack.c.bf16 %v2048_v55, %v2046_v24  ;;  %v1864_v36 = vadd.f32 %v1863_v58, %v6398_v20 }
 0x329   : > { %v1865_v44 = vpop.f32.mrf.mxu0 }
 0x32a   : > { %v2133_v10 = vpack.c.bf16 %v2049_v45, %v2047_v43  ;;  %v1866_v29 = vadd.f32 %v1865_v44, %v6390_v41  ;;  %v2050_v4 = vmax.f32 %v1864_v36, 0.0 }
 0x32b   : > { %v1867_v25 = vpop.f32.mrf.mxu0 }
 0x32c   : > { %v1868_v7 = vadd.f32 %v1867_v25, %v6398_v20  ;;  %2489 = vmatprep.mubr.bf16.mxu1 %v2133_v10  ;;  %v2051_v38 = vmax.f32 %v1866_v29, 0.0 }
 0x32d   : > { %v1869_v59 = vpop.f32.mrf.mxu0  ;;  %2490 = vmatmul.mubr.bf16.gmra.mxu1 %v2132_v27 }
 0x32e   : > { %v1870_v17 = vadd.f32 %v1869_v59, %v6390_v41  ;;  %v2052_v12 = vmax.f32 %v1868_v7, 0.0 }
 0x32f   : > { %v1873_v40 = vpop.f32.mrf.mxu0 }
 0x330   : > { %v2053_v5 = vmax.f32 %v1870_v17, 0.0  ;;  %v2134_v55 = vpack.c.bf16 %v2052_v12, %v2050_v4  ;;  %v1874_v58 = vadd.f32 %v1873_v40, %v6398_v20 }
 0x331   : > { %v1875_v23 = vpop.f32.mrf.mxu0 }
 0x332   : > { %v2135_v43 = vpack.c.bf16 %v2053_v5, %v2051_v38  ;;  %v1876_v24 = vadd.f32 %v1875_v23, %v6390_v41  ;;  %v2054_v36 = vmax.f32 %v1874_v58, 0.0 }
 0x333   : > { %v1877_v45 = vpop.f32.mrf.mxu0 }
 0x334   : > { %v1878_v44 = vadd.f32 %v1877_v45, %v6398_v20  ;;  %2497 = vmatprep.mubr.bf16.mxu1 %v2135_v43  ;;  %v2055_v29 = vmax.f32 %v1876_v24, 0.0 }
 0x335   : > { %v1879_v10 = vpop.f32.mrf.mxu0  ;;  %2498 = vmatmul.mubr.bf16.gmra.mxu1 %v2134_v55 }
 0x336   : > { %v1880_v27 = vadd.f32 %v1879_v10, %v6390_v41  ;;  %v2056_v25 = vmax.f32 %v1878_v44, 0.0 }
 0x337   : > { %v1883_v7 = vpop.f32.mrf.mxu0 }
 0x338   : > { %v2057_v59 = vmax.f32 %v1880_v27, 0.0  ;;  %v2136_v12 = vpack.c.bf16 %v2056_v25, %v2054_v36  ;;  %v1884_v40 = vadd.f32 %v1883_v7, %v6398_v20 }
 0x339   : > { %v1885_v17 = vpop.f32.mrf.mxu0 }
 0x33a   : > { %v2137_v38 = vpack.c.bf16 %v2057_v59, %v2055_v29  ;;  %v1886_v4 = vadd.f32 %v1885_v17, %v6390_v41  ;;  %v2058_v58 = vmax.f32 %v1884_v40, 0.0  ;;  %v5370_v40 = vld [vmem:[%s7774_s5 + $0xa4] ss:$8 sps:$4 sm:$0xff]  }
 0x33b   : > { %v1887_v5 = vpop.f32.mrf.mxu0  ;;  %3252 = vmatprep.subr.bf16.mxu1 %v5370_v40 }
 0x33c   : > { %v1888_v23 = vadd.f32 %v1887_v5, %v6398_v20  ;;  %2505 = vmatprep.mubr.bf16.mxu1 %v2137_v38  ;;  %v2059_v24 = vmax.f32 %v1886_v4, 0.0 }
 0x33d   : > { %v1889_v43 = vpop.f32.mrf.mxu0  ;;  %2506 = vmatmul.mubr.bf16.gmra.mxu1 %v2136_v12  ;;  %v6623_v12 = vld [vmem:[%s7777_s8] ss:$0 sm:$0xff] }
 0x33e   : > { %v1890_v55 = vadd.f32 %v1889_v43, %v6390_v41  ;;  %v2060_v45 = vmax.f32 %v1888_v23, 0.0  ;;  %v5368_v23 = vld [vmem:[%s7774_s5 + $0xa0] ss:$8 sps:$4 sm:$0xff]  }
 0x33f   : > { %v1893_v44 = vpop.f32.mrf.mxu0  ;;  %3253 = vmatpush1.bf16.msra.mxu1 %v5368_v23 }
 0x340   : > { %v2061_v10 = vmax.f32 %v1890_v55, 0.0  ;;  %v2138_v25 = vpack.c.bf16 %v2060_v45, %v2058_v58  ;;  %v1894_v7 = vadd.f32 %v1893_v44, %v6398_v20 }
 0x341   : > { %v1895_v27 = vpop.f32.mrf.mxu0 }
 0x342   : > { %v2139_v29 = vpack.c.bf16 %v2061_v10, %v2059_v24  ;;  %v1896_v36 = vadd.f32 %v1895_v27, %v6390_v41  ;;  %v2062_v58 = vmax.f32 %v1894_v7, 0.0 }
 0x343   : > { %v1897_v59 = vpop.f32.mrf.mxu0 }
 0x344   : > { %v1898_v17 = vadd.f32 %v1897_v59, %v6398_v20  ;;  %2513 = vmatprep.mubr.bf16.mxu1 %v2139_v29  ;;  %v2063_v44 = vmax.f32 %v1896_v36, 0.0 }
 0x345   : > { %v1899_v38 = vpop.f32.mrf.mxu0  ;;  %v2323_v5 = vpop.f32.mrf.mxu1  ;;  %2514 = vmatmul.mubr.bf16.gmra.mxu1 %v2138_v25 }
 0x346   : > { %v1900_v4 = vadd.f32 %v1899_v38, %v6390_v41  ;;  %v2064_v43 = vmax.f32 %v1898_v17, 0.0  ;;  %v2324_v10 = vadd.f32 %v6623_v12, %v2323_v5 }
 0x347   : > { %v1903_v55 = vpop.f32.mrf.mxu0  ;;  %v2325_v45 = vpop.f32.mrf.mxu1 }
 0x348   : > { %v2065_v24 = vmax.f32 %v1900_v4, 0.0  ;;  %v2140_v38 = vpack.c.bf16 %v2064_v43, %v2062_v58  ;;  %v6635_v39 = vadd.f32 %v2324_v10, %v6057_v28  ;;  %v1904_v7 = vadd.f32 %v1903_v55, %v6398_v20 }
 0x349   : > { %v1905_v27 = vpop.f32.mrf.mxu0  ;;  %v2326_v29 = vpop.f32.mrf.mxu1 }
 0x34a   : > { %v2327_v25 = vadd.f32 %v6623_v12, %v2326_v29  ;;  %v2141_v59 = vpack.c.bf16 %v2065_v24, %v2063_v44  ;;  %v1906_v17 = vadd.f32 %v1905_v27, %v6390_v41 }
 0x34b   : > { %v1907_v54 = vpop.f32.mrf.mxu0  ;;  %v2328_v22 = vpop.f32.mrf.mxu1 }
 0x34c   : > { %v6639_v36 = vadd.f32 %v2327_v25, %v6060_v61  ;;  %v1908_v5 = vadd.f32 %v1907_v54, %v6398_v20  ;;  %2521 = vmatprep.mubr.bf16.mxu1 %v2141_v59  ;;  %v2067_v44 = vmax.f32 %v1906_v17, 0.0  ;;  %v2066_v54 = vmax.f32 %v1904_v7, 0.0 }
 0x34d   : > { %v1909_v4 = vpop.f32.mrf.mxu0  ;;  %v2331_v23 = vpop.f32.mrf.mxu1  ;;  %2522 = vmatmul.mubr.bf16.gmra.mxu1 %v2140_v38 }
 0x34e   : > { %v1910_v40 = vadd.f32 %v1909_v4, %v6390_v41  ;;  %v2642_v22 = vpack.c.bf16 %v6639_v36, %v6635_v39  ;;  %v2068_v28 = vmax.f32 %v1908_v5, 0.0  ;;  %v2332_v61 = vadd.f32 %v6623_v12, %v2331_v23 }
 0x34f   : > { %v1913_v43 = vpop.f32.mrf.mxu0  ;;  %v2333_v45 = vpop.f32.mrf.mxu1 }
 0x350   : > { %v2069_v24 = vmax.f32 %v1910_v40, 0.0  ;;  %5136 = vmatprep.mubr.bf16.mxu0 %v2642_v22  ;;  %v2142_v29 = vpack.c.bf16 %v2068_v28, %v2066_v54  ;;  %v6649_v38 = vadd.f32 %v2332_v61, %v6076_v35  ;;  %v1914_v7 = vadd.f32 %v1913_v43, %v6398_v20 }
 0x351   : > { %v1915_v10 = vpop.f32.mrf.mxu0  ;;  %v2334_v58 = vpop.f32.mrf.mxu1 }
 0x352   : > { %v2335_v55 = vadd.f32 %v6623_v12, %v2334_v58  ;;  %v2143_v27 = vpack.c.bf16 %v2069_v24, %v2067_v44  ;;  %v1916_v5 = vadd.f32 %v1915_v10, %v6390_v41  ;;  %v2070_v54 = vmax.f32 %v1914_v7, 0.0 }
 0x353   : > { %v1917_v25 = vpop.f32.mrf.mxu0  ;;  %v2336_v59 = vpop.f32.mrf.mxu1 }
 0x354   : > { %v6653_v17 = vadd.f32 %v2335_v55, %v6072_v51  ;;  %v1918_v4 = vadd.f32 %v1917_v25, %v6398_v20  ;;  %2529 = vmatprep.mubr.bf16.mxu1 %v2143_v27  ;;  %v2071_v24 = vmax.f32 %v1916_v5, 0.0 }
 0x355   : > { %v1919_v23 = vpop.f32.mrf.mxu0  ;;  %v2339_v40 = vpop.f32.mrf.mxu1  ;;  %2530 = vmatmul.mubr.bf16.gmra.mxu1 %v2142_v29 }
 0x356   : > { %v2643_v22 = vpack.c.bf16 %v6653_v17, %v6649_v38  ;;  %v1920_v28 = vadd.f32 %v1919_v23, %v6390_v41  ;;  %v2072_v35 = vmax.f32 %v1918_v4, 0.0  ;;  %v2340_v51 = vadd.f32 %v6623_v12, %v2339_v40 }
 0x357   : > { %v1923_v45 = vpop.f32.mrf.mxu0  ;;  %v2341_v44 = vpop.f32.mrf.mxu1 }
 0x358   : > { %v2073_v61 = vmax.f32 %v1920_v28, 0.0  ;;  %5137 = vmatmul.mubr.bf16.vlgmr.msra.gmra.mxu0 %v2643_v22  ;;  %v2144_v27 = vpack.c.bf16 %v2072_v35, %v2070_v54  ;;  %v6663_v59 = vadd.f32 %v2340_v51, %v6091_v13  ;;  %v1924_v7 = vadd.f32 %v1923_v45, %v6398_v20 }
 0x359   : > { %v1925_v10 = vpop.f32.mrf.mxu0  ;;  %v2342_v58 = vpop.f32.mrf.mxu1 }
 0x35a   : > { %v2343_v43 = vadd.f32 %v6623_v12, %v2342_v58  ;;  %v2145_v55 = vpack.c.bf16 %v2073_v61, %v2071_v24  ;;  %v1926_v4 = vadd.f32 %v1925_v10, %v6390_v41  ;;  %v2074_v54 = vmax.f32 %v1924_v7, 0.0 }
 0x35b   : > { %v1927_v29 = vpop.f32.mrf.mxu0  ;;  %v2344_v25 = vpop.f32.mrf.mxu1 }
 0x35c   : > { %v6667_v5 = vadd.f32 %v2343_v43, %v6087_v18  ;;  %v1928_v23 = vadd.f32 %v1927_v29, %v6398_v20  ;;  %2537 = vmatprep.mubr.bf16.mxu1 %v2145_v55  ;;  %v2075_v61 = vmax.f32 %v1926_v4, 0.0 }
 0x35d   : > { %v1929_v40 = vpop.f32.mrf.mxu0  ;;  %v2347_v22 = vpop.f32.mrf.mxu1  ;;  %2538 = vmatmul.mubr.bf16.gmra.mxu1 %v2144_v27 }
 0x35e   : > { %v1930_v28 = vadd.f32 %v1929_v40, %v6390_v41  ;;  %v2644_v35 = vpack.c.bf16 %v6667_v5, %v6663_v59  ;;  %v2076_v13 = vmax.f32 %v1928_v23, 0.0  ;;  %v2348_v18 = vadd.f32 %v6623_v12, %v2347_v22 }
 0x35f   : > { %v1933_v44 = vpop.f32.mrf.mxu0  ;;  %v2349_v24 = vpop.f32.mrf.mxu1 }
 0x360   : > { %v2077_v51 = vmax.f32 %v1930_v28, 0.0  ;;  %5140 = vmatprep.mubr.bf16.mxu0 %v2644_v35  ;;  %v2146_v55 = vpack.c.bf16 %v2076_v13, %v2074_v54  ;;  %v6677_v25 = vadd.f32 %v2348_v18, %v6106_v8  ;;  %v1934_v7 = vadd.f32 %v1933_v44, %v6398_v20  ;;  %v5371_v8 = vld [vmem:[%s7774_s5 + $0x90] ss:$8 sps:$4 sm:$0xff]  }
 0x361   : > { %v1935_v10 = vpop.f32.mrf.mxu0  ;;  %v2350_v58 = vpop.f32.mrf.mxu1 }
 0x362   : > { %v2351_v45 = vadd.f32 %v6623_v12, %v2350_v58  ;;  %v2147_v43 = vpack.c.bf16 %v2077_v51, %v2075_v61  ;;  %v1936_v23 = vadd.f32 %v1935_v10, %v6390_v41  ;;  %v2078_v10 = vmax.f32 %v1934_v7, 0.0 }
 0x363   : > { %v1937_v27 = vpop.f32.mrf.mxu0  ;;  %v2352_v29 = vpop.f32.mrf.mxu1 }
 0x364   : > { %v6681_v4 = vadd.f32 %v2351_v45, %v6102_v46  ;;  %v1938_v40 = vadd.f32 %v1937_v27, %v6398_v20  ;;  %2545 = vmatprep.mubr.bf16.mxu1 %v2147_v43  ;;  %v5373_v46 = vld [vmem:[%s7774_s5 + $0x94] ss:$8 sps:$4 sm:$0xff]   ;;  %v2079_v44 = vmax.f32 %v1936_v23, 0.0 }
 0x365   : > { %v1939_v22 = vpop.f32.mrf.mxu0  ;;  %v2355_v28 = vpop.f32.mrf.mxu1  ;;  %2546 = vmatmul.mubr.bf16.gmra.mxu1 %v2146_v55  ;;  %3254 = vmatprep.subr.bf16.mxu1 %v5373_v46 }
 0x366   : > { %v2645_v35 = vpack.c.bf16 %v6681_v4, %v6677_v25  ;;  %v1940_v13 = vadd.f32 %v1939_v22, %v6390_v41  ;;  %v2080_v24 = vmax.f32 %v1938_v40, 0.0  ;;  %v2356_v54 = vadd.f32 %v6623_v12, %v2355_v28  ;;  %3255 = vmatpush1.bf16.msra.mxu1 %v5371_v8 }
 0x367   : > { %v1943_v61 = vpop.f32.mrf.mxu0  ;;  %v2357_v51 = vpop.f32.mrf.mxu1 }
 0x368   : > { %v2081_v18 = vmax.f32 %v1940_v13, 0.0  ;;  %5141 = vmatmul.mubr.bf16.gmra.mxu0 %v2645_v35  ;;  %v2148_v27 = vpack.c.bf16 %v2080_v24, %v2078_v10  ;;  %v6697_v40 = vadd.f32 %v2356_v54, %v6121_v6  ;;  %v1944_v7 = vadd.f32 %v1943_v61, %v6398_v20 }
 0x369   : > { %v1945_v58 = vpop.f32.mrf.mxu0  ;;  %v2358_v45 = vpop.f32.mrf.mxu1 }
 0x36a   : > { %v2359_v43 = vadd.f32 %v6623_v12, %v2358_v45  ;;  %v2149_v55 = vpack.c.bf16 %v2081_v18, %v2079_v44  ;;  %v1946_v23 = vadd.f32 %v1945_v58, %v6390_v41  ;;  %v2082_v10 = vmax.f32 %v1944_v7, 0.0 }
 0x36b   : > { %v1947_v29 = vpop.f32.mrf.mxu0  ;;  %v2360_v22 = vpop.f32.mrf.mxu1 }
 0x36c   : > { %v6701_v13 = vadd.f32 %v2359_v43, %v6117_v37  ;;  %v1948_v28 = vadd.f32 %v1947_v29, %v6398_v20  ;;  %2553 = vmatprep.mubr.bf16.mxu1 %v2149_v55  ;;  %v2083_v18 = vmax.f32 %v1946_v23, 0.0 }
 0x36d   : > { %v1949_v35 = vpop.f32.mrf.mxu0  ;;  %v2363_v8 = vpop.f32.mrf.mxu1  ;;  %2554 = vmatmul.mubr.bf16.gmra.mxu1 %v2148_v27 }
 0x36e   : > { %v1950_v46 = vadd.f32 %v1949_v35, %v6390_v41  ;;  %v2646_v24 = vpack.c.bf16 %v6701_v13, %v6697_v40  ;;  %v2084_v6 = vmax.f32 %v1948_v28, 0.0  ;;  %v2364_v37 = vadd.f32 %v6623_v12, %v2363_v8 }
 0x36f   : > { %v1953_v51 = vpop.f32.mrf.mxu0  ;;  %v2365_v44 = vpop.f32.mrf.mxu1 }
 0x370   : > { %v2085_v54 = vmax.f32 %v1950_v46, 0.0  ;;  %5144 = vmatprep.mubr.bf16.mxu0 %v2646_v24  ;;  %v2150_v55 = vpack.c.bf16 %v2084_v6, %v2082_v10  ;;  %v6711_v22 = vadd.f32 %v2364_v37, %v6139_v56  ;;  %v1954_v7 = vadd.f32 %v1953_v51, %v6398_v20 }
 0x371   : > { %v1955_v58 = vpop.f32.mrf.mxu0  ;;  %v2366_v45 = vpop.f32.mrf.mxu1 }
 0x372   : > { %v2367_v61 = vadd.f32 %v6623_v12, %v2366_v45  ;;  %v2151_v43 = vpack.c.bf16 %v2085_v54, %v2083_v18  ;;  %v1956_v28 = vadd.f32 %v1955_v58, %v6390_v41  ;;  %v2086_v37 = vmax.f32 %v1954_v7, 0.0 }
 0x373   : > { %v1957_v27 = vpop.f32.mrf.mxu0  ;;  %v2368_v29 = vpop.f32.mrf.mxu1 }
 0x374   : > { %v6715_v23 = vadd.f32 %v2367_v61, %v6135_v15  ;;  %v1958_v35 = vadd.f32 %v1957_v27, %v6398_v20  ;;  %2561 = vmatprep.mubr.bf16.mxu1 %v2151_v43  ;;  %v2087_v18 = vmax.f32 %v1956_v28, 0.0 }
 0x375   : > { %v1959_v8 = vpop.f32.mrf.mxu0  ;;  %v2371_v46 = vpop.f32.mrf.mxu1  ;;  %2562 = vmatmul.mubr.bf16.gmra.mxu1 %v2150_v55 }
 0x376   : > { %v2647_v24 = vpack.c.bf16 %v6715_v23, %v6711_v22  ;;  %v1960_v6 = vadd.f32 %v1959_v8, %v6390_v41  ;;  %v2088_v56 = vmax.f32 %v1958_v35, 0.0  ;;  %v2372_v15 = vadd.f32 %v6623_v12, %v2371_v46 }
 0x377   : > { %v2373_v44 = vpop.f32.mrf.mxu1 }
 0x378   : > { %v2089_v54 = vmax.f32 %v1960_v6, 0.0  ;;  %5145 = vmatmul.mubr.bf16.gmra.mxu0 %v2647_v24  ;;  %v2152_v51 = vpack.c.bf16 %v2088_v56, %v2086_v37  ;;  %v6725_v61 = vadd.f32 %v2372_v15, %v6154_v63  ;;  %v5374_v24 = vld [vmem:[%s7774_s5 + $0x80] ss:$8 sps:$4 sm:$0xff]   ;;  %v5376_v6 = vld [vmem:[%s7774_s5 + $0x84] ss:$8 sps:$4 sm:$0xff]  }
 0x379   : > { %v2374_v10 = vpop.f32.mrf.mxu1  ;;  %3256 = vmatprep.subr.bf16.mxu1 %v5376_v6 }
 0x37a   : > { %v2375_v58 = vadd.f32 %v6623_v12, %v2374_v10  ;;  %v2153_v20 = vpack.c.bf16 %v2089_v54, %v2087_v18  ;;  %3257 = vmatpush1.bf16.msra.mxu1 %v5374_v24 }
 0x37b   : > { %v2376_v45 = vpop.f32.mrf.mxu1 }
 0x37c   : > { %v6728_v43 = vadd.f32 %v2375_v58, %v6150_v31  ;;  %2569 = vmatprep.mubr.bf16.mxu1 %v2153_v20 }
 0x37d   : > { %v2379_v41 = vpop.f32.mrf.mxu1  ;;  %2570 = vmatmul.mubr.bf16.gmra.mxu1 %v2152_v51 }
 0x37e   : > { %v2648_v55 = vpack.c.bf16 %v6728_v43, %v6725_v61  ;;  %3274 = vmatprep.mubr.bf16.mxu1 %v7888_v49  ;;  %v2380_v29 = vadd.f32 %v6623_v12, %v2379_v41 }
 0x37f   : > { %v2381_v27 = vpop.f32.mrf.mxu1 }
 0x380   : > { %5148 = vmatprep.mubr.bf16.mxu0 %v2648_v55  ;;  %v6736_v7 = vadd.f32 %v2380_v29, %v6169_v2 }
 0x381   : > { %v2382_v28 = vpop.f32.mrf.mxu1 }
 0x382   : > { %v2383_v35 = vadd.f32 %v6623_v12, %v2382_v28 }
 0x383   : > { %v2384_v63 = vpop.f32.mrf.mxu1 }
 0x384   : > { %v6739_v31 = vadd.f32 %v2383_v35, %v6165_v3 }
 0x385   : > { %v2387_v8 = vpop.f32.mrf.mxu1 }
 0x386   : > { %v2649_v46 = vpack.c.bf16 %v6739_v31, %v6736_v7  ;;  %v2388_v44 = vadd.f32 %v6623_v12, %v2387_v8 }
 0x387   : > { %v2389_v56 = vpop.f32.mrf.mxu1 }
 0x388   : > { %5149 = vmatmul.mubr.bf16.gmra.mxu0 %v2649_v46  ;;  %v6752_v54 = vadd.f32 %v2388_v44, %v6184_v60 }
 0x389   : > { %v2390_v2 = vpop.f32.mrf.mxu1 }
 0x38a   : > { %v2391_v3 = vadd.f32 %v6623_v12, %v2390_v2 }
 0x38b   : > { %v2392_v18 = vpop.f32.mrf.mxu1 }
 0x38c   : > { %v6755_v15 = vadd.f32 %v2391_v3, %v6180_v19 }
 0x38d   : > { %v2395_v37 = vpop.f32.mrf.mxu1 }
 0x38e   : > { %v2650_v10 = vpack.c.bf16 %v6755_v15, %v6752_v54  ;;  %v2396_v20 = vadd.f32 %v6623_v12, %v2395_v37 }
 0x38f   : > { %v2397_v58 = vpop.f32.mrf.mxu1 }
 0x390   : > { %5152 = vmatprep.mubr.bf16.mxu0 %v2650_v10  ;;  %v6762_v55 = vadd.f32 %v2396_v20, %v6198_v30 }
 0x391   : > { %v2398_v51 = vpop.f32.mrf.mxu1 }
 0x392   : > { %v2399_v45 = vadd.f32 %v6623_v12, %v2398_v51 }
 0x393   : > { %v2400_v41 = vpop.f32.mrf.mxu1 }
 0x394   : > { %v6765_v60 = vadd.f32 %v2399_v45, %v6192_v52 }
 0x395   : > { %v2403_v19 = vpop.f32.mrf.mxu1 }
 0x396   : > { %v2651_v27 = vpack.c.bf16 %v6765_v60, %v6762_v55  ;;  %v2404_v28 = vadd.f32 %v6623_v12, %v2403_v19 }
 0x397   : > { %v2405_v29 = vpop.f32.mrf.mxu1 }
 0x398   : > { %5153 = vmatmul.mubr.bf16.gmra.mxu0 %v2651_v27  ;;  %v6772_v46 = vadd.f32 %v2404_v28, %v6212_v11 }
 0x399   : > { %v2406_v35 = vpop.f32.mrf.mxu1 }
 0x39a   : > { %v2407_v63 = vadd.f32 %v6623_v12, %v2406_v35 }
 0x39b   : > { %v2408_v8 = vpop.f32.mrf.mxu1 }
 0x39c   : > { %v6775_v30 = vadd.f32 %v2407_v63, %v6209_v42 }
 0x39d   : > { %v2411_v52 = vpop.f32.mrf.mxu1 }
 0x39e   : > { %v2652_v24 = vpack.c.bf16 %v6775_v30, %v6772_v46  ;;  %v2412_v56 = vadd.f32 %v6623_v12, %v2411_v52 }
 0x39f   : > { %v2413_v6 = vpop.f32.mrf.mxu1 }
 0x3a0   : > { %5156 = vmatprep.mubr.bf16.mxu0 %v2652_v24  ;;  %v6782_v18 = vadd.f32 %v2412_v56, %v6223_v9 }
 0x3a1   : > { %v2414_v44 = vpop.f32.mrf.mxu1 }
 0x3a2   : > { %v2415_v2 = vadd.f32 %v6623_v12, %v2414_v44 }
 0x3a3   : > { %v2416_v3 = vpop.f32.mrf.mxu1 }
 0x3a4   : > { %v6785_v11 = vadd.f32 %v2415_v2, %v6220_v0 }
 0x3a5   : > { %v2419_v42 = vpop.f32.mrf.mxu1 }
 0x3a6   : > { %v2653_v37 = vpack.c.bf16 %v6785_v11, %v6782_v18  ;;  %v2420_v58 = vadd.f32 %v6623_v12, %v2419_v42 }
 0x3a7   : > { %v2421_v10 = vpop.f32.mrf.mxu1 }
 0x3a8   : > { %5157 = vmatmul.mubr.bf16.gmra.mxu0 %v2653_v37  ;;  %v6792_v41 = vadd.f32 %v2420_v58, %v6234_v32 }
 0x3a9   : > { %v2422_v20 = vpop.f32.mrf.mxu1 }
 0x3aa   : > { %v2423_v51 = vadd.f32 %v6623_v12, %v2422_v20 }
 0x3ab   : > { %v2424_v45 = vpop.f32.mrf.mxu1 }
 0x3ac   : > { %v6795_v9 = vadd.f32 %v2423_v51, %v6231_v53 }
 0x3ad   : > { %v2427_v0 = vpop.f32.mrf.mxu1 }
 0x3ae   : > { %v2654_v19 = vpack.c.bf16 %v6795_v9, %v6792_v41  ;;  %v2428_v29 = vadd.f32 %v6623_v12, %v2427_v0 }
 0x3af   : > { %v2429_v27 = vpop.f32.mrf.mxu1 }
 0x3b0   : > { %5160 = vmatprep.mubr.bf16.mxu0 %v2654_v19  ;;  %v6802_v8 = vadd.f32 %v2428_v29, %v6248_v62 }
 0x3b1   : > { %v2430_v28 = vpop.f32.mrf.mxu1 }
 0x3b2   : > { %v2431_v35 = vadd.f32 %v6623_v12, %v2430_v28 }
 0x3b3   : > { %v2432_v63 = vpop.f32.mrf.mxu1 }
 0x3b4   : > { %v6805_v32 = vadd.f32 %v2431_v35, %v6242_v50  ;;  %v7932_v63 = vld [vmem:[#allocation22_spill] sm:$0xff] }
 0x3b5   : > { %v2435_v53 = vpop.f32.mrf.mxu1 }
 0x3b6   : > { %v2655_v52 = vpack.c.bf16 %v6805_v32, %v6802_v8  ;;  %v2436_v6 = vadd.f32 %v6623_v12, %v2435_v53 }
 0x3b7   : > { %v2437_v24 = vpop.f32.mrf.mxu1 }
 0x3b8   : > { %5161 = vmatmul.mubr.bf16.gmra.mxu0 %v2655_v52  ;;  %v6812_v3 = vadd.f32 %v2436_v6, %v6259_v14 }
 0x3b9   : > { %v2438_v56 = vpop.f32.mrf.mxu1 }
 0x3ba   : > { %v2439_v44 = vadd.f32 %v6623_v12, %v2438_v56 }
 0x3bb   : > { %v2440_v2 = vpop.f32.mrf.mxu1 }
 0x3bc   : > { %v6815_v62 = vadd.f32 %v2439_v44, %v6256_v21 }
 0x3bd   : > { %v2443_v50 = vpop.f32.mrf.mxu1 }
 0x3be   : > { %v2656_v42 = vpack.c.bf16 %v6815_v62, %v6812_v3  ;;  %v2444_v10 = vadd.f32 %v6623_v12, %v2443_v50 }
 0x3bf   : > { %v2445_v37 = vpop.f32.mrf.mxu1 }
 0x3c0   : > { %5164 = vmatprep.mubr.bf16.mxu0 %v2656_v42  ;;  %v6822_v45 = vadd.f32 %v2444_v10, %v6270_v48  ;;  %v7933_v48 = vld [vmem:[#allocation21_spill] sm:$0xff]  ;;  %v7934_v42 = vld [vmem:[#allocation24_spill] sm:$0xff]  ;;  %v7935_v10 = vld [vmem:[#allocation23_spill] sm:$0xff] }
 0x3c1   : > { %v2446_v58 = vpop.f32.mrf.mxu1 }
 0x3c2   : > { %v2447_v20 = vadd.f32 %v6623_v12, %v2446_v58 }
 0x3c3   : > { %v2448_v51 = vpop.f32.mrf.mxu1 }
 0x3c4   : > { %v6825_v14 = vadd.f32 %v2447_v20, %v6267_v1 }
 0x3c5   : > { %v2451_v21 = vpop.f32.mrf.mxu1 }
 0x3c6   : > { %v2657_v0 = vpack.c.bf16 %v6825_v14, %v6822_v45  ;;  %v2452_v27 = vadd.f32 %v6623_v12, %v2451_v21 }
 0x3c7   : > { %v2453_v19 = vpop.f32.mrf.mxu1 }
 0x3c8   : > { %5165 = vmatmul.mubr.bf16.gmra.mxu0 %v2657_v0  ;;  %v6832_v53 = vadd.f32 %v2452_v27, %v7932_v63  ;;  %v7937_v63 = vld [vmem:[#allocation25_spill] sm:$0xff] }
 0x3c9   : > { %v2454_v29 = vpop.f32.mrf.mxu1 }
 0x3ca   : > { %v2455_v28 = vadd.f32 %v6623_v12, %v2454_v29 }
 0x3cb   : > { %v2456_v35 = vpop.f32.mrf.mxu1 }
 0x3cc   : > { %v6835_v52 = vadd.f32 %v2455_v28, %v7933_v48  ;;  %v7936_v28 = vld [vmem:[#allocation26_spill] sm:$0xff] }
 0x3cd   : > { %v2459_v1 = vpop.f32.mrf.mxu1 }
 0x3ce   : > { %v2658_v24 = vpack.c.bf16 %v6835_v52, %v6832_v53  ;;  %v2460_v56 = vadd.f32 %v6623_v12, %v2459_v1 }
 0x3cf   : > { %v2461_v6 = vpop.f32.mrf.mxu1 }
 0x3d0   : > { %5168 = vmatprep.mubr.bf16.mxu0 %v2658_v24  ;;  %v6842_v37 = vadd.f32 %v2460_v56, %v7934_v42  ;;  %v7938_v42 = vld [vmem:[#allocation28_spill] sm:$0xff] }
 0x3d1   : > { %v2462_v44 = vpop.f32.mrf.mxu1 }
 0x3d2   : > { %v2463_v2 = vadd.f32 %v6623_v12, %v2462_v44 }
 0x3d3   : > { %v2464_v50 = vpop.f32.mrf.mxu1 }
 0x3d4   : > { %v6845_v58 = vadd.f32 %v2463_v2, %v7935_v10 }
 0x3d5   : > { %v2467_v20 = vpop.f32.mrf.mxu1 }
 0x3d6   : > { %v2659_v51 = vpack.c.bf16 %v6845_v58, %v6842_v37  ;;  %v2468_v0 = vadd.f32 %v6623_v12, %v2467_v20  ;;  %v7939_v20 = vld [vmem:[#allocation27_spill] sm:$0xff] }
 0x3d7   : > { %v2469_v21 = vpop.f32.mrf.mxu1 }
 0x3d8   : > { %5169 = vmatmul.mubr.bf16.gmra.mxu0 %v2659_v51  ;;  %v6852_v35 = vadd.f32 %v2468_v0, %v7936_v28 }
 0x3d9   : > { %v2470_v19 = vpop.f32.mrf.mxu1 }
 0x3da   : > { %v2471_v27 = vadd.f32 %v6623_v12, %v2470_v19 }
 0x3db   : > { %v2472_v29 = vpop.f32.mrf.mxu1 }
 0x3dc   : > { %v6855_v48 = vadd.f32 %v2471_v27, %v7937_v63 }
 0x3dd   : > { %v2475_v1 = vpop.f32.mrf.mxu1 }
 0x3de   : > { %v2660_v24 = vpack.c.bf16 %v6855_v48, %v6852_v35  ;;  %v2476_v56 = vadd.f32 %v6623_v12, %v2475_v1  ;;  %v7940_v1 = vld [vmem:[#allocation5_spill] sm:$0xff] }
 0x3df   : > { %v2477_v6 = vpop.f32.mrf.mxu1 }
 0x3e0   : > { %5172 = vmatprep.mubr.bf16.mxu0 %v2660_v24  ;;  %v6862_v10 = vadd.f32 %v2476_v56, %v7938_v42  ;;  %v7941_v6 = vld [vmem:[#allocation6_spill] sm:$0xff] }
 0x3e1   : > { %v2478_v44 = vpop.f32.mrf.mxu1 }
 0x3e2   : > { %v2479_v2 = vadd.f32 %v6623_v12, %v2478_v44 }
 0x3e3   : > { %v2480_v50 = vpop.f32.mrf.mxu1 }
 0x3e4   : > { %v6865_v51 = vadd.f32 %v2479_v2, %v7939_v20 }
 0x3e5   : > { %v2483_v21 = vpop.f32.mrf.mxu1 }
 0x3e6   : > { %v2661_v0 = vpack.c.bf16 %v6865_v51, %v6862_v10  ;;  %v2484_v27 = vadd.f32 %v6623_v12, %v2483_v21 }
 0x3e7   : > { %v2485_v19 = vpop.f32.mrf.mxu1 }
 0x3e8   : > { %5173 = vmatmul.mubr.bf16.gmra.mxu0 %v2661_v0  ;;  %v6872_v24 = vadd.f32 %v2484_v27, %v7940_v1  ;;  %v5377_v19 = vld [vmem:[%s7776_s7 + $0xb8] sm:$0xff]  }
 0x3e9   : > { %v2486_v29 = vpop.f32.mrf.mxu1  ;;  %v7943_v27 = vld [vmem:[#allocation30_spill] sm:$0xff]  ;;  %3925 = vmatpush1.bf16.msra.mxu0 %v5377_v19 }
 0x3ea   : > { %v2487_v28 = vadd.f32 %v6623_v12, %v2486_v29  ;;  %3926 = vmatprep.subr.bf16.mxu0 %v7888_v49 }
 0x3eb   : > { %v2488_v63 = vpop.f32.mrf.mxu1 }
 0x3ec   : > { %v6875_v56 = vadd.f32 %v2487_v28, %v7941_v6  ;;  %v7945_v28 = vld [vmem:[#allocation29_spill] sm:$0xff] }
 0x3ed   : > { %v2491_v44 = vpop.f32.mrf.mxu1 }
 0x3ee   : > { %7942 = vst [vmem:[#allocation17_spill] sm:$0xff] %v6875_v56  ;;  %v2662_v2 = vpack.c.bf16 %v6875_v56, %v6872_v24  ;;  %v2492_v42 = vadd.f32 %v6623_v12, %v2491_v44 }
 0x3ef   : > { %v2493_v50 = vpop.f32.mrf.mxu1 }
 0x3f0   : > { %5176 = vmatprep.mubr.bf16.mxu0 %v2662_v2  ;;  %v6885_v29 = vadd.f32 %v2492_v42, %v7943_v27  ;;  %v7947_v42 = vld [vmem:[#allocation7_spill] sm:$0xff] }
 0x3f1   : > { %v2494_v20 = vpop.f32.mrf.mxu1 }
 0x3f2   : > { %v2495_v21 = vadd.f32 %v6623_v12, %v2494_v20  ;;  %7944 = vst [vmem:[#allocation20_spill] sm:$0xff] %v6885_v29 }
 0x3f3   : > { %v2496_v0 = vpop.f32.mrf.mxu1 }
 0x3f4   : > { %v6888_v63 = vadd.f32 %v2495_v21, %v7945_v28  ;;  %v7949_v21 = vld [vmem:[#allocation8_spill] sm:$0xff] }
 0x3f5   : > { %v2499_v1 = vpop.f32.mrf.mxu1 }
 0x3f6   : > { %7946 = vst [vmem:[#allocation19_spill] sm:$0xff] %v6888_v63  ;;  %v2663_v6 = vpack.c.bf16 %v6888_v63, %v6885_v29  ;;  %v2500_v2 = vadd.f32 %v6623_v12, %v2499_v1  ;;  %v5378_v29 = vld [vmem:[%s7776_s7 + $0xb0] sm:$0xff]   ;;  %v7953_v63 = vld [vmem:[#allocation31_spill] sm:$0xff] }
 0x3f7   : > { %v2501_v44 = vpop.f32.mrf.mxu1  ;;  %3927 = vmatpush1.bf16.msra.mxu0 %v5378_v29 }
 0x3f8   : > { %5177 = vmatmul.mubr.bf16.gmra.mxu0 %v2663_v6  ;;  %v6896_v27 = vadd.f32 %v2500_v2, %v7947_v42  ;;  %3928 = vmatprep.subr.bf16.mxu0 %v7888_v49  ;;  %v7951_v42 = vld [vmem:[#allocation9_spill] sm:$0xff] }
 0x3f9   : > { %v2502_v50 = vpop.f32.mrf.mxu1 }
 0x3fa   : > { %v2503_v20 = vadd.f32 %v6623_v12, %v2502_v50  ;;  %7948 = vst [vmem:[#allocation22_spill] sm:$0xff] %v6896_v27 }
 0x3fb   : > { %v2504_v0 = vpop.f32.mrf.mxu1 }
 0x3fc   : > { %v6899_v28 = vadd.f32 %v2503_v20, %v7949_v21  ;;  %v5379_v0 = vld [vmem:[%s7776_s7 + $0xa8] sm:$0xff]  }
 0x3fd   : > { %v2507_v19 = vpop.f32.mrf.mxu1  ;;  %3929 = vmatpush1.bf16.msra.mxu0 %v5379_v0 }
 0x3fe   : > { %7950 = vst [vmem:[#allocation21_spill] sm:$0xff] %v6899_v28  ;;  %v2664_v44 = vpack.c.bf16 %v6899_v28, %v6896_v27  ;;  %v2508_v6 = vadd.f32 %v6623_v12, %v2507_v19  ;;  %3930 = vmatprep.subr.bf16.mxu0 %v7888_v49 }
 0x3ff   : > { %v2509_v1 = vpop.f32.mrf.mxu1 }
 0x400   : > { %5180 = vmatprep.mubr.bf16.mxu0 %v2664_v44  ;;  %v6913_v21 = vadd.f32 %v2508_v6, %v7951_v42  ;;  %v7955_v6 = vld [vmem:[#allocation10_spill] sm:$0xff] }
 0x401   : > { %v2510_v2 = vpop.f32.mrf.mxu1 }
 0x402   : > { %v2511_v50 = vadd.f32 %v6623_v12, %v2510_v2  ;;  %7952 = vst [vmem:[#allocation24_spill] sm:$0xff] %v6913_v21 }
 0x403   : > { %v2512_v20 = vpop.f32.mrf.mxu1 }
 0x404   : > { %v6916_v28 = vadd.f32 %v2511_v50, %v7953_v63  ;;  %v7957_v63 = vld [vmem:[#allocation11_spill] sm:$0xff] }
 0x405   : > { %v2515_v29 = vpop.f32.mrf.mxu1 }
 0x406   : > { %7954 = vst [vmem:[#allocation23_spill] sm:$0xff] %v6916_v28  ;;  %v2665_v19 = vpack.c.bf16 %v6916_v28, %v6913_v21  ;;  %v2516_v1 = vadd.f32 %v6623_v12, %v2515_v29  ;;  %v5380_v21 = vld [vmem:[%s7776_s7 + $0xa0] sm:$0xff]   ;;  %v7961_v28 = vld [vmem:[#allocation33_spill] sm:$0xff] }
 0x407   : > { %v2517_v44 = vpop.f32.mrf.mxu1  ;;  %3931 = vmatpush1.bf16.msra.mxu0 %v5380_v21 }
 0x408   : > { %5181 = vmatmul.mubr.bf16.gmra.mxu0 %v2665_v19  ;;  %v6924_v42 = vadd.f32 %v2516_v1, %v7955_v6  ;;  %3932 = vmatprep.subr.bf16.mxu0 %v7888_v49  ;;  %v7959_v6 = vld [vmem:[#allocation34_spill] sm:$0xff] }
 0x409   : > { %v2518_v2 = vpop.f32.mrf.mxu1 }
 0x40a   : > { %v2519_v20 = vadd.f32 %v6623_v12, %v2518_v2  ;;  %7956 = vst [vmem:[#allocation26_spill] sm:$0xff] %v6924_v42 }
 0x40b   : > { %v2520_v27 = vpop.f32.mrf.mxu1 }
 0x40c   : > { %v6927_v50 = vadd.f32 %v2519_v20, %v7957_v63  ;;  %v5381_v20 = vld [vmem:[%s7776_s7 + $0x98] sm:$0xff]  }
 0x40d   : > { %v2523_v0 = vpop.f32.mrf.mxu1  ;;  %3933 = vmatpush1.bf16.msra.mxu0 %v5381_v20 }
 0x40e   : > { %7958 = vst [vmem:[#allocation25_spill] sm:$0xff] %v6927_v50  ;;  %v2666_v44 = vpack.c.bf16 %v6927_v50, %v6924_v42  ;;  %v2524_v19 = vadd.f32 %v6623_v12, %v2523_v0  ;;  %3934 = vmatprep.subr.bf16.mxu0 %v7888_v49 }
 0x40f   : > { %v2525_v29 = vpop.f32.mrf.mxu1 }
 0x410   : > { %5184 = vmatprep.mubr.bf16.mxu0 %v2666_v44  ;;  %v6941_v63 = vadd.f32 %v2524_v19, %v7959_v6 }
 0x411   : > { %v2526_v27 = vpop.f32.mrf.mxu1 }
 0x412   : > { %v2527_v1 = vadd.f32 %v6623_v12, %v2526_v27  ;;  %7960 = vst [vmem:[#allocation28_spill] sm:$0xff] %v6941_v63 }
 0x413   : > { %v2528_v2 = vpop.f32.mrf.mxu1 }
 0x414   : > { %v6944_v50 = vadd.f32 %v2527_v1, %v7961_v28  ;;  %v6957_v1 = vld [vmem:[%s7773_s4 + $0x1] ss:$0 sm:$0xff] }
 0x415   : > { %v2531_v21 = vpop.f32.mrf.mxu1 }
 0x416   : > { %7962 = vst [vmem:[#allocation27_spill] sm:$0xff] %v6944_v50  ;;  %v2667_v0 = vpack.c.bf16 %v6944_v50, %v6941_v63  ;;  %v2532_v29 = vadd.f32 %v6623_v12, %v2531_v21 }
 0x417   : > { %v2533_v44 = vpop.f32.mrf.mxu1 }
 0x418   : > { %v5138_v27 = vpop.f32.mrf.mxu0  ;;  %5185 = vmatmul.mubr.bf16.gmra.mxu0 %v2667_v0  ;;  %v6952_v28 = vadd.f32 %v2532_v29, %v6421_v33 }
 0x419   : > { %v2534_v2 = vpop.f32.mrf.mxu1 }
 0x41a   : > { %v2535_v42 = vadd.f32 %v6623_v12, %v2534_v2  ;;  %v2781_v19 = vpop.f32.mrf.mxu0  ;;  %v5382_v2 = vld [vmem:[%s7776_s7 + $0x90] sm:$0xff]  }
 0x41b   : > { %v2536_v6 = vpop.f32.mrf.mxu1  ;;  %v2782_v21 = vadd.f32 %v6957_v1, %v2781_v19  ;;  %3935 = vmatpush1.bf16.msra.mxu0 %v5382_v2 }
 0x41c   : > { %v6960_v20 = vadd.f32 %v2535_v42, %v6418_v47  ;;  %v5139_v44 = vpop.f32.mrf.mxu0  ;;  %3936 = vmatprep.subr.bf16.mxu0 %v7888_v49 }
 0x41d   : > { %v2539_v0 = vpop.f32.mrf.mxu1  ;;  %v6972_v47 = vadd.f32 %v2782_v21, %v6635_v39  ;;  %v7965_v39 = vld [vmem:[#allocation13_spill] sm:$0xff] }
 0x41e   : > { %7963 = vst [vmem:[#allocation5_spill] sm:$0xff] %v6960_v20  ;;  %v2784_v6 = vpop.f32.mrf.mxu0  ;;  %v2668_v33 = vpack.c.bf16 %v6960_v20, %v6952_v28  ;;  %v2540_v50 = vadd.f32 %v6623_v12, %v2539_v0  ;;  %v2793_v20 = vadd.f32 %v5139_v44, %v6957_v1  ;;  %v5383_v0 = vld [vmem:[%s7776_s7 + $0x88] sm:$0xff]  }
 0x41f   : > { %v2785_v29 = vadd.f32 %v6957_v1, %v2784_v6  ;;  %v2541_v63 = vpop.f32.mrf.mxu1  ;;  %3937 = vmatpush1.bf16.msra.mxu0 %v5383_v0 }
 0x420   : > { %5188 = vmatprep.mubr.bf16.mxu0 %v2668_v33  ;;  %v6985_v6 = vadd.f32 %v2540_v50, %v6436_v16  ;;  %3938 = vmatprep.subr.bf16.mxu0 %v7888_v49 }
 0x421   : > { %v6975_v42 = vadd.f32 %v2785_v29, %v6639_v36  ;;  %v2542_v19 = vpop.f32.mrf.mxu1  ;;  %v2790_v36 = vadd.f32 %v5138_v27, %v6957_v1  ;;  %v6996_v29 = vadd.f32 %v2793_v20, %v6653_v17 }
 0x422   : > { %v2543_v56 = vadd.f32 %v6623_v12, %v2542_v19 }
 0x423   : > { %7964 = vst [vmem:[#allocation6_spill] sm:$0xff] %v6975_v42  ;;  %v3100_v63 = vpack.c.bf16 %v6975_v42, %v6972_v47  ;;  %v2544_v2 = vpop.f32.mrf.mxu1  ;;  %v7000_v27 = vadd.f32 %v2790_v36, %v6649_v38  ;;  %v5384_v38 = vld [vmem:[%s7776_s7 + $0x80] sm:$0xff]  }
 0x424   : > { %v6988_v21 = vadd.f32 %v2543_v56, %v7965_v39  ;;  %3939 = vmatpush1.bf16.msra.mxu0 %v5384_v38 }
 0x425   : > { %v2547_v33 = vpop.f32.mrf.mxu1  ;;  %3275 = vmatmul.mubr.bf16.vlgmr.msra.gmra.mxu1 %v3100_v63  ;;  %v3101_v0 = vpack.c.bf16 %v6996_v29, %v7000_v27  ;;  %3940 = vmatprep.subr.bf16.mxu0 %v7888_v49 }
 0x426   : > { %v2669_v44 = vpack.c.bf16 %v6988_v21, %v6985_v6  ;;  %3284 = vmatprep.mubr.bf16.mxu1 %v7888_v49  ;;  %v2548_v50 = vadd.f32 %v6623_v12, %v2547_v33 }
 0x427   : > { %v2549_v16 = vpop.f32.mrf.mxu1 }
 0x428   : > { %v5142_v56 = vpop.f32.mrf.mxu0  ;;  %5189 = vmatmul.mubr.bf16.gmra.mxu0 %v2669_v44  ;;  %v7006_v42 = vadd.f32 %v2548_v50, %v6453_v34 }
 0x429   : > { %v2550_v19 = vpop.f32.mrf.mxu1 }
 0x42a   : > { %v2551_v63 = vadd.f32 %v6623_v12, %v2550_v19  ;;  %v2797_v2 = vpop.f32.mrf.mxu0 }
 0x42b   : > { %v2552_v39 = vpop.f32.mrf.mxu1  ;;  %v2798_v33 = vadd.f32 %v6957_v1, %v2797_v2 }
 0x42c   : > { %v7009_v17 = vadd.f32 %v2551_v63, %v6450_v57  ;;  %v5143_v20 = vpop.f32.mrf.mxu0 }
 0x42d   : > { %v2555_v44 = vpop.f32.mrf.mxu1  ;;  %3285 = vmatmul.mubr.bf16.gmra.mxu1 %v3101_v0  ;;  %v7022_v19 = vadd.f32 %v2798_v33, %v6663_v59  ;;  %v2809_v39 = vadd.f32 %v5143_v20, %v6957_v1  ;;  %v7969_v59 = vld [vmem:[#allocation12_spill] sm:$0xff] }
 0x42e   : > { %v2800_v36 = vpop.f32.mrf.mxu0  ;;  %v2670_v16 = vpack.c.bf16 %v7009_v17, %v7006_v42  ;;  %3294 = vmatprep.mubr.bf16.mxu1 %v7888_v49  ;;  %v2556_v57 = vadd.f32 %v6623_v12, %v2555_v44  ;;  %v5385_v44 = vld [vmem:[%s7776_s7 + $0xf8] sm:$0xff]  }
 0x42f   : > { %v2801_v34 = vadd.f32 %v6957_v1, %v2800_v36  ;;  %v2557_v50 = vpop.f32.mrf.mxu1  ;;  %7966 = vst [vmem:[#allocation30_spill] sm:$0xff] %v7022_v19  ;;  %3941 = vmatpush2.bf16.msra.mxu0 %v5385_v44 }
 0x430   : > { %5192 = vmatprep.mubr.bf16.mxu0 %v2670_v16  ;;  %v7968_v16 = vld [vmem:[#allocation14_spill] sm:$0xff]  ;;  %3942 = vmatprep.subr.bf16.mxu0 %v7888_v49 }
 0x431   : > { %v7025_v63 = vadd.f32 %v2801_v34, %v6667_v5  ;;  %v2558_v2 = vpop.f32.mrf.mxu1  ;;  %v7035_v50 = vadd.f32 %v2556_v57, %v7968_v16  ;;  %v2806_v5 = vadd.f32 %v5142_v56, %v6957_v1 }
 0x432   : > { %v2559_v0 = vadd.f32 %v6623_v12, %v2558_v2  ;;  %v7046_v2 = vadd.f32 %v2809_v39, %v6681_v4  ;;  %v7971_v4 = vld [vmem:[#allocation16_spill] sm:$0xff] }
 0x433   : > { %7967 = vst [vmem:[#allocation29_spill] sm:$0xff] %v7025_v63  ;;  %v3102_v36 = vpack.c.bf16 %v7025_v63, %v7022_v19  ;;  %v2560_v38 = vpop.f32.mrf.mxu1  ;;  %v7050_v56 = vadd.f32 %v2806_v5, %v6677_v25  ;;  %v5386_v25 = vld [vmem:[%s7776_s7 + $0xf0] sm:$0xff]  }
 0x434   : > { %v7038_v33 = vadd.f32 %v2559_v0, %v7969_v59  ;;  %7970 = vst [vmem:[#allocation7_spill] sm:$0xff] %v7046_v2  ;;  %3943 = vmatpush2.bf16.msra.mxu0 %v5386_v25 }
 0x435   : > { %v2563_v34 = vpop.f32.mrf.mxu1  ;;  %3295 = vmatmul.mubr.bf16.gmra.mxu1 %v3102_v36  ;;  %v3103_v59 = vpack.c.bf16 %v7046_v2, %v7050_v56  ;;  %3944 = vmatprep.subr.bf16.mxu0 %v7888_v49 }
 0x436   : > { %v2671_v20 = vpack.c.bf16 %v7038_v33, %v7035_v50  ;;  %3304 = vmatprep.mubr.bf16.mxu1 %v7888_v49  ;;  %v2564_v38 = vadd.f32 %v6623_v12, %v2563_v34 }
 0x437   : > { %v2565_v57 = vpop.f32.mrf.mxu1 }
 0x438   : > { %v5146_v0 = vpop.f32.mrf.mxu0  ;;  %5193 = vmatmul.mubr.bf16.gmra.mxu0 %v2671_v20  ;;  %v7056_v19 = vadd.f32 %v2564_v38, %v6487_v26 }
 0x439   : > { %v2566_v36 = vpop.f32.mrf.mxu1 }
 0x43a   : > { %v2567_v44 = vadd.f32 %v6623_v12, %v2566_v36  ;;  %v2813_v16 = vpop.f32.mrf.mxu0 }
 0x43b   : > { %v2568_v63 = vpop.f32.mrf.mxu1  ;;  %v2814_v20 = vadd.f32 %v6957_v1, %v2813_v16 }
 0x43c   : > { %v7059_v39 = vadd.f32 %v2567_v44, %v7971_v4  ;;  %v5147_v34 = vpop.f32.mrf.mxu0 }
 0x43d   : > { %v2571_v57 = vpop.f32.mrf.mxu1  ;;  %3305 = vmatmul.mubr.bf16.gmra.mxu1 %v3103_v59  ;;  %v7072_v44 = vadd.f32 %v2814_v20, %v6697_v40  ;;  %v2825_v2 = vadd.f32 %v5147_v34, %v6957_v1  ;;  %v7973_v40 = vld [vmem:[#allocation15_spill] sm:$0xff] }
 0x43e   : > { %v2816_v5 = vpop.f32.mrf.mxu0  ;;  %v2672_v36 = vpack.c.bf16 %v7059_v39, %v7056_v19  ;;  %3314 = vmatprep.mubr.bf16.mxu1 %v7888_v49  ;;  %v2572_v38 = vadd.f32 %v6623_v12, %v2571_v57  ;;  %v5387_v57 = vld [vmem:[%s7776_s7 + $0xe8] sm:$0xff]  }
 0x43f   : > { %v2817_v26 = vadd.f32 %v6957_v1, %v2816_v5  ;;  %v2573_v63 = vpop.f32.mrf.mxu1  ;;  %3945 = vmatpush2.bf16.msra.mxu0 %v5387_v57  ;;  %v7096_v34 = vadd.f32 %v2825_v2, %v6715_v23 }
 0x440   : > { %5196 = vmatprep.mubr.bf16.mxu0 %v2672_v36  ;;  %v7972_v36 = vld [vmem:[#allocation18_spill] sm:$0xff]  ;;  %3946 = vmatprep.subr.bf16.mxu0 %v7888_v49 }
 0x441   : > { %v7075_v16 = vadd.f32 %v2817_v26, %v6701_v13  ;;  %v2574_v59 = vpop.f32.mrf.mxu1  ;;  %v7085_v63 = vadd.f32 %v2572_v38, %v7972_v36  ;;  %v2822_v13 = vadd.f32 %v5146_v0, %v6957_v1 }
 0x442   : > { %v2575_v4 = vadd.f32 %v6623_v12, %v2574_v59 }
 0x443   : > { %v3104_v5 = vpack.c.bf16 %v7075_v16, %v7072_v44  ;;  %v2576_v25 = vpop.f32.mrf.mxu1  ;;  %v7099_v38 = vadd.f32 %v2822_v13, %v6711_v22  ;;  %v5389_v13 = vld [vmem:[%s7776_s7 + $0xd8] sm:$0xff]  }
 0x444   : > { %v7088_v20 = vadd.f32 %v2575_v4, %v7973_v40  ;;  %v5388_v25 = vld [vmem:[%s7776_s7 + $0xe0] sm:$0xff]  }
 0x445   : > { %3315 = vmatmul.mubr.bf16.gmra.mxu1 %v3104_v5  ;;  %v3105_v0 = vpack.c.bf16 %v7096_v34, %v7099_v38  ;;  %3947 = vmatpush2.bf16.msra.mxu0 %v5388_v25  ;;  %v5390_v25 = vld [vmem:[%s7776_s7 + $0xd0] sm:$0xff]  }
 0x446   : > { %v2673_v12 = vpack.c.bf16 %v7088_v20, %v7085_v63  ;;  %3324 = vmatprep.mubr.bf16.mxu1 %v7888_v49  ;;  %3948 = vmatprep.subr.bf16.mxu0 %v7888_v49 }
 0x448   : > { %v5150_v26 = vpop.f32.mrf.mxu0  ;;  %5197 = vmatmul.mubr.bf16.gmra.mxu0 %v2673_v12 }
 0x449   : > { %v2838_v12 = vadd.f32 %v5150_v26, %v6957_v1  ;;  %3949 = vmatpush2.bf16.msra.mxu0 %v5389_v13  ;;  %v5391_v13 = vld [vmem:[%s7776_s7 + $0xc8] sm:$0xff]  }
 0x44a   : > { %v2829_v59 = vpop.f32.mrf.mxu0  ;;  %3950 = vmatprep.subr.bf16.mxu0 %v7888_v49 }
 0x44b   : > { %v2830_v5 = vadd.f32 %v6957_v1, %v2829_v59  ;;  %v7129_v59 = vadd.f32 %v2838_v12, %v6736_v7 }
 0x44c   : > { %v5151_v4 = vpop.f32.mrf.mxu0 }
 0x44d   : > { %3325 = vmatmul.mubr.bf16.gmra.mxu1 %v3105_v0  ;;  %v7111_v22 = vadd.f32 %v2830_v5, %v6725_v61  ;;  %v2841_v36 = vadd.f32 %v5151_v4, %v6957_v1  ;;  %3951 = vmatpush2.bf16.msra.mxu0 %v5390_v25 }
 0x44e   : > { %v2832_v57 = vpop.f32.mrf.mxu0  ;;  %3334 = vmatprep.mubr.bf16.mxu1 %v7888_v49  ;;  %3952 = vmatprep.subr.bf16.mxu0 %v7888_v49 }
 0x44f   : > { %v2833_v23 = vadd.f32 %v6957_v1, %v2832_v57  ;;  %v7126_v61 = vadd.f32 %v2841_v36, %v6739_v31 }
 0x451   : > { %v7114_v2 = vadd.f32 %v2833_v23, %v6728_v43  ;;  %v3107_v4 = vpack.c.bf16 %v7126_v61, %v7129_v59  ;;  %3953 = vmatpush2.bf16.msra.mxu0 %v5391_v13 }
 0x452   : > { %3954 = vmatprep.subr.bf16.mxu0 %v7888_v49 }
 0x453   : > { %v3106_v40 = vpack.c.bf16 %v7114_v2, %v7111_v22 }
 0x455   : > { %3335 = vmatmul.mubr.bf16.gmra.mxu1 %v3106_v40 }
 0x456   : > { %3344 = vmatprep.mubr.bf16.mxu1 %v7888_v49 }
 0x458   : > { %v5154_v43 = vpop.f32.mrf.mxu0 }
 0x459   : > { %v2854_v12 = vadd.f32 %v5154_v43, %v6957_v1 }
 0x45a   : > { %v2845_v0 = vpop.f32.mrf.mxu0 }
 0x45b   : > { %v2846_v26 = vadd.f32 %v6957_v1, %v2845_v0  ;;  %v7159_v0 = vadd.f32 %v2854_v12, %v6762_v55 }
 0x45c   : > { %v5155_v5 = vpop.f32.mrf.mxu0 }
 0x45d   : > { %3345 = vmatmul.mubr.bf16.gmra.mxu1 %v3107_v4  ;;  %v7141_v7 = vadd.f32 %v2846_v26, %v6752_v54  ;;  %v2857_v36 = vadd.f32 %v5155_v5, %v6957_v1 }
 0x45e   : > { %v2848_v57 = vpop.f32.mrf.mxu0  ;;  %3354 = vmatprep.mubr.bf16.mxu1 %v7888_v49 }
 0x45f   : > { %v2849_v31 = vadd.f32 %v6957_v1, %v2848_v57  ;;  %v7156_v54 = vadd.f32 %v2857_v36, %v6765_v60  ;;  %v5392_v60 = vld [vmem:[%s7776_s7 + $0xc0] sm:$0xff]  }
 0x460   : > { %3955 = vmatpush2.bf16.msra.mxu0 %v5392_v60 }
 0x461   : > { %v7144_v23 = vadd.f32 %v2849_v31, %v6755_v15  ;;  %v3109_v5 = vpack.c.bf16 %v7156_v54, %v7159_v0 }
 0x463   : > { %v3108_v40 = vpack.c.bf16 %v7144_v23, %v7141_v7 }
 0x465   : > { %3355 = vmatmul.mubr.bf16.gmra.mxu1 %v3108_v40 }
 0x466   : > { %3364 = vmatprep.mubr.bf16.mxu1 %v7888_v49 }
 0x468   : > { %v5158_v15 = vpop.f32.mrf.mxu0 }
 0x469   : > { %v2870_v13 = vadd.f32 %v5158_v15, %v6957_v1 }
 0x46a   : > { %v2861_v4 = vpop.f32.mrf.mxu0 }
 0x46b   : > { %v2862_v43 = vadd.f32 %v6957_v1, %v2861_v4 }
 0x46c   : > { %v5159_v26 = vpop.f32.mrf.mxu0 }
 0x46d   : > { %3365 = vmatmul.mubr.bf16.gmra.mxu1 %v3109_v5  ;;  %v7170_v55 = vadd.f32 %v2862_v43, %v6772_v46  ;;  %v2873_v36 = vadd.f32 %v5159_v26, %v6957_v1  ;;  %v7184_v46 = vadd.f32 %v2870_v13, %v6782_v18 }
 0x46e   : > { %v2864_v25 = vpop.f32.mrf.mxu0  ;;  %3374 = vmatprep.mubr.bf16.mxu1 %v7888_v49 }
 0x46f   : > { %v2865_v57 = vadd.f32 %v6957_v1, %v2864_v25  ;;  %v7181_v12 = vadd.f32 %v2873_v36, %v6785_v11 }
 0x471   : > { %v7173_v31 = vadd.f32 %v2865_v57, %v6775_v30  ;;  %v3111_v30 = vpack.c.bf16 %v7181_v12, %v7184_v46 }
 0x473   : > { %v3110_v40 = vpack.c.bf16 %v7173_v31, %v7170_v55 }
 0x475   : > { %3375 = vmatmul.mubr.bf16.gmra.mxu1 %v3110_v40 }
 0x476   : > { %3384 = vmatprep.mubr.bf16.mxu1 %v7888_v49 }
 0x478   : > { %v5162_v4 = vpop.f32.mrf.mxu0 }
 0x479   : > { %v2886_v36 = vadd.f32 %v5162_v4, %v6957_v1 }
 0x47a   : > { %v2877_v5 = vpop.f32.mrf.mxu0 }
 0x47b   : > { %v2878_v43 = vadd.f32 %v6957_v1, %v2877_v5 }
 0x47c   : > { %v5163_v26 = vpop.f32.mrf.mxu0 }
 0x47d   : > { %3385 = vmatmul.mubr.bf16.gmra.mxu1 %v3111_v30  ;;  %v7192_v11 = vadd.f32 %v2878_v43, %v6792_v41  ;;  %v2889_v18 = vadd.f32 %v5163_v26, %v6957_v1  ;;  %v7206_v41 = vadd.f32 %v2886_v36, %v6802_v8 }
 0x47e   : > { %v2880_v25 = vpop.f32.mrf.mxu0  ;;  %3394 = vmatprep.mubr.bf16.mxu1 %v7888_v49 }
 0x47f   : > { %v2881_v15 = vadd.f32 %v6957_v1, %v2880_v25  ;;  %v7203_v40 = vadd.f32 %v2889_v18, %v6805_v32 }
 0x481   : > { %v7195_v60 = vadd.f32 %v2881_v15, %v6795_v9  ;;  %v3113_v9 = vpack.c.bf16 %v7203_v40, %v7206_v41 }
 0x483   : > { %v3112_v57 = vpack.c.bf16 %v7195_v60, %v7192_v11 }
 0x485   : > { %3395 = vmatmul.mubr.bf16.gmra.mxu1 %v3112_v57 }
 0x486   : > { %3404 = vmatprep.mubr.bf16.mxu1 %v7888_v49 }
 0x488   : > { %v5166_v13 = vpop.f32.mrf.mxu0 }
 0x489   : > { %v2902_v18 = vadd.f32 %v5166_v13, %v6957_v1 }
 0x48a   : > { %v2893_v5 = vpop.f32.mrf.mxu0 }
 0x48b   : > { %v2894_v26 = vadd.f32 %v6957_v1, %v2893_v5 }
 0x48c   : > { %v5167_v30 = vpop.f32.mrf.mxu0 }
 0x48d   : > { %3405 = vmatmul.mubr.bf16.gmra.mxu1 %v3113_v9  ;;  %v7214_v32 = vadd.f32 %v2894_v26, %v6812_v3  ;;  %v2905_v8 = vadd.f32 %v5167_v30, %v6957_v1  ;;  %v7228_v3 = vadd.f32 %v2902_v18, %v6822_v45 }
 0x48e   : > { %v2896_v43 = vpop.f32.mrf.mxu0  ;;  %3414 = vmatprep.mubr.bf16.mxu1 %v7888_v49 }
 0x48f   : > { %v2897_v4 = vadd.f32 %v6957_v1, %v2896_v43  ;;  %v7225_v57 = vadd.f32 %v2905_v8, %v6825_v14 }
 0x491   : > { %v7217_v25 = vadd.f32 %v2897_v4, %v6815_v62  ;;  %v3115_v62 = vpack.c.bf16 %v7225_v57, %v7228_v3 }
 0x493   : > { %v3114_v15 = vpack.c.bf16 %v7217_v25, %v7214_v32 }
 0x495   : > { %3415 = vmatmul.mubr.bf16.gmra.mxu1 %v3114_v15 }
 0x496   : > { %3424 = vmatprep.mubr.bf16.mxu1 %v7888_v49 }
 0x498   : > { %v5170_v36 = vpop.f32.mrf.mxu0 }
 0x499   : > { %v2918_v8 = vadd.f32 %v5170_v36, %v6957_v1 }
 0x49a   : > { %v2909_v5 = vpop.f32.mrf.mxu0 }
 0x49b   : > { %v2910_v30 = vadd.f32 %v6957_v1, %v2909_v5 }
 0x49c   : > { %v5171_v9 = vpop.f32.mrf.mxu0 }
 0x49d   : > { %3425 = vmatmul.mubr.bf16.gmra.mxu1 %v3115_v62  ;;  %v7236_v14 = vadd.f32 %v2910_v30, %v6832_v53  ;;  %v2921_v45 = vadd.f32 %v5171_v9, %v6957_v1  ;;  %v7250_v53 = vadd.f32 %v2918_v8, %v6842_v37 }
 0x49e   : > { %v2912_v26 = vpop.f32.mrf.mxu0  ;;  %3434 = vmatprep.mubr.bf16.mxu1 %v7888_v49 }
 0x49f   : > { %v2913_v13 = vadd.f32 %v6957_v1, %v2912_v26  ;;  %7974 = vst [vmem:[#allocation8_spill] sm:$0xff] %v7236_v14  ;;  %v7247_v15 = vadd.f32 %v2921_v45, %v6845_v58  ;;  %7977 = vst [vmem:[#allocation10_spill] sm:$0xff] %v7250_v53 }
 0x4a1   : > { %v7239_v43 = vadd.f32 %v2913_v13, %v6835_v52  ;;  %7976 = vst [vmem:[#allocation31_spill] sm:$0xff] %v7247_v15  ;;  %v3117_v52 = vpack.c.bf16 %v7247_v15, %v7250_v53 }
 0x4a3   : > { %7975 = vst [vmem:[#allocation9_spill] sm:$0xff] %v7239_v43  ;;  %v3116_v4 = vpack.c.bf16 %v7239_v43, %v7236_v14 }
 0x4a5   : > { %3435 = vmatmul.mubr.bf16.gmra.mxu1 %v3116_v4 }
 0x4a6   : > { %3444 = vmatprep.mubr.bf16.mxu1 %v7888_v49 }
 0x4a8   : > { %v5174_v18 = vpop.f32.mrf.mxu0 }
 0x4a9   : > { %v2934_v45 = vadd.f32 %v5174_v18, %v6957_v1 }
 0x4aa   : > { %v2925_v5 = vpop.f32.mrf.mxu0 }
 0x4ab   : > { %v2926_v9 = vadd.f32 %v6957_v1, %v2925_v5 }
 0x4ac   : > { %v5175_v62 = vpop.f32.mrf.mxu0 }
 0x4ad   : > { %3445 = vmatmul.mubr.bf16.gmra.mxu1 %v3117_v52  ;;  %v7258_v58 = vadd.f32 %v2926_v9, %v6852_v35  ;;  %v2937_v37 = vadd.f32 %v5175_v62, %v6957_v1  ;;  %v7272_v35 = vadd.f32 %v2934_v45, %v6862_v10  ;;  %v7985_v45 = vld [vmem:[#allocation19_spill] sm:$0xff] }
 0x4ae   : > { %v2928_v30 = vpop.f32.mrf.mxu0  ;;  %3454 = vmatprep.mubr.bf16.mxu1 %v7888_v49 }
 0x4af   : > { %v2929_v36 = vadd.f32 %v6957_v1, %v2928_v30  ;;  %7978 = vst [vmem:[#allocation11_spill] sm:$0xff] %v7258_v58  ;;  %v7269_v4 = vadd.f32 %v2937_v37, %v6865_v51  ;;  %7981 = vst [vmem:[#allocation13_spill] sm:$0xff] %v7272_v35  ;;  %v7983_v30 = vld [vmem:[#allocation17_spill] sm:$0xff] }
 0x4b1   : > { %v7261_v26 = vadd.f32 %v2929_v36, %v6855_v48  ;;  %7980 = vst [vmem:[#allocation33_spill] sm:$0xff] %v7269_v4  ;;  %v3119_v48 = vpack.c.bf16 %v7269_v4, %v7272_v35  ;;  %v8006_v4 = vld [vmem:[#allocation28_spill] sm:$0xff] }
 0x4b3   : > { %7979 = vst [vmem:[#allocation34_spill] sm:$0xff] %v7261_v26  ;;  %v3118_v13 = vpack.c.bf16 %v7261_v26, %v7258_v58 }
 0x4b5   : > { %3455 = vmatmul.mubr.bf16.gmra.mxu1 %v3118_v13 }
 0x4b6   : > { %3464 = vmatprep.mubr.bf16.mxu1 %v7888_v49 }
 0x4b8   : > { %v5178_v8 = vpop.f32.mrf.mxu0 }
 0x4b9   : > { %v2950_v13 = vadd.f32 %v5178_v8, %v6957_v1 }
 0x4ba   : > { %v2941_v5 = vpop.f32.mrf.mxu0 }
 0x4bb   : > { %v2942_v62 = vadd.f32 %v6957_v1, %v2941_v5 }
 0x4bc   : > { %v5179_v52 = vpop.f32.mrf.mxu0 }
 0x4bd   : > { %3465 = vmatmul.mubr.bf16.gmra.mxu1 %v3119_v48  ;;  %v7280_v51 = vadd.f32 %v2942_v62, %v6872_v24  ;;  %v2953_v10 = vadd.f32 %v5179_v52, %v6957_v1 }
 0x4be   : > { %v2944_v9 = vpop.f32.mrf.mxu0  ;;  %3474 = vmatprep.mubr.bf16.mxu1 %v7888_v49 }
 0x4bf   : > { %v2945_v18 = vadd.f32 %v6957_v1, %v2944_v9  ;;  %7982 = vst [vmem:[#allocation14_spill] sm:$0xff] %v7280_v51  ;;  %v7291_v5 = vadd.f32 %v2953_v10, %v7985_v45  ;;  %v7987_v9 = vld [vmem:[#allocation20_spill] sm:$0xff]  ;;  %v7991_v45 = vld [vmem:[#allocation21_spill] sm:$0xff] }
 0x4c0   : > { %v7294_v24 = vadd.f32 %v2950_v13, %v7987_v9 }
 0x4c1   : > { %v7283_v36 = vadd.f32 %v2945_v18, %v7983_v30  ;;  %7986 = vst [vmem:[#allocation16_spill] sm:$0xff] %v7291_v5 }
 0x4c2   : > { %7988 = vst [vmem:[#allocation18_spill] sm:$0xff] %v7294_v24  ;;  %v3121_v18 = vpack.c.bf16 %v7291_v5, %v7294_v24  ;;  %v7995_v24 = vld [vmem:[#allocation24_spill] sm:$0xff] }
 0x4c3   : > { %7984 = vst [vmem:[#allocation12_spill] sm:$0xff] %v7283_v36  ;;  %v3120_v37 = vpack.c.bf16 %v7283_v36, %v7280_v51 }
 0x4c5   : > { %3475 = vmatmul.mubr.bf16.gmra.mxu1 %v3120_v37  ;;  %v7989_v37 = vld [vmem:[#allocation22_spill] sm:$0xff] }
 0x4c6   : > { %3484 = vmatprep.mubr.bf16.mxu1 %v7888_v49 }
 0x4c8   : > { %v5182_v48 = vpop.f32.mrf.mxu0 }
 0x4c9   : > { %v2966_v5 = vadd.f32 %v5182_v48, %v6957_v1 }
 0x4ca   : > { %v2957_v62 = vpop.f32.mrf.mxu0 }
 0x4cb   : > { %v2958_v30 = vadd.f32 %v6957_v1, %v2957_v62  ;;  %v7993_v62 = vld [vmem:[#allocation23_spill] sm:$0xff] }
 0x4cc   : > { %v5183_v52 = vpop.f32.mrf.mxu0 }
 0x4cd   : > { %3485 = vmatmul.mubr.bf16.gmra.mxu1 %v3121_v18  ;;  %v7302_v10 = vadd.f32 %v2958_v30, %v7989_v37  ;;  %v2969_v13 = vadd.f32 %v5183_v52, %v6957_v1  ;;  %v7316_v30 = vadd.f32 %v2966_v5, %v7995_v24 }
 0x4ce   : > { %v2960_v36 = vpop.f32.mrf.mxu0  ;;  %3494 = vmatprep.mubr.bf16.mxu1 %v7888_v49 }
 0x4cf   : > { %v2961_v8 = vadd.f32 %v6957_v1, %v2960_v36  ;;  %7990 = vst [vmem:[#allocation15_spill] sm:$0xff] %v7302_v10  ;;  %v7313_v18 = vadd.f32 %v2969_v13, %v7993_v62  ;;  %7996 = vst [vmem:[#allocation20_spill] sm:$0xff] %v7316_v30  ;;  %v7999_v62 = vld [vmem:[#allocation25_spill] sm:$0xff] }
 0x4d1   : > { %v7305_v51 = vadd.f32 %v2961_v8, %v7991_v45  ;;  %7994 = vst [vmem:[#allocation19_spill] sm:$0xff] %v7313_v18  ;;  %v3123_v8 = vpack.c.bf16 %v7313_v18, %v7316_v30 }
 0x4d3   : > { %7992 = vst [vmem:[#allocation17_spill] sm:$0xff] %v7305_v51  ;;  %v3122_v9 = vpack.c.bf16 %v7305_v51, %v7302_v10 }
 0x4d5   : > { %3495 = vmatmul.mubr.bf16.gmra.mxu1 %v3122_v9  ;;  %v7997_v9 = vld [vmem:[#allocation26_spill] sm:$0xff] }
 0x4d6   : > { %3504 = vmatprep.mubr.bf16.mxu1 %v7888_v49 }
 0x4d8   : > { %v5186_v36 = vpop.f32.mrf.mxu0 }
 0x4da   : > { %v2973_v37 = vpop.f32.mrf.mxu0 }
 0x4db   : > { %v2974_v45 = vadd.f32 %v6957_v1, %v2973_v37  ;;  %v4772_v37 = vld [vmem:[%s7775_s6 + $0x2] sm:$0x3] }
 0x4dc   : > { %v5187_v52 = vpop.f32.mrf.mxu0 }
 0x4dd   : > { %3505 = vmatmul.mubr.bf16.gmra.mxu1 %v3123_v8  ;;  %v7324_v13 = vadd.f32 %v2974_v45, %v7997_v9  ;;  %v2985_v5 = vadd.f32 %v5187_v52, %v6957_v1  ;;  %v2982_v8 = vadd.f32 %v5186_v36, %v6957_v1 }
 0x4de   : > { %v2976_v51 = vpop.f32.mrf.mxu0  ;;  %3514 = vmatprep.mubr.bf16.mxu1 %v7888_v49 }
 0x4df   : > { %v2977_v48 = vadd.f32 %v6957_v1, %v2976_v51  ;;  %7998 = vst [vmem:[#allocation22_spill] sm:$0xff] %v7324_v13  ;;  %v8001_v51 = vld [vmem:[#allocation32_spill] sm:$0xff]  ;;  %v7349_v35 = vadd.f32 %v2982_v8, %v8006_v4 }
 0x4e0   : > { %v8002_v30 = vsub.s32 1, %v8001_v51  ;;  %v8005_v52 = vsub.s32 0, %v8001_v51 }
 0x4e1   : > { %v7327_v10 = vadd.f32 %v2977_v48, %v7999_v62  ;;  %v8003_v48 = vld [vmem:[#allocation27_spill] sm:$0xff]  ;;  %8007 = vst [vmem:[#allocation24_spill] sm:$0xff] %v7349_v35 }
 0x4e2   : > { %v7338_v45 = vrot.slane %v4772_v37, %v8002_v30  ;;  %v7342_v9 = vadd.f32 %v2985_v5, %v8003_v48  ;;  %v7346_v62 = vrot.slane %v4772_v37, %v8005_v52 }
 0x4e3   : > { %8000 = vst [vmem:[#allocation21_spill] sm:$0xff] %v7327_v10  ;;  %v3124_v24 = vpack.c.bf16 %v7327_v10, %v7324_v13 }
 0x4e4   : > { %8004 = vst [vmem:[#allocation23_spill] sm:$0xff] %v7342_v9  ;;  %v3125_v58 = vpack.c.bf16 %v7342_v9, %v7349_v35 }
 0x4e5   : > { %v3276_v18 = vpop.f32.mrf.mxu1  ;;  %3515 = vmatmul.mubr.bf16.gmra.mxu1 %v3124_v24 }
 0x4e6   : > { %3524 = vmatprep.mubr.bf16.mxu1 %v7888_v49  ;;  %v3277_v5 = vadd.f32 %v3276_v18, %v7346_v62 }
 0x4e7   : > { %v3278_v13 = vpop.f32.mrf.mxu1 }
 0x4e8   : > { %v5190_v10 = vpop.f32.mrf.mxu0  ;;  %v3279_v24 = vadd.f32 %v3278_v13, %v7338_v45 }
 0x4e9   : > { %v3280_v36 = vpop.f32.mrf.mxu1 }
 0x4ea   : > { %v3281_v30 = vadd.f32 %v3280_v36, %v7346_v62  ;;  %v2989_v26 = vpop.f32.mrf.mxu0  ;;  %v3596_v8 = vmax.f32 %v3279_v24, 0.0  ;;  %v3595_v36 = vmax.f32 %v3277_v5, 0.0 }
 0x4eb   : > { %v3282_v48 = vpop.f32.mrf.mxu1  ;;  %v2990_v15 = vadd.f32 %v6957_v1, %v2989_v26 }
 0x4ec   : > { %v3283_v37 = vadd.f32 %v3282_v48, %v7338_v45  ;;  %v5191_v51 = vpop.f32.mrf.mxu0  ;;  %v3597_v52 = vmax.f32 %v3281_v30, 0.0  ;;  %v8008_v48 = vld [vmem:[#allocation5_spill] sm:$0xff] }
 0x4ed   : > { %v3286_v4 = vpop.f32.mrf.mxu1  ;;  %3525 = vmatmul.mubr.bf16.gmra.mxu1 %v3125_v58  ;;  %v7361_v14 = vadd.f32 %v2990_v15, %v6952_v28 }
 0x4ee   : > { %v3598_v53 = vmax.f32 %v3283_v37, 0.0  ;;  %v2992_v13 = vpop.f32.mrf.mxu0  ;;  %3534 = vmatprep.mubr.bf16.mxu1 %v7888_v49  ;;  %v3723_v18 = vpack.c.bf16 %v3597_v52, %v3595_v36  ;;  %v3001_v37 = vadd.f32 %v5191_v51, %v6957_v1  ;;  %v3287_v5 = vadd.f32 %v3286_v4, %v7346_v62 }
 0x4ef   : > { %v2993_v43 = vadd.f32 %v6957_v1, %v2992_v13  ;;  %v3288_v9 = vpop.f32.mrf.mxu1 }
 0x4f0   : > { %v3724_v35 = vpack.c.bf16 %v3598_v53, %v3596_v8  ;;  %v3289_v58 = vadd.f32 %v3288_v9, %v7338_v45  ;;  %v3599_v51 = vmax.f32 %v3287_v5, 0.0 }
 0x4f1   : > { %v7364_v30 = vadd.f32 %v2993_v43, %v8008_v48  ;;  %v3290_v26 = vpop.f32.mrf.mxu1  ;;  %v2998_v43 = vadd.f32 %v5190_v10, %v6957_v1 }
 0x4f2   : > { %v3291_v24 = vadd.f32 %v3290_v26, %v7346_v62  ;;  %3956 = vmatprep.mubr.bf16.mxu0 %v3724_v35  ;;  %v3600_v9 = vmax.f32 %v3289_v58, 0.0  ;;  %v7376_v35 = vadd.f32 %v3001_v37, %v6988_v21 }
 0x4f3   : > { %v3126_v53 = vpack.c.bf16 %v7364_v30, %v7361_v14  ;;  %v3292_v52 = vpop.f32.mrf.mxu1  ;;  %3957 = vmatmul.mubr.bf16.vlgmr.msra.gmra.mxu0 %v3723_v18  ;;  %v7379_v18 = vadd.f32 %v2998_v43, %v6985_v6 }
 0x4f4   : > { %v3293_v28 = vadd.f32 %v3292_v52, %v7338_v45  ;;  %v3601_v15 = vmax.f32 %v3291_v24, 0.0  ;;  %8009 = vst [vmem:[#allocation26_spill] sm:$0xff] %v7376_v35 }
 0x4f5   : > { %v3296_v8 = vpop.f32.mrf.mxu1  ;;  %3535 = vmatmul.mubr.bf16.gmra.mxu1 %v3126_v53  ;;  %v3127_v53 = vpack.c.bf16 %v7376_v35, %v7379_v18 }
 0x4f6   : > { %v3602_v13 = vmax.f32 %v3293_v28, 0.0  ;;  %3544 = vmatprep.mubr.bf16.mxu1 %v7888_v49  ;;  %v3725_v26 = vpack.c.bf16 %v3601_v15, %v3599_v51  ;;  %v3297_v21 = vadd.f32 %v3296_v8, %v7346_v62 }
 0x4f7   : > { %v3298_v4 = vpop.f32.mrf.mxu1 }
 0x4f8   : > { %v5194_v36 = vpop.f32.mrf.mxu0  ;;  %v3726_v48 = vpack.c.bf16 %v3602_v13, %v3600_v9  ;;  %v3299_v10 = vadd.f32 %v3298_v4, %v7338_v45  ;;  %v3603_v4 = vmax.f32 %v3297_v21, 0.0 }
 0x4f9   : > { %v3300_v52 = vpop.f32.mrf.mxu1 }
 0x4fa   : > { %v3301_v24 = vadd.f32 %v3300_v52, %v7346_v62  ;;  %v3005_v58 = vpop.f32.mrf.mxu0  ;;  %3964 = vmatprep.mubr.bf16.mxu0 %v3726_v48  ;;  %v3604_v9 = vmax.f32 %v3299_v10, 0.0 }
 0x4fb   : > { %v3302_v37 = vpop.f32.mrf.mxu1  ;;  %3965 = vmatmul.mubr.bf16.gmra.mxu0 %v3725_v26  ;;  %v3006_v43 = vadd.f32 %v6957_v1, %v3005_v58 }
 0x4fc   : > { %v3303_v5 = vadd.f32 %v3302_v37, %v7338_v45  ;;  %v5195_v28 = vpop.f32.mrf.mxu0  ;;  %v3605_v6 = vmax.f32 %v3301_v24, 0.0 }
 0x4fd   : > { %v3306_v15 = vpop.f32.mrf.mxu1  ;;  %3545 = vmatmul.mubr.bf16.gmra.mxu1 %v3127_v53  ;;  %v7391_v26 = vadd.f32 %v3006_v43, %v7006_v42  ;;  %v3017_v37 = vadd.f32 %v5195_v28, %v6957_v1 }
 0x4fe   : > { %v3606_v13 = vmax.f32 %v3303_v5, 0.0  ;;  %v3008_v51 = vpop.f32.mrf.mxu0  ;;  %3554 = vmatprep.mubr.bf16.mxu1 %v7888_v49  ;;  %v3727_v35 = vpack.c.bf16 %v3605_v6, %v3603_v4  ;;  %v3307_v21 = vadd.f32 %v3306_v15, %v7346_v62 }
 0x4ff   : > { %v3009_v48 = vadd.f32 %v6957_v1, %v3008_v51  ;;  %v3308_v52 = vpop.f32.mrf.mxu1  ;;  %v7406_v28 = vadd.f32 %v3017_v37, %v7038_v33 }
 0x500   : > { %v3728_v8 = vpack.c.bf16 %v3606_v13, %v3604_v9  ;;  %v3309_v53 = vadd.f32 %v3308_v52, %v7338_v45  ;;  %v3607_v15 = vmax.f32 %v3307_v21, 0.0 }
 0x501   : > { %v7394_v24 = vadd.f32 %v3009_v48, %v7009_v17  ;;  %v3310_v58 = vpop.f32.mrf.mxu1  ;;  %v3014_v17 = vadd.f32 %v5194_v36, %v6957_v1 }
 0x502   : > { %v3311_v10 = vadd.f32 %v3310_v58, %v7346_v62  ;;  %3972 = vmatprep.mubr.bf16.mxu0 %v3728_v8  ;;  %v3608_v13 = vmax.f32 %v3309_v53, 0.0 }
 0x503   : > { %v3128_v5 = vpack.c.bf16 %v7394_v24, %v7391_v26  ;;  %v3312_v6 = vpop.f32.mrf.mxu1  ;;  %3973 = vmatmul.mubr.bf16.gmra.mxu0 %v3727_v35  ;;  %v7409_v35 = vadd.f32 %v3014_v17, %v7035_v50 }
 0x504   : > { %v3313_v42 = vadd.f32 %v3312_v6, %v7338_v45  ;;  %v3609_v43 = vmax.f32 %v3311_v10, 0.0 }
 0x505   : > { %v3316_v9 = vpop.f32.mrf.mxu1  ;;  %3555 = vmatmul.mubr.bf16.gmra.mxu1 %v3128_v5  ;;  %v3129_v5 = vpack.c.bf16 %v7406_v28, %v7409_v35 }
 0x506   : > { %v3610_v51 = vmax.f32 %v3313_v42, 0.0  ;;  %3564 = vmatprep.mubr.bf16.mxu1 %v7888_v49  ;;  %v3729_v8 = vpack.c.bf16 %v3609_v43, %v3607_v15  ;;  %v3317_v33 = vadd.f32 %v3316_v9, %v7346_v62 }
 0x507   : > { %v3318_v4 = vpop.f32.mrf.mxu1 }
 0x508   : > { %v5198_v48 = vpop.f32.mrf.mxu0  ;;  %v3730_v52 = vpack.c.bf16 %v3610_v51, %v3608_v13  ;;  %v3319_v36 = vadd.f32 %v3318_v4, %v7338_v45  ;;  %v3611_v15 = vmax.f32 %v3317_v33, 0.0 }
 0x509   : > { %v3320_v58 = vpop.f32.mrf.mxu1 }
 0x50a   : > { %v3321_v10 = vadd.f32 %v3320_v58, %v7346_v62  ;;  %v3021_v53 = vpop.f32.mrf.mxu0  ;;  %3980 = vmatprep.mubr.bf16.mxu0 %v3730_v52  ;;  %v3612_v43 = vmax.f32 %v3319_v36, 0.0 }
 0x50b   : > { %v3322_v37 = vpop.f32.mrf.mxu1  ;;  %3981 = vmatmul.mubr.bf16.gmra.mxu0 %v3729_v8  ;;  %v3022_v42 = vadd.f32 %v6957_v1, %v3021_v53 }
 0x50c   : > { %v3323_v21 = vadd.f32 %v3322_v37, %v7338_v45  ;;  %v5199_v6 = vpop.f32.mrf.mxu0  ;;  %v3613_v50 = vmax.f32 %v3321_v10, 0.0 }
 0x50d   : > { %v3326_v17 = vpop.f32.mrf.mxu1  ;;  %3565 = vmatmul.mubr.bf16.gmra.mxu1 %v3129_v5  ;;  %v7421_v8 = vadd.f32 %v3022_v42, %v7056_v19  ;;  %v3033_v37 = vadd.f32 %v5199_v6, %v6957_v1 }
 0x50e   : > { %v3614_v13 = vmax.f32 %v3323_v21, 0.0  ;;  %v3024_v51 = vpop.f32.mrf.mxu0  ;;  %3574 = vmatprep.mubr.bf16.mxu1 %v7888_v49  ;;  %v3731_v58 = vpack.c.bf16 %v3613_v50, %v3611_v15  ;;  %v3327_v33 = vadd.f32 %v3326_v17, %v7346_v62 }
 0x50f   : > { %v3025_v4 = vadd.f32 %v6957_v1, %v3024_v51  ;;  %v3328_v52 = vpop.f32.mrf.mxu1  ;;  %v7436_v6 = vadd.f32 %v3033_v37, %v7088_v20 }
 0x510   : > { %v3732_v9 = vpack.c.bf16 %v3614_v13, %v3612_v43  ;;  %v3329_v5 = vadd.f32 %v3328_v52, %v7338_v45  ;;  %v3615_v17 = vmax.f32 %v3327_v33, 0.0 }
 0x511   : > { %v7424_v10 = vadd.f32 %v3025_v4, %v7059_v39  ;;  %v3330_v53 = vpop.f32.mrf.mxu1  ;;  %v3030_v39 = vadd.f32 %v5198_v48, %v6957_v1 }
 0x512   : > { %v3331_v36 = vadd.f32 %v3330_v53, %v7346_v62  ;;  %3988 = vmatprep.mubr.bf16.mxu0 %v3732_v9  ;;  %v3616_v13 = vmax.f32 %v3329_v5, 0.0 }
 0x513   : > { %v3130_v21 = vpack.c.bf16 %v7424_v10, %v7421_v8  ;;  %v3332_v50 = vpop.f32.mrf.mxu1  ;;  %3989 = vmatmul.mubr.bf16.gmra.mxu0 %v3731_v58  ;;  %v7439_v52 = vadd.f32 %v3030_v39, %v7085_v63 }
 0x514   : > { %v3333_v19 = vadd.f32 %v3332_v50, %v7338_v45  ;;  %v3617_v42 = vmax.f32 %v3331_v36, 0.0 }
 0x515   : > { %v3336_v43 = vpop.f32.mrf.mxu1  ;;  %3575 = vmatmul.mubr.bf16.gmra.mxu1 %v3130_v21  ;;  %v3131_v53 = vpack.c.bf16 %v7436_v6, %v7439_v52 }
 0x516   : > { %v3618_v51 = vmax.f32 %v3333_v19, 0.0  ;;  %3584 = vmatprep.mubr.bf16.mxu1 %v7888_v49  ;;  %v3733_v9 = vpack.c.bf16 %v3617_v42, %v3615_v17  ;;  %v3337_v49 = vadd.f32 %v3336_v43, %v7346_v62 }
 0x517   : > { %v3338_v15 = vpop.f32.mrf.mxu1 }
 0x518   : > { %v3734_v4 = vpack.c.bf16 %v3618_v51, %v3616_v13  ;;  %v3339_v1 = vadd.f32 %v3338_v15, %v7338_v45  ;;  %v3619_v21 = vmax.f32 %v3337_v49, 0.0 }
 0x519   : > { %v3340_v58 = vpop.f32.mrf.mxu1 }
 0x51a   : > { %v3341_v48 = vadd.f32 %v3340_v58, %v7346_v62  ;;  %3996 = vmatprep.mubr.bf16.mxu0 %v3734_v4  ;;  %v3620_v63 = vmax.f32 %v3339_v1, 0.0 }
 0x51b   : > { %v3342_v20 = vpop.f32.mrf.mxu1  ;;  %3997 = vmatmul.mubr.bf16.gmra.mxu0 %v3733_v9 }
 0x51c   : > { %v3343_v5 = vadd.f32 %v3342_v20, %v7338_v45  ;;  %v3621_v36 = vmax.f32 %v3341_v48, 0.0 }
 0x51d   : > { %v3346_v37 = vpop.f32.mrf.mxu1  ;;  %3585 = vmatmul.mubr.bf16.gmra.mxu1 %v3131_v53 }
 0x51e   : > { %v3622_v33 = vmax.f32 %v3343_v5, 0.0  ;;  %v3735_v39 = vpack.c.bf16 %v3621_v36, %v3619_v21  ;;  %v3347_v43 = vadd.f32 %v3346_v37, %v7346_v62 }
 0x51f   : > { %v3348_v50 = vpop.f32.mrf.mxu1 }
 0x520   : > { %v3736_v19 = vpack.c.bf16 %v3622_v33, %v3620_v63  ;;  %v3349_v13 = vadd.f32 %v3348_v50, %v7338_v45  ;;  %v3623_v48 = vmax.f32 %v3347_v43, 0.0 }
 0x521   : > { %v3350_v42 = vpop.f32.mrf.mxu1 }
 0x522   : > { %v3351_v51 = vadd.f32 %v3350_v42, %v7346_v62  ;;  %4004 = vmatprep.mubr.bf16.mxu0 %v3736_v19  ;;  %v3624_v58 = vmax.f32 %v3349_v13, 0.0 }
 0x523   : > { %v3352_v17 = vpop.f32.mrf.mxu1  ;;  %4005 = vmatmul.mubr.bf16.gmra.mxu0 %v3735_v39 }
 0x524   : > { %v3353_v15 = vadd.f32 %v3352_v17, %v7338_v45  ;;  %v3625_v4 = vmax.f32 %v3351_v51, 0.0 }
 0x525   : > { %v3356_v9 = vpop.f32.mrf.mxu1 }
 0x526   : > { %v3626_v1 = vmax.f32 %v3353_v15, 0.0  ;;  %v3737_v20 = vpack.c.bf16 %v3625_v4, %v3623_v48  ;;  %v3357_v37 = vadd.f32 %v3356_v9, %v7346_v62 }
 0x527   : > { %v3358_v53 = vpop.f32.mrf.mxu1 }
 0x528   : > { %v3738_v49 = vpack.c.bf16 %v3626_v1, %v3624_v58  ;;  %v3359_v36 = vadd.f32 %v3358_v53, %v7338_v45  ;;  %v3627_v13 = vmax.f32 %v3357_v37, 0.0 }
 0x529   : > { %v3360_v5 = vpop.f32.mrf.mxu1 }
 0x52a   : > { %v3361_v63 = vadd.f32 %v3360_v5, %v7346_v62  ;;  %4012 = vmatprep.mubr.bf16.mxu0 %v3738_v49  ;;  %v3628_v39 = vmax.f32 %v3359_v36, 0.0 }
 0x52b   : > { %v3362_v33 = vpop.f32.mrf.mxu1  ;;  %4013 = vmatmul.mubr.bf16.gmra.mxu0 %v3737_v20 }
 0x52c   : > { %v3363_v21 = vadd.f32 %v3362_v33, %v7338_v45  ;;  %v3629_v50 = vmax.f32 %v3361_v63, 0.0 }
 0x52d   : > { %v3366_v19 = vpop.f32.mrf.mxu1 }
 0x52e   : > { %v3630_v42 = vmax.f32 %v3363_v21, 0.0  ;;  %v3739_v17 = vpack.c.bf16 %v3629_v50, %v3627_v13  ;;  %v3367_v9 = vadd.f32 %v3366_v19, %v7346_v62 }
 0x52f   : > { %v3368_v51 = vpop.f32.mrf.mxu1 }
 0x530   : > { %v3740_v43 = vpack.c.bf16 %v3630_v42, %v3628_v39  ;;  %v3369_v4 = vadd.f32 %v3368_v51, %v7338_v45  ;;  %v3631_v36 = vmax.f32 %v3367_v9, 0.0 }
 0x531   : > { %v3370_v15 = vpop.f32.mrf.mxu1 }
 0x532   : > { %v3371_v58 = vadd.f32 %v3370_v15, %v7346_v62  ;;  %4020 = vmatprep.mubr.bf16.mxu0 %v3740_v43  ;;  %v3632_v20 = vmax.f32 %v3369_v4, 0.0 }
 0x533   : > { %v3372_v1 = vpop.f32.mrf.mxu1  ;;  %4021 = vmatmul.mubr.bf16.gmra.mxu0 %v3739_v17 }
 0x534   : > { %v3373_v48 = vadd.f32 %v3372_v1, %v7338_v45  ;;  %v3633_v53 = vmax.f32 %v3371_v58, 0.0 }
 0x535   : > { %v3376_v49 = vpop.f32.mrf.mxu1 }
 0x536   : > { %v3634_v5 = vmax.f32 %v3373_v48, 0.0  ;;  %v3741_v33 = vpack.c.bf16 %v3633_v53, %v3631_v36  ;;  %v3377_v19 = vadd.f32 %v3376_v49, %v7346_v62 }
 0x537   : > { %v3378_v63 = vpop.f32.mrf.mxu1 }
 0x538   : > { %v3742_v37 = vpack.c.bf16 %v3634_v5, %v3632_v20  ;;  %v3379_v50 = vadd.f32 %v3378_v63, %v7338_v45  ;;  %v3635_v4 = vmax.f32 %v3377_v19, 0.0 }
 0x539   : > { %v3380_v21 = vpop.f32.mrf.mxu1 }
 0x53a   : > { %v3381_v39 = vadd.f32 %v3380_v21, %v7346_v62  ;;  %4028 = vmatprep.mubr.bf16.mxu0 %v3742_v37  ;;  %v3636_v17 = vmax.f32 %v3379_v50, 0.0 }
 0x53b   : > { %v3382_v42 = vpop.f32.mrf.mxu1  ;;  %4029 = vmatmul.mubr.bf16.gmra.mxu0 %v3741_v33 }
 0x53c   : > { %v3383_v13 = vadd.f32 %v3382_v42, %v7338_v45  ;;  %v3637_v51 = vmax.f32 %v3381_v39, 0.0 }
 0x53d   : > { %v3386_v43 = vpop.f32.mrf.mxu1 }
 0x53e   : > { %v3638_v15 = vmax.f32 %v3383_v13, 0.0  ;;  %v3743_v1 = vpack.c.bf16 %v3637_v51, %v3635_v4  ;;  %v3387_v49 = vadd.f32 %v3386_v43, %v7346_v62 }
 0x53f   : > { %v3388_v58 = vpop.f32.mrf.mxu1 }
 0x540   : > { %v3744_v9 = vpack.c.bf16 %v3638_v15, %v3636_v17  ;;  %v3389_v53 = vadd.f32 %v3388_v58, %v7338_v45  ;;  %v3639_v50 = vmax.f32 %v3387_v49, 0.0  ;;  %v7866_v49 = vmov 0.0  }
 0x541   : > { %v3390_v48 = vpop.f32.mrf.mxu1  ;;  %5200 = vmatprep.subr.bf16.mxu1 %v7866_v49 }
 0x542   : > { %v3391_v20 = vadd.f32 %v3390_v48, %v7346_v62  ;;  %4036 = vmatprep.mubr.bf16.mxu0 %v3744_v9  ;;  %v3640_v33 = vmax.f32 %v3389_v53, 0.0 }
 0x543   : > { %v3392_v5 = vpop.f32.mrf.mxu1  ;;  %4037 = vmatmul.mubr.bf16.gmra.mxu0 %v3743_v1 }
 0x544   : > { %v3393_v36 = vadd.f32 %v3392_v5, %v7338_v45  ;;  %v3641_v63 = vmax.f32 %v3391_v20, 0.0 }
 0x545   : > { %v3396_v37 = vpop.f32.mrf.mxu1 }
 0x546   : > { %v3642_v21 = vmax.f32 %v3393_v36, 0.0  ;;  %v3745_v42 = vpack.c.bf16 %v3641_v63, %v3639_v50  ;;  %v3397_v43 = vadd.f32 %v3396_v37, %v7346_v62  ;;  %v5393_v36 = vld [vmem:[%s7778_s9 + $0x38] sm:$0xff]  }
 0x547   : > { %v3398_v39 = vpop.f32.mrf.mxu1  ;;  %5201 = vmatpush3.bf16.msra.mxu1 %v5393_v36 }
 0x548   : > { %v3746_v19 = vpack.c.bf16 %v3642_v21, %v3640_v33  ;;  %v3399_v51 = vadd.f32 %v3398_v39, %v7338_v45  ;;  %v3643_v53 = vmax.f32 %v3397_v43, 0.0  ;;  %5202 = vmatprep.subr.bf16.mxu1 %v7866_v49 }
 0x549   : > { %v3400_v13 = vpop.f32.mrf.mxu1 }
 0x54a   : > { %v3401_v17 = vadd.f32 %v3400_v13, %v7346_v62  ;;  %4044 = vmatprep.mubr.bf16.mxu0 %v3746_v19  ;;  %v3644_v1 = vmax.f32 %v3399_v51, 0.0 }
 0x54b   : > { %v3402_v15 = vpop.f32.mrf.mxu1  ;;  %4045 = vmatmul.mubr.bf16.gmra.mxu0 %v3745_v42 }
 0x54c   : > { %v3403_v4 = vadd.f32 %v3402_v15, %v7338_v45  ;;  %v3645_v58 = vmax.f32 %v3401_v17, 0.0 }
 0x54d   : > { %v3406_v9 = vpop.f32.mrf.mxu1 }
 0x54e   : > { %v3646_v48 = vmax.f32 %v3403_v4, 0.0  ;;  %v3747_v63 = vpack.c.bf16 %v3645_v58, %v3643_v53  ;;  %v3407_v50 = vadd.f32 %v3406_v9, %v7346_v62 }
 0x54f   : > { %v3408_v20 = vpop.f32.mrf.mxu1 }
 0x550   : > { %v3748_v5 = vpack.c.bf16 %v3646_v48, %v3644_v1  ;;  %v3409_v33 = vadd.f32 %v3408_v20, %v7338_v45  ;;  %v3647_v43 = vmax.f32 %v3407_v50, 0.0 }
 0x551   : > { %v3410_v37 = vpop.f32.mrf.mxu1 }
 0x552   : > { %v3411_v21 = vadd.f32 %v3410_v37, %v7346_v62  ;;  %4052 = vmatprep.mubr.bf16.mxu0 %v3748_v5  ;;  %v3648_v51 = vmax.f32 %v3409_v33, 0.0 }
 0x553   : > { %v3412_v39 = vpop.f32.mrf.mxu1  ;;  %4053 = vmatmul.mubr.bf16.gmra.mxu0 %v3747_v63 }
 0x554   : > { %v3413_v19 = vadd.f32 %v3412_v39, %v7338_v45  ;;  %v3649_v42 = vmax.f32 %v3411_v21, 0.0 }
 0x555   : > { %v3416_v13 = vpop.f32.mrf.mxu1 }
 0x556   : > { %v3650_v17 = vmax.f32 %v3413_v19, 0.0  ;;  %v3749_v58 = vpack.c.bf16 %v3649_v42, %v3647_v43  ;;  %v3417_v9 = vadd.f32 %v3416_v13, %v7346_v62 }
 0x557   : > { %v3418_v15 = vpop.f32.mrf.mxu1 }
 0x558   : > { %v3750_v4 = vpack.c.bf16 %v3650_v17, %v3648_v51  ;;  %v3419_v48 = vadd.f32 %v3418_v15, %v7338_v45  ;;  %v3651_v21 = vmax.f32 %v3417_v9, 0.0 }
 0x559   : > { %v3420_v1 = vpop.f32.mrf.mxu1 }
 0x55a   : > { %v3421_v53 = vadd.f32 %v3420_v1, %v7346_v62  ;;  %4060 = vmatprep.mubr.bf16.mxu0 %v3750_v4  ;;  %v3652_v37 = vmax.f32 %v3419_v48, 0.0 }
 0x55b   : > { %v3422_v20 = vpop.f32.mrf.mxu1  ;;  %4061 = vmatmul.mubr.bf16.gmra.mxu0 %v3749_v58 }
 0x55c   : > { %v3423_v5 = vadd.f32 %v3422_v20, %v7338_v45  ;;  %v3653_v36 = vmax.f32 %v3421_v53, 0.0 }
 0x55d   : > { %v3426_v63 = vpop.f32.mrf.mxu1 }
 0x55e   : > { %v3654_v33 = vmax.f32 %v3423_v5, 0.0  ;;  %v3751_v19 = vpack.c.bf16 %v3653_v36, %v3651_v21  ;;  %v3427_v13 = vadd.f32 %v3426_v63, %v7346_v62 }
 0x55f   : > { %v3428_v50 = vpop.f32.mrf.mxu1 }
 0x560   : > { %v3752_v39 = vpack.c.bf16 %v3654_v33, %v3652_v37  ;;  %v3429_v51 = vadd.f32 %v3428_v50, %v7338_v45  ;;  %v3655_v53 = vmax.f32 %v3427_v13, 0.0 }
 0x561   : > { %v3430_v42 = vpop.f32.mrf.mxu1 }
 0x562   : > { %v3431_v17 = vadd.f32 %v3430_v42, %v7346_v62  ;;  %4068 = vmatprep.mubr.bf16.mxu0 %v3752_v39  ;;  %v3656_v1 = vmax.f32 %v3429_v51, 0.0 }
 0x563   : > { %v3432_v43 = vpop.f32.mrf.mxu1  ;;  %4069 = vmatmul.mubr.bf16.gmra.mxu0 %v3751_v19 }
 0x564   : > { %v3433_v15 = vadd.f32 %v3432_v43, %v7338_v45  ;;  %v3657_v4 = vmax.f32 %v3431_v17, 0.0 }
 0x565   : > { %v3436_v58 = vpop.f32.mrf.mxu1 }
 0x566   : > { %v3658_v48 = vmax.f32 %v3433_v15, 0.0  ;;  %v3753_v5 = vpack.c.bf16 %v3657_v4, %v3655_v53  ;;  %v3437_v63 = vadd.f32 %v3436_v58, %v7346_v62  ;;  %v5394_v15 = vld [vmem:[%s7778_s9 + $0x30] sm:$0xff]  }
 0x567   : > { %v3438_v9 = vpop.f32.mrf.mxu1  ;;  %5203 = vmatpush3.bf16.msra.mxu1 %v5394_v15 }
 0x568   : > { %v3754_v20 = vpack.c.bf16 %v3658_v48, %v3656_v1  ;;  %v3439_v37 = vadd.f32 %v3438_v9, %v7338_v45  ;;  %v3659_v17 = vmax.f32 %v3437_v63, 0.0  ;;  %5204 = vmatprep.subr.bf16.mxu1 %v7866_v49 }
 0x569   : > { %v3440_v36 = vpop.f32.mrf.mxu1 }
 0x56a   : > { %v3441_v33 = vadd.f32 %v3440_v36, %v7346_v62  ;;  %4076 = vmatprep.mubr.bf16.mxu0 %v3754_v20  ;;  %v3660_v42 = vmax.f32 %v3439_v37, 0.0 }
 0x56b   : > { %v3442_v21 = vpop.f32.mrf.mxu1  ;;  %4077 = vmatmul.mubr.bf16.gmra.mxu0 %v3753_v5 }
 0x56c   : > { %v3443_v50 = vadd.f32 %v3442_v21, %v7338_v45  ;;  %v3661_v39 = vmax.f32 %v3441_v33, 0.0 }
 0x56d   : > { %v3446_v19 = vpop.f32.mrf.mxu1 }
 0x56e   : > { %v3662_v51 = vmax.f32 %v3443_v50, 0.0  ;;  %v3755_v4 = vpack.c.bf16 %v3661_v39, %v3659_v17  ;;  %v3447_v53 = vadd.f32 %v3446_v19, %v7346_v62 }
 0x56f   : > { %v3448_v13 = vpop.f32.mrf.mxu1 }
 0x570   : > { %v3756_v43 = vpack.c.bf16 %v3662_v51, %v3660_v42  ;;  %v3449_v48 = vadd.f32 %v3448_v13, %v7338_v45  ;;  %v3663_v63 = vmax.f32 %v3447_v53, 0.0 }
 0x571   : > { %v3450_v1 = vpop.f32.mrf.mxu1 }
 0x572   : > { %v3451_v58 = vadd.f32 %v3450_v1, %v7346_v62  ;;  %4084 = vmatprep.mubr.bf16.mxu0 %v3756_v43  ;;  %v3664_v37 = vmax.f32 %v3449_v48, 0.0 }
 0x573   : > { %v3452_v9 = vpop.f32.mrf.mxu1  ;;  %4085 = vmatmul.mubr.bf16.gmra.mxu0 %v3755_v4 }
 0x574   : > { %v3453_v20 = vadd.f32 %v3452_v9, %v7338_v45  ;;  %v3665_v5 = vmax.f32 %v3451_v58, 0.0 }
 0x575   : > { %v3456_v36 = vpop.f32.mrf.mxu1 }
 0x576   : > { %v3666_v33 = vmax.f32 %v3453_v20, 0.0  ;;  %v3757_v39 = vpack.c.bf16 %v3665_v5, %v3663_v63  ;;  %v3457_v19 = vadd.f32 %v3456_v36, %v7346_v62 }
 0x577   : > { %v3458_v21 = vpop.f32.mrf.mxu1 }
 0x578   : > { %v3758_v50 = vpack.c.bf16 %v3666_v33, %v3664_v37  ;;  %v3459_v51 = vadd.f32 %v3458_v21, %v7338_v45  ;;  %v3667_v58 = vmax.f32 %v3457_v19, 0.0 }
 0x579   : > { %v3460_v42 = vpop.f32.mrf.mxu1 }
 0x57a   : > { %v3461_v17 = vadd.f32 %v3460_v42, %v7346_v62  ;;  %4092 = vmatprep.mubr.bf16.mxu0 %v3758_v50  ;;  %v3668_v1 = vmax.f32 %v3459_v51, 0.0 }
 0x57b   : > { %v3462_v13 = vpop.f32.mrf.mxu1  ;;  %4093 = vmatmul.mubr.bf16.gmra.mxu0 %v3757_v39 }
 0x57c   : > { %v3463_v43 = vadd.f32 %v3462_v13, %v7338_v45  ;;  %v3669_v15 = vmax.f32 %v3461_v17, 0.0 }
 0x57d   : > { %v3466_v4 = vpop.f32.mrf.mxu1 }
 0x57e   : > { %v3670_v48 = vmax.f32 %v3463_v43, 0.0  ;;  %v3759_v20 = vpack.c.bf16 %v3669_v15, %v3667_v58  ;;  %v3467_v36 = vadd.f32 %v3466_v4, %v7346_v62 }
 0x57f   : > { %v3468_v53 = vpop.f32.mrf.mxu1 }
 0x580   : > { %v3760_v9 = vpack.c.bf16 %v3670_v48, %v3668_v1  ;;  %v3469_v37 = vadd.f32 %v3468_v53, %v7338_v45  ;;  %v3671_v17 = vmax.f32 %v3467_v36, 0.0 }
 0x581   : > { %v3470_v5 = vpop.f32.mrf.mxu1 }
 0x582   : > { %v3471_v33 = vadd.f32 %v3470_v5, %v7346_v62  ;;  %4100 = vmatprep.mubr.bf16.mxu0 %v3760_v9  ;;  %v3672_v42 = vmax.f32 %v3469_v37, 0.0 }
 0x583   : > { %v3472_v63 = vpop.f32.mrf.mxu1  ;;  %4101 = vmatmul.mubr.bf16.gmra.mxu0 %v3759_v20 }
 0x584   : > { %v3473_v21 = vadd.f32 %v3472_v63, %v7338_v45  ;;  %v3673_v50 = vmax.f32 %v3471_v33, 0.0 }
 0x585   : > { %v3476_v39 = vpop.f32.mrf.mxu1 }
 0x586   : > { %v3674_v51 = vmax.f32 %v3473_v21, 0.0  ;;  %v3761_v43 = vpack.c.bf16 %v3673_v50, %v3671_v17  ;;  %v3477_v4 = vadd.f32 %v3476_v39, %v7346_v62  ;;  %v5395_v21 = vld [vmem:[%s7778_s9 + $0x28] sm:$0xff]  }
 0x587   : > { %v3478_v19 = vpop.f32.mrf.mxu1  ;;  %5205 = vmatpush3.bf16.msra.mxu1 %v5395_v21 }
 0x588   : > { %v3762_v13 = vpack.c.bf16 %v3674_v51, %v3672_v42  ;;  %v3479_v1 = vadd.f32 %v3478_v19, %v7338_v45  ;;  %v3675_v33 = vmax.f32 %v3477_v4, 0.0  ;;  %5206 = vmatprep.subr.bf16.mxu1 %v7866_v49 }
 0x589   : > { %v3480_v15 = vpop.f32.mrf.mxu1 }
 0x58a   : > { %v3481_v48 = vadd.f32 %v3480_v15, %v7346_v62  ;;  %4108 = vmatprep.mubr.bf16.mxu0 %v3762_v13  ;;  %v3676_v5 = vmax.f32 %v3479_v1, 0.0 }
 0x58b   : > { %v3482_v58 = vpop.f32.mrf.mxu1  ;;  %4109 = vmatmul.mubr.bf16.gmra.mxu0 %v3761_v43 }
 0x58c   : > { %v3483_v53 = vadd.f32 %v3482_v58, %v7338_v45  ;;  %v3677_v9 = vmax.f32 %v3481_v48, 0.0 }
 0x58d   : > { %v3486_v20 = vpop.f32.mrf.mxu1 }
 0x58e   : > { %v3678_v37 = vmax.f32 %v3483_v53, 0.0  ;;  %v3763_v50 = vpack.c.bf16 %v3677_v9, %v3675_v33  ;;  %v3487_v17 = vadd.f32 %v3486_v20, %v7346_v62 }
 0x58f   : > { %v3488_v36 = vpop.f32.mrf.mxu1 }
 0x590   : > { %v3764_v63 = vpack.c.bf16 %v3678_v37, %v3676_v5  ;;  %v3489_v51 = vadd.f32 %v3488_v36, %v7338_v45  ;;  %v3679_v4 = vmax.f32 %v3487_v17, 0.0 }
 0x591   : > { %v3490_v42 = vpop.f32.mrf.mxu1 }
 0x592   : > { %v3491_v39 = vadd.f32 %v3490_v42, %v7346_v62  ;;  %4116 = vmatprep.mubr.bf16.mxu0 %v3764_v63  ;;  %v3680_v1 = vmax.f32 %v3489_v51, 0.0 }
 0x593   : > { %v3492_v19 = vpop.f32.mrf.mxu1  ;;  %4117 = vmatmul.mubr.bf16.gmra.mxu0 %v3763_v50 }
 0x594   : > { %v3493_v13 = vadd.f32 %v3492_v19, %v7338_v45  ;;  %v3681_v43 = vmax.f32 %v3491_v39, 0.0 }
 0x595   : > { %v3496_v15 = vpop.f32.mrf.mxu1 }
 0x596   : > { %v3682_v48 = vmax.f32 %v3493_v13, 0.0  ;;  %v3765_v9 = vpack.c.bf16 %v3681_v43, %v3679_v4  ;;  %v3497_v20 = vadd.f32 %v3496_v15, %v7346_v62 }
 0x597   : > { %v3498_v58 = vpop.f32.mrf.mxu1 }
 0x598   : > { %v3766_v53 = vpack.c.bf16 %v3682_v48, %v3680_v1  ;;  %v3499_v37 = vadd.f32 %v3498_v58, %v7338_v45  ;;  %v3683_v39 = vmax.f32 %v3497_v20, 0.0 }
 0x599   : > { %v3500_v5 = vpop.f32.mrf.mxu1 }
 0x59a   : > { %v3501_v33 = vadd.f32 %v3500_v5, %v7346_v62  ;;  %4124 = vmatprep.mubr.bf16.mxu0 %v3766_v53  ;;  %v3684_v42 = vmax.f32 %v3499_v37, 0.0 }
 0x59b   : > { %v3502_v36 = vpop.f32.mrf.mxu1  ;;  %4125 = vmatmul.mubr.bf16.gmra.mxu0 %v3765_v9 }
 0x59c   : > { %v3503_v63 = vadd.f32 %v3502_v36, %v7338_v45  ;;  %v3685_v21 = vmax.f32 %v3501_v33, 0.0 }
 0x59d   : > { %v3506_v50 = vpop.f32.mrf.mxu1 }
 0x59e   : > { %v3686_v51 = vmax.f32 %v3503_v63, 0.0  ;;  %v3767_v13 = vpack.c.bf16 %v3685_v21, %v3683_v39  ;;  %v3507_v15 = vadd.f32 %v3506_v50, %v7346_v62 }
 0x59f   : > { %v3508_v17 = vpop.f32.mrf.mxu1 }
 0x5a0   : > { %v3768_v19 = vpack.c.bf16 %v3686_v51, %v3684_v42  ;;  %v3509_v1 = vadd.f32 %v3508_v17, %v7338_v45  ;;  %v3687_v33 = vmax.f32 %v3507_v15, 0.0 }
 0x5a1   : > { %v3510_v43 = vpop.f32.mrf.mxu1 }
 0x5a2   : > { %v3511_v48 = vadd.f32 %v3510_v43, %v7346_v62  ;;  %4132 = vmatprep.mubr.bf16.mxu0 %v3768_v19  ;;  %v3688_v5 = vmax.f32 %v3509_v1, 0.0 }
 0x5a3   : > { %v3512_v4 = vpop.f32.mrf.mxu1  ;;  %4133 = vmatmul.mubr.bf16.gmra.mxu0 %v3767_v13 }
 0x5a4   : > { %v3513_v58 = vadd.f32 %v3512_v4, %v7338_v45  ;;  %v3689_v53 = vmax.f32 %v3511_v48, 0.0 }
 0x5a5   : > { %v3516_v9 = vpop.f32.mrf.mxu1 }
 0x5a6   : > { %v3690_v37 = vmax.f32 %v3513_v58, 0.0  ;;  %v3769_v63 = vpack.c.bf16 %v3689_v53, %v3687_v33  ;;  %v3517_v50 = vadd.f32 %v3516_v9, %v7346_v62  ;;  %v5396_v58 = vld [vmem:[%s7778_s9 + $0x20] sm:$0xff]  }
 0x5a7   : > { %v3518_v20 = vpop.f32.mrf.mxu1  ;;  %5207 = vmatpush3.bf16.msra.mxu1 %v5396_v58 }
 0x5a8   : > { %v3770_v36 = vpack.c.bf16 %v3690_v37, %v3688_v5  ;;  %v3519_v42 = vadd.f32 %v3518_v20, %v7338_v45  ;;  %v3691_v48 = vmax.f32 %v3517_v50, 0.0  ;;  %5208 = vmatprep.subr.bf16.mxu1 %v7866_v49 }
 0x5a9   : > { %v3520_v21 = vpop.f32.mrf.mxu1 }
 0x5aa   : > { %v3521_v51 = vadd.f32 %v3520_v21, %v7346_v62  ;;  %4140 = vmatprep.mubr.bf16.mxu0 %v3770_v36  ;;  %v3692_v43 = vmax.f32 %v3519_v42, 0.0  ;;  %v7541_v36 = vld [vmem:[%s7777_s8 + $0x1] ss:$0 sm:$0xff] }
 0x5ab   : > { %v3522_v39 = vpop.f32.mrf.mxu1  ;;  %4141 = vmatmul.mubr.bf16.gmra.mxu0 %v3769_v63 }
 0x5ac   : > { %v3523_v17 = vadd.f32 %v3522_v39, %v7338_v45  ;;  %v3693_v19 = vmax.f32 %v3521_v51, 0.0 }
 0x5ad   : > { %v3526_v13 = vpop.f32.mrf.mxu1 }
 0x5ae   : > { %v3694_v1 = vmax.f32 %v3523_v17, 0.0  ;;  %v3771_v53 = vpack.c.bf16 %v3693_v19, %v3691_v48  ;;  %v3527_v33 = vadd.f32 %v3526_v13, %v7346_v62 }
 0x5af   : > { %v3528_v15 = vpop.f32.mrf.mxu1 }
 0x5b0   : > { %v3772_v4 = vpack.c.bf16 %v3694_v1, %v3692_v43  ;;  %v3529_v37 = vadd.f32 %v3528_v15, %v7338_v45  ;;  %v3695_v13 = vmax.f32 %v3527_v33, 0.0 }
 0x5b1   : > { %v3530_v5 = vpop.f32.mrf.mxu1 }
 0x5b2   : > { %v3531_v9 = vadd.f32 %v3530_v5, %v7346_v62  ;;  %4148 = vmatprep.mubr.bf16.mxu0 %v3772_v4  ;;  %v3696_v39 = vmax.f32 %v3529_v37, 0.0 }
 0x5b3   : > { %v3532_v20 = vpop.f32.mrf.mxu1  ;;  %v3958_v63 = vpop.f32.mrf.mxu0  ;;  %4149 = vmatmul.mubr.bf16.gmra.mxu0 %v3771_v53 }
 0x5b4   : > { %v3533_v21 = vadd.f32 %v3532_v20, %v7338_v45  ;;  %v3697_v42 = vmax.f32 %v3531_v9, 0.0  ;;  %v3959_v19 = vadd.f32 %v7541_v36, %v3958_v63  ;;  %v8010_v9 = vld [vmem:[#allocation6_spill] sm:$0xff] }
 0x5b5   : > { %v3536_v51 = vpop.f32.mrf.mxu1  ;;  %v3960_v50 = vpop.f32.mrf.mxu0 }
 0x5b6   : > { %v3698_v17 = vmax.f32 %v3533_v21, 0.0  ;;  %v3773_v4 = vpack.c.bf16 %v3697_v42, %v3695_v13  ;;  %v4213_v5 = vadd.f32 %v3959_v19, %v6972_v47  ;;  %v3537_v63 = vadd.f32 %v3536_v51, %v7346_v62 }
 0x5b7   : > { %v3538_v43 = vpop.f32.mrf.mxu1  ;;  %v3961_v1 = vpop.f32.mrf.mxu0 }
 0x5b8   : > { %v3774_v48 = vpack.c.bf16 %v3698_v17, %v3696_v39  ;;  %v3962_v15 = vadd.f32 %v7541_v36, %v3961_v1  ;;  %v3539_v20 = vadd.f32 %v3538_v43, %v7338_v45 }
 0x5b9   : > { %v3540_v58 = vpop.f32.mrf.mxu1  ;;  %v3963_v53 = vpop.f32.mrf.mxu0 }
 0x5ba   : > { %v4214_v49 = vadd.f32 %v3962_v15, %v8010_v9  ;;  %v3541_v37 = vadd.f32 %v3540_v58, %v7346_v62  ;;  %4156 = vmatprep.mubr.bf16.mxu0 %v3774_v48  ;;  %v3700_v19 = vmax.f32 %v3539_v20, 0.0  ;;  %v3699_v15 = vmax.f32 %v3537_v63, 0.0 }
 0x5bb   : > { %v3542_v33 = vpop.f32.mrf.mxu1  ;;  %v3966_v21 = vpop.f32.mrf.mxu0  ;;  %4157 = vmatmul.mubr.bf16.gmra.mxu0 %v3773_v4 }
 0x5bc   : > { %v4277_v50 = vadd.f32 %v4214_v49, %v4213_v5  ;;  %v3543_v39 = vadd.f32 %v3542_v33, %v7338_v45  ;;  %v3967_v42 = vadd.f32 %v7541_v36, %v3966_v21  ;;  %v3701_v17 = vmax.f32 %v3541_v37, 0.0 }
 0x5bd   : > { %v3546_v13 = vpop.f32.mrf.mxu1  ;;  %v3968_v47 = vpop.f32.mrf.mxu0 }
 0x5be   : > { %v3702_v43 = vmax.f32 %v3543_v39, 0.0  ;;  %v4215_v1 = vadd.f32 %v3967_v42, %v7000_v27  ;;  %v3775_v9 = vpack.c.bf16 %v3701_v17, %v3699_v15  ;;  %v3547_v20 = vadd.f32 %v3546_v13, %v7346_v62  ;;  %v8011_v15 = vld [vmem:[#allocation30_spill] sm:$0xff] }
 0x5bf   : > { %v3548_v58 = vpop.f32.mrf.mxu1  ;;  %v3969_v48 = vpop.f32.mrf.mxu0 }
 0x5c0   : > { %v3776_v53 = vpack.c.bf16 %v3702_v43, %v3700_v19  ;;  %v4278_v51 = vadd.f32 %v4277_v50, %v4215_v1  ;;  %v3970_v4 = vadd.f32 %v7541_v36, %v3969_v48  ;;  %v3549_v33 = vadd.f32 %v3548_v58, %v7338_v45 }
 0x5c1   : > { %v3550_v49 = vpop.f32.mrf.mxu1  ;;  %v3971_v5 = vpop.f32.mrf.mxu0  ;;  %v3703_v48 = vmax.f32 %v3547_v20, 0.0 }
 0x5c2   : > { %v3551_v37 = vadd.f32 %v3550_v49, %v7346_v62  ;;  %4164 = vmatprep.mubr.bf16.mxu0 %v3776_v53  ;;  %v4216_v21 = vadd.f32 %v3970_v4, %v6996_v29  ;;  %v3704_v43 = vmax.f32 %v3549_v33, 0.0 }
 0x5c3   : > { %v3552_v27 = vpop.f32.mrf.mxu1  ;;  %v3974_v63 = vpop.f32.mrf.mxu0  ;;  %4165 = vmatmul.mubr.bf16.gmra.mxu0 %v3775_v9 }
 0x5c4   : > { %v3553_v39 = vadd.f32 %v3552_v27, %v7338_v45  ;;  %v3975_v50 = vadd.f32 %v7541_v36, %v3974_v63  ;;  %v4279_v42 = vadd.f32 %v4278_v51, %v4216_v21  ;;  %v3705_v17 = vmax.f32 %v3551_v37, 0.0  ;;  %v8012_v37 = vld [vmem:[#allocation29_spill] sm:$0xff] }
 0x5c5   : > { %v3556_v47 = vpop.f32.mrf.mxu1  ;;  %v3976_v19 = vpop.f32.mrf.mxu0 }
 0x5c6   : > { %v3706_v1 = vmax.f32 %v3553_v39, 0.0  ;;  %v4217_v58 = vadd.f32 %v3975_v50, %v8011_v15  ;;  %v3777_v4 = vpack.c.bf16 %v3705_v17, %v3703_v48  ;;  %v3557_v33 = vadd.f32 %v3556_v47, %v7346_v62 }
 0x5c7   : > { %v3558_v53 = vpop.f32.mrf.mxu1  ;;  %v3977_v13 = vpop.f32.mrf.mxu0 }
 0x5c8   : > { %v3778_v49 = vpack.c.bf16 %v3706_v1, %v3704_v43  ;;  %v4280_v29 = vadd.f32 %v4279_v42, %v4217_v58  ;;  %v3978_v9 = vadd.f32 %v7541_v36, %v3977_v13  ;;  %v3559_v63 = vadd.f32 %v3558_v53, %v7338_v45 }
 0x5c9   : > { %v3560_v5 = vpop.f32.mrf.mxu1  ;;  %v3979_v27 = vpop.f32.mrf.mxu0  ;;  %v3707_v53 = vmax.f32 %v3557_v33, 0.0  ;;  %v8013_v33 = vld [vmem:[#allocation7_spill] sm:$0xff] }
 0x5ca   : > { %v3561_v51 = vadd.f32 %v3560_v5, %v7346_v62  ;;  %4172 = vmatprep.mubr.bf16.mxu0 %v3778_v49  ;;  %v4218_v21 = vadd.f32 %v3978_v9, %v8012_v37  ;;  %v3708_v15 = vmax.f32 %v3559_v63, 0.0 }
 0x5cb   : > { %v3562_v39 = vpop.f32.mrf.mxu1  ;;  %v3982_v20 = vpop.f32.mrf.mxu0  ;;  %4173 = vmatmul.mubr.bf16.gmra.mxu0 %v3777_v4  ;;  %v5397_v4 = vld [vmem:[%s7778_s9 + $0x18] sm:$0xff]  }
 0x5cc   : > { %v3563_v50 = vadd.f32 %v3562_v39, %v7338_v45  ;;  %v3983_v42 = vadd.f32 %v7541_v36, %v3982_v20  ;;  %v4281_v17 = vadd.f32 %v4280_v29, %v4218_v21  ;;  %v3709_v19 = vmax.f32 %v3561_v51, 0.0  ;;  %5209 = vmatpush3.bf16.msra.mxu1 %v5397_v4 }
 0x5cd   : > { %v3566_v43 = vpop.f32.mrf.mxu1  ;;  %v3984_v1 = vpop.f32.mrf.mxu0 }
 0x5ce   : > { %v3710_v58 = vmax.f32 %v3563_v50, 0.0  ;;  %v4219_v48 = vadd.f32 %v3983_v42, %v7050_v56  ;;  %v3779_v5 = vpack.c.bf16 %v3709_v19, %v3707_v53  ;;  %v3567_v56 = vadd.f32 %v3566_v43, %v7346_v62 }
 0x5cf   : > { %v3568_v13 = vpop.f32.mrf.mxu1  ;;  %v3985_v47 = vpop.f32.mrf.mxu0  ;;  %v8014_v50 = vmov 0.0  }
 0x5d0   : > { %v3780_v49 = vpack.c.bf16 %v3710_v58, %v3708_v15  ;;  %v4282_v9 = vadd.f32 %v4281_v17, %v4219_v48  ;;  %v3986_v27 = vadd.f32 %v7541_v36, %v3985_v47  ;;  %v3569_v37 = vadd.f32 %v3568_v13, %v7338_v45  ;;  %5210 = vmatprep.subr.bf16.mxu1 %v8014_v50 }
 0x5d1   : > { %v3570_v29 = vpop.f32.mrf.mxu1  ;;  %v3987_v51 = vpop.f32.mrf.mxu0  ;;  %v3711_v13 = vmax.f32 %v3567_v56, 0.0  ;;  %5216 = vmatprep.mubr.msk.bf16.mxu1 %vm5465_vm4, %v8014_v50 }
 0x5d2   : > { %v3571_v63 = vadd.f32 %v3570_v29, %v7346_v62  ;;  %4180 = vmatprep.mubr.bf16.mxu0 %v3780_v49  ;;  %v4220_v21 = vadd.f32 %v3986_v27, %v8013_v33  ;;  %v3712_v58 = vmax.f32 %v3569_v37, 0.0 }
 0x5d3   : > { %v3572_v39 = vpop.f32.mrf.mxu1  ;;  %v3990_v20 = vpop.f32.mrf.mxu0  ;;  %4181 = vmatmul.mubr.bf16.gmra.mxu0 %v3779_v5 }
 0x5d4   : > { %v3573_v42 = vadd.f32 %v3572_v39, %v7338_v45  ;;  %v7581_v17 = vadd.f32 %v4282_v9, %v4220_v21  ;;  %v3713_v19 = vmax.f32 %v3571_v63, 0.0  ;;  %v3991_v53 = vadd.f32 %v7541_v36, %v3990_v20 }
 0x5d5   : > { %v3576_v1 = vpop.f32.mrf.mxu1  ;;  %v3992_v15 = vpop.f32.mrf.mxu0 }
 0x5d6   : > { %v3714_v48 = vmax.f32 %v3573_v42, 0.0  ;;  %v3781_v5 = vpack.c.bf16 %v3713_v19, %v3711_v13  ;;  %v4221_v51 = vadd.f32 %v3991_v53, %v7072_v44  ;;  %v3577_v33 = vadd.f32 %v3576_v1, %v7346_v62 }
 0x5d7   : > { %v3578_v43 = vpop.f32.mrf.mxu1  ;;  %v3993_v47 = vpop.f32.mrf.mxu0 }
 0x5d8   : > { %v3782_v49 = vpack.c.bf16 %v3714_v48, %v3712_v58  ;;  %v3994_v4 = vadd.f32 %v7541_v36, %v3993_v47  ;;  %v3579_v9 = vadd.f32 %v3578_v43, %v7338_v45  ;;  %v3715_v53 = vmax.f32 %v3577_v33, 0.0 }
 0x5d9   : > { %v3580_v27 = vpop.f32.mrf.mxu1  ;;  %v3995_v29 = vpop.f32.mrf.mxu0 }
 0x5da   : > { %v4222_v63 = vadd.f32 %v3994_v4, %v7075_v16  ;;  %v3581_v37 = vadd.f32 %v3580_v27, %v7346_v62  ;;  %4188 = vmatprep.mubr.bf16.mxu0 %v3782_v49  ;;  %v3716_v58 = vmax.f32 %v3579_v9, 0.0 }
 0x5db   : > { %v3582_v56 = vpop.f32.mrf.mxu1  ;;  %v3998_v21 = vpop.f32.mrf.mxu0  ;;  %4189 = vmatmul.mubr.bf16.gmra.mxu0 %v3781_v5 }
 0x5dc   : > { %v4290_v39 = vadd.f32 %v4222_v63, %v4221_v51  ;;  %v3583_v20 = vadd.f32 %v3582_v56, %v7338_v45  ;;  %v3999_v42 = vadd.f32 %v7541_v36, %v3998_v21  ;;  %v3717_v19 = vmax.f32 %v3581_v37, 0.0 }
 0x5dd   : > { %v3586_v15 = vpop.f32.mrf.mxu1  ;;  %v4000_v44 = vpop.f32.mrf.mxu0 }
 0x5de   : > { %v3718_v48 = vmax.f32 %v3583_v20, 0.0  ;;  %v4223_v16 = vadd.f32 %v3999_v42, %v7099_v38  ;;  %v3783_v49 = vpack.c.bf16 %v3717_v19, %v3715_v53  ;;  %v3587_v9 = vadd.f32 %v3586_v15, %v7346_v62 }
 0x5df   : > { %v3588_v13 = vpop.f32.mrf.mxu1  ;;  %v4001_v43 = vpop.f32.mrf.mxu0  ;;  %v4284_v42 = vrot.slane %v7581_v17, 4 }
 0x5e0   : > { %v3784_v47 = vpack.c.bf16 %v3718_v48, %v3716_v58  ;;  %v4291_v1 = vadd.f32 %v4290_v39, %v4223_v16  ;;  %v4002_v4 = vadd.f32 %v7541_v36, %v4001_v43  ;;  %v3589_v29 = vadd.f32 %v3588_v13, %v7338_v45 }
 0x5e1   : > { %v3590_v5 = vpop.f32.mrf.mxu1  ;;  %v4003_v27 = vpop.f32.mrf.mxu0  ;;  %v3719_v48 = vmax.f32 %v3587_v9, 0.0 }
 0x5e2   : > { %v3591_v51 = vadd.f32 %v3590_v5, %v7346_v62  ;;  %4196 = vmatprep.mubr.bf16.mxu0 %v3784_v47  ;;  %v4224_v63 = vadd.f32 %v4002_v4, %v7096_v34  ;;  %v3720_v19 = vmax.f32 %v3589_v29, 0.0 }
 0x5e3   : > { %v3592_v38 = vpop.f32.mrf.mxu1  ;;  %v4006_v37 = vpop.f32.mrf.mxu0  ;;  %4197 = vmatmul.mubr.bf16.gmra.mxu0 %v3783_v49 }
 0x5e4   : > { %v3593_v33 = vadd.f32 %v3592_v38, %v7338_v45  ;;  %v4007_v56 = vadd.f32 %v7541_v36, %v4006_v37  ;;  %v4292_v21 = vadd.f32 %v4291_v1, %v4224_v63  ;;  %v3721_v39 = vmax.f32 %v3591_v51, 0.0 }
 0x5e5   : > { %v4008_v20 = vpop.f32.mrf.mxu0  ;;  %v4285_v45 = vadd.f32 %v4284_v42, %v7581_v17  ;;  %v5398_v17 = vld [vmem:[%s7778_s9 + $0x10] sm:$0xff]  }
 0x5e6   : > { %v3722_v44 = vmax.f32 %v3593_v33, 0.0  ;;  %v4225_v58 = vadd.f32 %v4007_v56, %v7111_v22  ;;  %v3785_v53 = vpack.c.bf16 %v3721_v39, %v3719_v48  ;;  %5211 = vmatpush3.bf16.msra.mxu1 %v5398_v17 }
 0x5e7   : > { %v4009_v62 = vpop.f32.mrf.mxu0  ;;  %v4286_v22 = vrot.slane %v4285_v45, 2  ;;  %5212 = vmatprep.subr.bf16.mxu1 %v8014_v50 }
 0x5e8   : > { %v3786_v15 = vpack.c.bf16 %v3722_v44, %v3720_v19  ;;  %v4293_v34 = vadd.f32 %v4292_v21, %v4225_v58  ;;  %v4010_v16 = vadd.f32 %v7541_v36, %v4009_v62 }
 0x5e9   : > { %v4011_v13 = vpop.f32.mrf.mxu0 }
 0x5ea   : > { %v4226_v43 = vadd.f32 %v4010_v16, %v7114_v2  ;;  %4204 = vmatprep.mubr.bf16.mxu0 %v3786_v15  ;;  %v4287_v2 = vadd.f32 %v4286_v22, %v4285_v45 }
 0x5eb   : > { %v4014_v47 = vpop.f32.mrf.mxu0  ;;  %4205 = vmatmul.mubr.bf16.gmra.mxu0 %v3785_v53 }
 0x5ec   : > { %v4294_v1 = vadd.f32 %v4293_v34, %v4226_v43  ;;  %v4015_v49 = vadd.f32 %v7541_v36, %v4014_v47  ;;  %v4288_v56 = vrot.slane %v4287_v2, 1 }
 0x5ed   : > { %v4016_v4 = vpop.f32.mrf.mxu0 }
 0x5ee   : > { %v4227_v5 = vadd.f32 %v4015_v49, %v7129_v59  ;;  %v4289_v44 = vadd.f32 %v4288_v56, %v4287_v2 }
 0x5ef   : > { %v4017_v27 = vpop.f32.mrf.mxu0 }
 0x5f0   : > { %v4295_v29 = vadd.f32 %v4294_v1, %v4227_v5  ;;  %v4018_v51 = vadd.f32 %v7541_v36, %v4017_v27  ;;  %v4382_v13 = vmul.f32 0.015625, %v4289_v44 }
 0x5f1   : > { %v4019_v9 = vpop.f32.mrf.mxu0 }
 0x5f2   : > { %v4228_v63 = vadd.f32 %v4018_v51, %v7126_v61  ;;  %v4390_v5 = vpack.c.bf16 %v4382_v13, %v4382_v13 }
 0x5f3   : > { %v4022_v38 = vpop.f32.mrf.mxu0 }
 0x5f4   : > { %v4296_v37 = vadd.f32 %v4295_v29, %v4228_v63  ;;  %v4023_v21 = vadd.f32 %v7541_v36, %v4022_v38  ;;  %v4429_v2 = vunpack.c.l.b16 %v4390_v5 }
 0x5f5   : > { %v4024_v33 = vpop.f32.mrf.mxu0 }
 0x5f6   : > { %v4297_v59 = vrot.slane %v4296_v37, 4  ;;  %v4229_v48 = vadd.f32 %v4023_v21, %v7141_v7 }
 0x5f7   : > { %v4025_v39 = vpop.f32.mrf.mxu0 }
 0x5f8   : > { %v4298_v20 = vadd.f32 %v4297_v59, %v4296_v37  ;;  %v4026_v42 = vadd.f32 %v7541_v36, %v4025_v39 }
 0x5f9   : > { %v4027_v19 = vpop.f32.mrf.mxu0 }
 0x5fa   : > { %v4299_v58 = vrot.slane %v4298_v20, 2  ;;  %v4230_v61 = vadd.f32 %v4026_v42, %v7144_v23 }
 0x5fb   : > { %v4030_v62 = vpop.f32.mrf.mxu0 }
 0x5fc   : > { %v4300_v15 = vadd.f32 %v4299_v58, %v4298_v20  ;;  %v4303_v34 = vadd.f32 %v4230_v61, %v4229_v48  ;;  %v4031_v16 = vadd.f32 %v7541_v36, %v4030_v62 }
 0x5fd   : > { %v4032_v53 = vpop.f32.mrf.mxu0 }
 0x5fe   : > { %v4301_v45 = vrot.slane %v4300_v15, 1  ;;  %v4231_v43 = vadd.f32 %v4031_v16, %v7159_v0 }
 0x5ff   : > { %v4033_v47 = vpop.f32.mrf.mxu0 }
 0x600   : > { %v4302_v1 = vadd.f32 %v4301_v45, %v4300_v15  ;;  %v4304_v49 = vadd.f32 %v4303_v34, %v4231_v43  ;;  %v4034_v4 = vadd.f32 %v7541_v36, %v4033_v47 }
 0x601   : > { %v4035_v22 = vpop.f32.mrf.mxu0 }
 0x602   : > { %v4383_v7 = vmul.f32 0.015625, %v4302_v1  ;;  %v4232_v23 = vadd.f32 %v4034_v4, %v7156_v54 }
 0x603   : > { %v4038_v27 = vpop.f32.mrf.mxu0 }
 0x604   : > { %v4391_v29 = vpack.c.bf16 %v4383_v7, %v4383_v7  ;;  %v4305_v51 = vadd.f32 %v4304_v49, %v4232_v23  ;;  %v4039_v17 = vadd.f32 %v7541_v36, %v4038_v27 }
 0x605   : > { %v4040_v9 = vpop.f32.mrf.mxu0 }
 0x606   : > { %v4430_v63 = vunpack.c.l.b16 %v4391_v29  ;;  %v4233_v0 = vadd.f32 %v4039_v17, %v7170_v55  ;;  %v5399_v55 = vld [vmem:[%s7778_s9 + $0x8] sm:$0xff]  }
 0x607   : > { %v4041_v38 = vpop.f32.mrf.mxu0  ;;  %5213 = vmatpush3.bf16.msra.mxu1 %v5399_v55 }
 0x608   : > { %v4438_v37 = vsel %vm4437_vm1, %v4430_v63, %v4429_v2  ;;  %v4306_v33 = vadd.f32 %v4305_v51, %v4233_v0  ;;  %v4042_v56 = vadd.f32 %v7541_v36, %v4041_v38  ;;  %5214 = vmatprep.subr.bf16.mxu1 %v8014_v50 }
 0x609   : > { %v4043_v59 = vpop.f32.mrf.mxu0 }
 0x60a   : > { %v4234_v21 = vadd.f32 %v4042_v56, %v7173_v31 }
 0x60b   : > { %v4046_v54 = vpop.f32.mrf.mxu0 }
 0x60c   : > { %v4307_v39 = vadd.f32 %v4306_v33, %v4234_v21  ;;  %v4047_v20 = vadd.f32 %v7541_v36, %v4046_v54 }
 0x60d   : > { %v4048_v42 = vpop.f32.mrf.mxu0 }
 0x60e   : > { %v4235_v19 = vadd.f32 %v4047_v20, %v7184_v46 }
 0x60f   : > { %v4049_v44 = vpop.f32.mrf.mxu0 }
 0x610   : > { %v4308_v58 = vadd.f32 %v4307_v39, %v4235_v19  ;;  %v4050_v48 = vadd.f32 %v7541_v36, %v4049_v44 }
 0x611   : > { %v4051_v61 = vpop.f32.mrf.mxu0 }
 0x612   : > { %v4236_v62 = vadd.f32 %v4050_v48, %v7181_v12 }
 0x613   : > { %v4054_v31 = vpop.f32.mrf.mxu0 }
 0x614   : > { %v4309_v15 = vadd.f32 %v4308_v58, %v4236_v62  ;;  %v4055_v46 = vadd.f32 %v7541_v36, %v4054_v31 }
 0x615   : > { %v4056_v34 = vpop.f32.mrf.mxu0 }
 0x616   : > { %v4310_v16 = vrot.slane %v4309_v15, 4  ;;  %v4237_v1 = vadd.f32 %v4055_v46, %v7192_v11 }
 0x617   : > { %v4057_v53 = vpop.f32.mrf.mxu0 }
 0x618   : > { %v4311_v13 = vadd.f32 %v4310_v16, %v4309_v15  ;;  %v4058_v45 = vadd.f32 %v7541_v36, %v4057_v53 }
 0x619   : > { %v4059_v43 = vpop.f32.mrf.mxu0 }
 0x61a   : > { %v4312_v47 = vrot.slane %v4311_v13, 2  ;;  %v4238_v49 = vadd.f32 %v4058_v45, %v7195_v60 }
 0x61b   : > { %v4062_v12 = vpop.f32.mrf.mxu0 }
 0x61c   : > { %v4313_v4 = vadd.f32 %v4312_v47, %v4311_v13  ;;  %v4316_v22 = vadd.f32 %v4238_v49, %v4237_v1  ;;  %v4063_v5 = vadd.f32 %v7541_v36, %v4062_v12  ;;  %v8015_v1 = vld [vmem:[#allocation8_spill] sm:$0xff]  ;;  %v8016_v12 = vld [vmem:[#allocation9_spill] sm:$0xff] }
 0x61d   : > { %v4064_v7 = vpop.f32.mrf.mxu0 }
 0x61e   : > { %v4314_v23 = vrot.slane %v4313_v4, 1  ;;  %v4239_v27 = vadd.f32 %v4063_v5, %v7206_v41 }
 0x61f   : > { %v4065_v29 = vpop.f32.mrf.mxu0 }
 0x620   : > { %v4315_v51 = vadd.f32 %v4314_v23, %v4313_v4  ;;  %v4317_v17 = vadd.f32 %v4316_v22, %v4239_v27  ;;  %v4066_v9 = vadd.f32 %v7541_v36, %v4065_v29  ;;  %v8017_v29 = vld [vmem:[#allocation10_spill] sm:$0xff] }
 0x621   : > { %v4067_v2 = vpop.f32.mrf.mxu0 }
 0x622   : > { %v4384_v63 = vmul.f32 0.015625, %v4315_v51  ;;  %v4240_v11 = vadd.f32 %v4066_v9, %v7203_v40 }
 0x623   : > { %v4070_v0 = vpop.f32.mrf.mxu0 }
 0x624   : > { %v4392_v60 = vpack.c.bf16 %v4384_v63, %v4384_v63  ;;  %v4318_v38 = vadd.f32 %v4317_v17, %v4240_v11  ;;  %v4071_v33 = vadd.f32 %v7541_v36, %v4070_v0 }
 0x625   : > { %v4072_v56 = vpop.f32.mrf.mxu0 }
 0x626   : > { %v4431_v59 = vunpack.c.l.b16 %v4392_v60  ;;  %v4241_v21 = vadd.f32 %v4071_v33, %v7214_v32  ;;  %v5400_v32 = vld [vmem:[%s7778_s9] sm:$0xff]  }
 0x627   : > { %v4073_v41 = vpop.f32.mrf.mxu0  ;;  %5215 = vmatpush3.bf16.msra.mxu1 %v5400_v32  ;;  %v8018_v60 = vld [vmem:[#allocation31_spill] sm:$0xff] }
 0x628   : > { %v4440_v54 = vsel %vm4439_vm2, %v4431_v59, %v4438_v37  ;;  %v4319_v39 = vadd.f32 %v4318_v38, %v4241_v21  ;;  %v4074_v20 = vadd.f32 %v7541_v36, %v4073_v41 }
 0x629   : > { %v4075_v42 = vpop.f32.mrf.mxu0 }
 0x62a   : > { %v4242_v19 = vadd.f32 %v4074_v20, %v7217_v25  ;;  %v8019_v20 = vld [vmem:[#allocation11_spill] sm:$0xff] }
 0x62b   : > { %v4078_v44 = vpop.f32.mrf.mxu0 }
 0x62c   : > { %v4320_v40 = vadd.f32 %v4319_v39, %v4242_v19  ;;  %v4079_v58 = vadd.f32 %v7541_v36, %v4078_v44 }
 0x62d   : > { %v4080_v48 = vpop.f32.mrf.mxu0 }
 0x62e   : > { %v4243_v55 = vadd.f32 %v4079_v58, %v7228_v3 }
 0x62f   : > { %v4081_v61 = vpop.f32.mrf.mxu0 }
 0x630   : > { %v4321_v62 = vadd.f32 %v4320_v40, %v4243_v55  ;;  %v4082_v31 = vadd.f32 %v7541_v36, %v4081_v61  ;;  %v8020_v55 = vld [vmem:[#allocation34_spill] sm:$0xff] }
 0x631   : > { %v4083_v37 = vpop.f32.mrf.mxu0 }
 0x632   : > { %v4244_v15 = vadd.f32 %v4082_v31, %v7225_v57 }
 0x633   : > { %v4086_v25 = vpop.f32.mrf.mxu0 }
 0x634   : > { %v4322_v34 = vadd.f32 %v4321_v62, %v4244_v15  ;;  %v4087_v53 = vadd.f32 %v7541_v36, %v4086_v25  ;;  %v8021_v15 = vld [vmem:[#allocation13_spill] sm:$0xff] }
 0x635   : > { %v4088_v16 = vpop.f32.mrf.mxu0 }
 0x636   : > { %v4323_v46 = vrot.slane %v4322_v34, 4  ;;  %v4245_v49 = vadd.f32 %v4087_v53, %v8015_v1  ;;  %v8022_v53 = vld [vmem:[#allocation33_spill] sm:$0xff] }
 0x637   : > { %v4089_v13 = vpop.f32.mrf.mxu0 }
 0x638   : > { %v4324_v3 = vadd.f32 %v4323_v46, %v4322_v34  ;;  %v4090_v45 = vadd.f32 %v7541_v36, %v4089_v13 }
 0x639   : > { %v4091_v43 = vpop.f32.mrf.mxu0 }
 0x63a   : > { %v4325_v47 = vrot.slane %v4324_v3, 2  ;;  %v4246_v4 = vadd.f32 %v4090_v45, %v8016_v12 }
 0x63b   : > { %v4094_v22 = vpop.f32.mrf.mxu0 }
 0x63c   : > { %v4326_v5 = vadd.f32 %v4325_v47, %v4324_v3  ;;  %v4329_v57 = vadd.f32 %v4246_v4, %v4245_v49  ;;  %v4095_v7 = vadd.f32 %v7541_v36, %v4094_v22 }
 0x63d   : > { %v4096_v23 = vpop.f32.mrf.mxu0 }
 0x63e   : > { %v4327_v27 = vrot.slane %v4326_v5, 1  ;;  %v4247_v51 = vadd.f32 %v4095_v7, %v8017_v29  ;;  %v8024_v7 = vld [vmem:[#allocation12_spill] sm:$0xff] }
 0x63f   : > { %v4097_v17 = vpop.f32.mrf.mxu0 }
 0x640   : > { %v4328_v9 = vadd.f32 %v4327_v27, %v4326_v5  ;;  %v4330_v2 = vadd.f32 %v4329_v57, %v4247_v51  ;;  %v4098_v63 = vadd.f32 %v7541_v36, %v4097_v17  ;;  %v8023_v5 = vld [vmem:[#allocation14_spill] sm:$0xff] }
 0x641   : > { %v4099_v11 = vpop.f32.mrf.mxu0 }
 0x642   : > { %v4385_v0 = vmul.f32 0.015625, %v4328_v9  ;;  %v4248_v38 = vadd.f32 %v4098_v63, %v8018_v60  ;;  %v8025_v63 = vld [vmem:[#allocation18_spill] sm:$0xff] }
 0x643   : > { %v4102_v33 = vpop.f32.mrf.mxu0 }
 0x644   : > { %v4393_v56 = vpack.c.bf16 %v4385_v0, %v4385_v0  ;;  %v4331_v59 = vadd.f32 %v4330_v2, %v4248_v38  ;;  %v4103_v21 = vadd.f32 %v7541_v36, %v4102_v33 }
 0x645   : > { %v4104_v41 = vpop.f32.mrf.mxu0 }
 0x646   : > { %v4432_v39 = vunpack.c.l.b16 %v4393_v56  ;;  %v4249_v42 = vadd.f32 %v4103_v21, %v8019_v20  ;;  %v8026_v21 = vld [vmem:[#allocation16_spill] sm:$0xff] }
 0x647   : > { %v4105_v19 = vpop.f32.mrf.mxu0 }
 0x648   : > { %v4442_v44 = vsel %vm4441_vm3, %v4432_v39, %v4440_v54  ;;  %v4332_v40 = vadd.f32 %v4331_v59, %v4249_v42  ;;  %v4106_v58 = vadd.f32 %v7541_v36, %v4105_v19 }
 0x649   : > { %v4107_v48 = vpop.f32.mrf.mxu0 }
 0x64a   : > { %v4250_v61 = vadd.f32 %v4106_v58, %v8020_v55  ;;  %v8027_v48 = vld [vmem:[#allocation15_spill] sm:$0xff] }
 0x64b   : > { %v4110_v62 = vpop.f32.mrf.mxu0 }
 0x64c   : > { %v4333_v31 = vadd.f32 %v4332_v40, %v4250_v61  ;;  %v4111_v32 = vadd.f32 %v7541_v36, %v4110_v62 }
 0x64d   : > { %v4112_v37 = vpop.f32.mrf.mxu0 }
 0x64e   : > { %v4251_v25 = vadd.f32 %v4111_v32, %v8021_v15  ;;  %v8028_v15 = vld [vmem:[#allocation17_spill] sm:$0xff] }
 0x64f   : > { %v4113_v34 = vpop.f32.mrf.mxu0 }
 0x650   : > { %v4334_v16 = vadd.f32 %v4333_v31, %v4251_v25  ;;  %v4114_v54 = vadd.f32 %v7541_v36, %v4113_v34 }
 0x651   : > { %v4115_v46 = vpop.f32.mrf.mxu0 }
 0x652   : > { %v4252_v13 = vadd.f32 %v4114_v54, %v8022_v53  ;;  %v8029_v53 = vld [vmem:[#allocation20_spill] sm:$0xff] }
 0x653   : > { %v4118_v3 = vpop.f32.mrf.mxu0 }
 0x654   : > { %v4335_v45 = vadd.f32 %v4334_v16, %v4252_v13  ;;  %v4119_v50 = vadd.f32 %v7541_v36, %v4118_v3 }
 0x655   : > { %v4120_v43 = vpop.f32.mrf.mxu0 }
 0x656   : > { %v4336_v47 = vrot.slane %v4335_v45, 4  ;;  %v4253_v57 = vadd.f32 %v4119_v50, %v8023_v5  ;;  %v8030_v50 = vld [vmem:[#allocation19_spill] sm:$0xff] }
 0x657   : > { %v4121_v1 = vpop.f32.mrf.mxu0 }
 0x658   : > { %v4337_v49 = vadd.f32 %v4336_v47, %v4335_v45  ;;  %v4122_v12 = vadd.f32 %v7541_v36, %v4121_v1 }
 0x659   : > { %v4123_v4 = vpop.f32.mrf.mxu0 }
 0x65a   : > { %v4338_v22 = vrot.slane %v4337_v49, 2  ;;  %v4254_v23 = vadd.f32 %v4122_v12, %v8024_v7 }
 0x65b   : > { %v4126_v27 = vpop.f32.mrf.mxu0 }
 0x65c   : > { %v4339_v29 = vadd.f32 %v4338_v22, %v4337_v49  ;;  %v4342_v51 = vadd.f32 %v4254_v23, %v4253_v57  ;;  %v4127_v17 = vadd.f32 %v7541_v36, %v4126_v27 }
 0x65d   : > { %v4128_v9 = vpop.f32.mrf.mxu0 }
 0x65e   : > { %v4340_v2 = vrot.slane %v4339_v29, 1  ;;  %v4255_v11 = vadd.f32 %v4127_v17, %v8025_v63 }
 0x65f   : > { %v4129_v0 = vpop.f32.mrf.mxu0 }
 0x660   : > { %v4341_v60 = vadd.f32 %v4340_v2, %v4339_v29  ;;  %v4343_v38 = vadd.f32 %v4342_v51, %v4255_v11  ;;  %v4130_v33 = vadd.f32 %v7541_v36, %v4129_v0 }
 0x661   : > { %v4131_v56 = vpop.f32.mrf.mxu0 }
 0x662   : > { %v4386_v59 = vmul.f32 0.015625, %v4341_v60  ;;  %v4256_v41 = vadd.f32 %v4130_v33, %v8026_v21 }
 0x663   : > { %v4134_v39 = vpop.f32.mrf.mxu0 }
 0x664   : > { %v4394_v20 = vpack.c.bf16 %v4386_v59, %v4386_v59  ;;  %v4344_v42 = vadd.f32 %v4343_v38, %v4256_v41  ;;  %v4135_v19 = vadd.f32 %v7541_v36, %v4134_v39 }
 0x665   : > { %v4136_v40 = vpop.f32.mrf.mxu0 }
 0x666   : > { %v4433_v58 = vunpack.c.l.b16 %v4394_v20  ;;  %v4257_v55 = vadd.f32 %v4135_v19, %v8027_v48  ;;  %v8031_v19 = vld [vmem:[#allocation21_spill] sm:$0xff] }
 0x667   : > { %v4137_v61 = vpop.f32.mrf.mxu0 }
 0x668   : > { %v4444_v62 = vsel %vm4443_vm5, %v4433_v58, %v4442_v44  ;;  %v4345_v31 = vadd.f32 %v4344_v42, %v4257_v55  ;;  %v4138_v32 = vadd.f32 %v7541_v36, %v4137_v61  ;;  %v8032_v55 = vld [vmem:[#allocation22_spill] sm:$0xff] }
 0x669   : > { %v4139_v37 = vpop.f32.mrf.mxu0 }
 0x66a   : > { %v4258_v25 = vadd.f32 %v4138_v32, %v8028_v15 }
 0x66b   : > { %v4142_v34 = vpop.f32.mrf.mxu0 }
 0x66c   : > { %v4346_v16 = vadd.f32 %v4345_v31, %v4258_v25  ;;  %v4143_v54 = vadd.f32 %v7541_v36, %v4142_v34  ;;  %v8033_v31 = vld [vmem:[#allocation24_spill] sm:$0xff]  ;;  %v8034_v25 = vld [vmem:[#allocation23_spill] sm:$0xff] }
 0x66d   : > { %v4144_v46 = vpop.f32.mrf.mxu0 }
 0x66e   : > { %v4259_v13 = vadd.f32 %v4143_v54, %v8029_v53 }
 0x66f   : > { %v4145_v3 = vpop.f32.mrf.mxu0 }
 0x670   : > { %v4347_v45 = vadd.f32 %v4346_v16, %v4259_v13  ;;  %v4146_v43 = vadd.f32 %v7541_v36, %v4145_v3 }
 0x671   : > { %v4147_v47 = vpop.f32.mrf.mxu0 }
 0x672   : > { %v4260_v44 = vadd.f32 %v4146_v43, %v8030_v50 }
 0x673   : > { %v4150_v1 = vpop.f32.mrf.mxu0 }
 0x674   : > { %v4348_v49 = vadd.f32 %v4347_v45, %v4260_v44  ;;  %v4151_v39 = vadd.f32 %v7541_v36, %v4150_v1 }
 0x675   : > { %v4152_v12 = vpop.f32.mrf.mxu0 }
 0x676   : > { %v4349_v4 = vrot.slane %v4348_v49, 4  ;;  %v4261_v61 = vadd.f32 %v4151_v39, %v8032_v55 }
 0x677   : > { %v4153_v22 = vpop.f32.mrf.mxu0 }
 0x678   : > { %v4350_v5 = vadd.f32 %v4349_v4, %v4348_v49  ;;  %v4154_v21 = vadd.f32 %v7541_v36, %v4153_v22  ;;  %v8035_v4 = vld [vmem:[#allocation26_spill] sm:$0xff] }
 0x679   : > { %v4155_v57 = vpop.f32.mrf.mxu0 }
 0x67a   : > { %v4351_v7 = vrot.slane %v4350_v5, 2  ;;  %v4262_v40 = vadd.f32 %v4154_v21, %v8031_v19 }
 0x67b   : > { %v4158_v23 = vpop.f32.mrf.mxu0 }
 0x67c   : > { %v4352_v27 = vadd.f32 %v4351_v7, %v4350_v5  ;;  %v4159_v20 = vadd.f32 %v7541_v36, %v4158_v23  ;;  %v4355_v15 = vadd.f32 %v4262_v40, %v4261_v61 }
 0x67d   : > { %v4160_v29 = vpop.f32.mrf.mxu0 }
 0x67e   : > { %v4353_v51 = vrot.slane %v4352_v27, 1  ;;  %v4263_v32 = vadd.f32 %v4159_v20, %v8033_v31 }
 0x67f   : > { %v4161_v17 = vpop.f32.mrf.mxu0 }
 0x680   : > { %v4354_v9 = vadd.f32 %v4353_v51, %v4352_v27  ;;  %v4162_v58 = vadd.f32 %v7541_v36, %v4161_v17  ;;  %v4356_v46 = vadd.f32 %v4355_v15, %v4263_v32 }
 0x681   : > { %v4163_v2 = vpop.f32.mrf.mxu0 }
 0x682   : > { %v4387_v63 = vmul.f32 0.015625, %v4354_v9  ;;  %v4264_v34 = vadd.f32 %v4162_v58, %v8034_v25 }
 0x683   : > { %v4166_v11 = vpop.f32.mrf.mxu0 }
 0x684   : > { %v4395_v0 = vpack.c.bf16 %v4387_v63, %v4387_v63  ;;  %v4357_v45 = vadd.f32 %v4356_v46, %v4264_v34 }
 0x685   : > { %v4168_v60 = vpop.f32.mrf.mxu0 }
 0x686   : > { %v4434_v38 = vunpack.c.l.b16 %v4395_v0 }
 0x687   : > { %v4169_v33 = vpop.f32.mrf.mxu0 }
 0x688   : > { %v7685_v56 = vsel %vm4445_vm6, %v4434_v38, %v4444_v62  ;;  %v4167_v62 = vadd.f32 %v7541_v36, %v4166_v11  ;;  %v4170_v16 = vadd.f32 %v7541_v36, %v4169_v33 }
 0x689   : > { %v4171_v59 = vpop.f32.mrf.mxu0 }
 0x68a   : > { %v4265_v53 = vadd.f32 %v4167_v62, %v7361_v14  ;;  %v4266_v43 = vadd.f32 %v4170_v16, %v7364_v30 }
 0x68b   : > { %v4174_v41 = vpop.f32.mrf.mxu0 }
 0x68c   : > { %v4175_v13 = vadd.f32 %v7541_v36, %v4174_v41  ;;  %v4358_v44 = vadd.f32 %v4357_v45, %v4265_v53 }
 0x68d   : > { %v4176_v42 = vpop.f32.mrf.mxu0 }
 0x68e   : > { %v4267_v1 = vadd.f32 %v4175_v13, %v7379_v18  ;;  %v4359_v12 = vadd.f32 %v4358_v44, %v4266_v43 }
 0x68f   : > { %v4177_v48 = vpop.f32.mrf.mxu0 }
 0x690   : > { %v4178_v47 = vadd.f32 %v7541_v36, %v4177_v48  ;;  %v4360_v57 = vadd.f32 %v4359_v12, %v4267_v1  ;;  %v4839_v1 = vld [vmem:[%s7779_s10] ss:$0 sm:$0xff] }
 0x691   : > { %v4179_v37 = vpop.f32.mrf.mxu0 }
 0x692   : > { %v4268_v22 = vadd.f32 %v4178_v47, %v8035_v4 }
 0x693   : > { %v4182_v54 = vpop.f32.mrf.mxu0 }
 0x694   : > { %v4361_v14 = vadd.f32 %v4360_v57, %v4268_v22  ;;  %v4183_v30 = vadd.f32 %v7541_v36, %v4182_v54 }
 0x695   : > { %v4184_v3 = vpop.f32.mrf.mxu0 }
 0x696   : > { %v4362_v17 = vrot.slane %v4361_v14, 4  ;;  %v4269_v11 = vadd.f32 %v4183_v30, %v7391_v26 }
 0x697   : > { %v4185_v50 = vpop.f32.mrf.mxu0 }
 0x698   : > { %v4186_v27 = vadd.f32 %v7541_v36, %v4185_v50  ;;  %v4363_v38 = vadd.f32 %v4362_v17, %v4361_v14 }
 0x699   : > { %v4187_v49 = vpop.f32.mrf.mxu0 }
 0x69a   : > { %v4270_v18 = vadd.f32 %v4186_v27, %v7394_v24  ;;  %v4364_v42 = vrot.slane %v4363_v38, 2 }
 0x69b   : > { %v4190_v5 = vpop.f32.mrf.mxu0 }
 0x69c   : > { %v4191_v51 = vadd.f32 %v7541_v36, %v4190_v5  ;;  %v4368_v59 = vadd.f32 %v4270_v18, %v4269_v11  ;;  %v4365_v61 = vadd.f32 %v4364_v42, %v4363_v38 }
 0x69d   : > { %v4192_v7 = vpop.f32.mrf.mxu0 }
 0x69e   : > { %v4271_v0 = vadd.f32 %v4191_v51, %v7409_v35  ;;  %v4366_v15 = vrot.slane %v4365_v61, 1 }
 0x69f   : > { %v4193_v23 = vpop.f32.mrf.mxu0 }
 0x6a0   : > { %v4194_v2 = vadd.f32 %v7541_v36, %v4193_v23  ;;  %v4369_v20 = vadd.f32 %v4368_v59, %v4271_v0  ;;  %v4367_v16 = vadd.f32 %v4366_v15, %v4365_v61 }
 0x6a1   : > { %v4195_v29 = vpop.f32.mrf.mxu0 }
 0x6a2   : > { %v4272_v21 = vadd.f32 %v4194_v2, %v7406_v28  ;;  %v4388_v46 = vmul.f32 0.015625, %v4367_v16 }
 0x6a3   : > { %v4198_v9 = vpop.f32.mrf.mxu0 }
 0x6a4   : > { %v4199_v60 = vadd.f32 %v7541_v36, %v4198_v9  ;;  %v4370_v40 = vadd.f32 %v4369_v20, %v4272_v21 }
 0x6a5   : > { %v4200_v63 = vpop.f32.mrf.mxu0 }
 0x6a6   : > { %v4273_v24 = vadd.f32 %v4199_v60, %v7421_v8 }
 0x6a7   : > { %v4201_v33 = vpop.f32.mrf.mxu0 }
 0x6a8   : > { %v4202_v41 = vadd.f32 %v7541_v36, %v4201_v33  ;;  %v4371_v48 = vadd.f32 %v4370_v40, %v4273_v24 }
 0x6a9   : > { %v4203_v39 = vpop.f32.mrf.mxu0 }
 0x6aa   : > { %v4274_v26 = vadd.f32 %v4202_v41, %v7424_v10 }
 0x6ab   : > { %v4206_v19 = vpop.f32.mrf.mxu0 }
 0x6ac   : > { %v4207_v35 = vadd.f32 %v7541_v36, %v4206_v19  ;;  %v4372_v28 = vadd.f32 %v4371_v48, %v4274_v26 }
 0x6ad   : > { %v4208_v58 = vpop.f32.mrf.mxu0 }
 0x6ae   : > { %v4275_v55 = vadd.f32 %v4207_v35, %v7439_v52  ;;  %v4396_v52 = vpack.c.bf16 %v4388_v46, %v4388_v46 }
 0x6af   : > { %v4209_v31 = vpop.f32.mrf.mxu0 }
 0x6b0   : > { %v4210_v32 = vadd.f32 %v7541_v36, %v4209_v31  ;;  %v4373_v37 = vadd.f32 %v4372_v28, %v4275_v55  ;;  %v4435_v43 = vunpack.c.l.b16 %v4396_v52 }
 0x6b1   : > { %v4211_v62 = vpop.f32.mrf.mxu0 }
 0x6b2   : > { %v4276_v8 = vadd.f32 %v4210_v32, %v7436_v6  ;;  %v4448_v6 = vsel %vm4447_vm7, %v4435_v43, %v7685_v56 }
 0x6b4   : > { %v4374_v25 = vadd.f32 %v4373_v37, %v4276_v8 }
 0x6b6   : > { %v4375_v34 = vrot.slane %v4374_v25, 4 }
 0x6b8   : > { %v4376_v10 = vadd.f32 %v4375_v34, %v4374_v25 }
 0x6ba   : > { %v4377_v54 = vrot.slane %v4376_v10, 2 }
 0x6bc   : > { %v4378_v53 = vadd.f32 %v4377_v54, %v4376_v10 }
 0x6be   : > { %v4379_v13 = vrot.slane %v4378_v53, 1 }
 0x6c0   : > { %v4380_v3 = vadd.f32 %v4379_v13, %v4378_v53 }
 0x6c2   : > { %v4389_v45 = vmul.f32 0.015625, %v4380_v3 }
 0x6c4   : > { %v4397_v36 = vpack.c.bf16 %v4389_v45, %v4389_v45 }
 0x6c6   : > { %v4436_v47 = vunpack.c.l.b16 %v4397_v36 }
 0x6c8   : > { %v4450_v50 = vsel %vm4449_vm8, %v4436_v47, %v4448_v6 }
 0x6c9   : > { %v4451_v44 = vpack.c.b16 %v4450_v50, %v4450_v50 }
 0x6cb   : > { %5217 = vmatmul.mubr.bf16.vlgmr.msra.gmra.mxu1 %v4451_v44 }
 0x78b   : > { %v4535_v49 = vpop.f32.mrf.mxu1 }
 0x78c   : > { %v4536_v12 = vadd.f32 %v4839_v1, %v4535_v49 }
 0x78d   : > { %v5218_v56 = vpop.f32.mrf.mxu1 }
 0x78e   : > { %4541 = vst [vmem:[%s380_s13] sm:$0xff] %v4536_v12 }
 0x78f   : > { %v4538_v4 = vpop.f32.mrf.mxu1 }
 0x790   : > { %5414 = shalt.err (!%p5411_p3)
}
 0x791   : > { %s5415_s12 = scalar_lea.hbm %s7728_s22, 128  ;;  %s5419_s16 = scalar_lea.hbm %s7780_s11, 512 }
 0x792   : > { %p5416_p4 = scmp.ne.s32.totalorder %s7728_s22, %s5415_s12  ;;  %p5420_p9 = scmp.lt.s32.totalorder %s7728_s22, %s7780_s11 }
 0x793   : > { %p5421_p10 = scmp.lt.s32.totalorder %s5419_s16, %s5415_s12 }
 0x794   : > { %p5417_p7 = pnand %p5416_p4, %p5565_p5 }
 0x795   : > { %p5422_p11 = por %p5421_p10, %p5420_p9 }
 0x796   : > { %p5418_p8 = pneg %p5417_p7 }
 0x798   : > { %p5423_p12 = pnand %p5422_p11, %p5418_p8 }
 0x79a   : > { %5426 = shalt.err (!%p5423_p12)
}
 0x79b   : > { %5222 = dma.vmem_to_hbm [thread:$0]  (%p5565_p5), %s7730_s14, 128, %s7728_s22, %s4543_s29   ;;  %v5219_v22 = vpop.f32.mrf.mxu1 }
 0x79c PF: > { %p5228_p13 = scmp.ge.s32.totalorder %s5461_s20, 2  ;;  %s4568_s30 = sand.u32 1, %s5449_s17  }
 0x79d   : > { %s4569_s0 = scalar_lea.sflag [#allocation3], %s4568_s30 }
 0x79e   : > { %p5225_p0 = pnand %p5228_p13, %p5569_p6 }
 0x7a0   : > { %p5226_p1 = pneg %p5225_p0 }
 0x7a2   : > { %5444 = dma.done.wait (%p5226_p1), %s4569_s0, 128  }
 0x7a3   : > { %5446 = vsyncadd (%p5226_p1), %s4569_s0, 4294967168  ;;  %p21_p2 = scmp.ge.s32.totalorder %s5552_s23, 6   ;;  %s8036_s17 = smov %s5453_s18 }
 0x7a4   : > { %s8037_s18 = smov %s5457_s19  ;;  %s8038_s19 = smov %s5563_s26 }
 0x7a5   : > { %s8039_s20 = smov %s5552_s23  ;;  %23 = sbr.rel (!%p21_p2) target bundleno = 5 (0x5), region = 105 }
 0x7aa   :  { %4574 = vsyncpa [#allocation3], 1 }
 0x7ab   :  { %4576 = vsyncpa [#allocation3 + $0x1], 1 }

</bundles_post_ra>
